<compile_context>
chip_gen: v6e
topology: v6e:2x2x1
jax: 0.10.0
libtpu: 0.0.40
codegen_flags: <defaults>
</compile_context>

<pallas_src>
import jax
import jax.numpy as jnp
from jax import lax
from jax.experimental import pallas as pl
from jax.experimental.pallas import tpu as pltpu

BN_EPS = 1e-5
# eval BatchNorm1d with default running stats == multiply by 1/sqrt(1+eps)
BN_SCALE = float(1.0 / (1.0 + BN_EPS) ** 0.5)

PH_DIM = 3115
PH_DIM_PAD = 3200  # 25 * 128, lane-aligned


def _vmem():
    return pl.BlockSpec(memory_space=pltpu.MemorySpace.VMEM)


def _mm(a, b):
    """bf16 x bf16 MXU matmul with f32 accumulation."""
    return jnp.dot(a.astype(jnp.bfloat16), b, preferred_element_type=jnp.float32)


# ---------------------------------------------------------------------------
# Single fused kernel: GNN + PH MLP + classifier head
# ---------------------------------------------------------------------------
def _topo_kernel(src_ref, dst_ref, batch_ref,            # int32 VMEM index vectors
                 nx_ref, eattr_ref, ph_ref,               # inputs
                 w_nemb_ref, b_nemb_ref,
                 wn_ref, bn_ref, ve_ref, ce_ref, wg_ref, bg_ref,
                 wf_ref, bf_ref,
                 wp1_ref, bp1_ref, wp2_ref, bp2_ref, wp3_ref, bp3_ref,
                 wc1g_ref, wc1h_ref, bc1_ref, wc2_ref, bc2_ref, wc3_ref, bc3_ref,
                 o_ref):
    bf16 = jnp.bfloat16
    N = nx_ref.shape[0]
    E = eattr_ref.shape[0]
    G = ph_ref.shape[0]
    num_layers = wn_ref.shape[0]

    # ---- one-hot gather / scatter / pool operators (built once, VPU) -------
    # (e, n) = 1  iff edge_src[e] == n
    oh_src = (src_ref[...] ==
              lax.broadcasted_iota(jnp.int32, (E, N), 1)).astype(bf16)
    # (n, e) = 1  iff edge_dst[e] == n
    oh_dst = (dst_ref[...] ==
              lax.broadcasted_iota(jnp.int32, (N, E), 0)).astype(bf16)
    # (g, n) = 1  iff batch[n] == g
    oh_pool = (batch_ref[...] ==
               lax.broadcasted_iota(jnp.int32, (G, N), 0)).astype(jnp.float32)

    # ---- node embedding (MXU) ----------------------------------------------
    x = _mm(nx_ref[...], w_nemb_ref[...]) + b_nemb_ref[...]          # (N,64) f32
    xb = x.astype(bf16)

    eattr = eattr_ref[...]                                            # (E,1) f32

    # ---- 3 x CrystalGraphConv (+ eval BN + ReLU) ----------------------------
    for l in range(num_layers):
        # gather x_j = x[edge_src] on the MXU
        x_j = _mm(oh_src, xb)                                         # (E,64) f32

        # edge path collapsed: edge_linear(edge_embedding(a)) == a*v_l + c_l
        ef = eattr * ve_ref[l] + ce_ref[l]                            # (E,64) f32

        # gate = sigmoid([x_j | ef] @ Wg + bg), single K=128 MXU pass
        comb = jnp.concatenate([x_j, ef], axis=-1).astype(bf16)       # (E,128)
        gate = jax.nn.sigmoid(
            jnp.dot(comb, wg_ref[l], preferred_element_type=jnp.float32)
            + bg_ref[l])                                              # (E,64) f32
        msg = (gate * x_j).astype(bf16)                               # (E,64)

        # scatter-add to destination nodes on the MXU
        aggr = jnp.dot(oh_dst, msg, preferred_element_type=jnp.float32)  # (N,64)

        # update(): node_linear(x) + aggr, eval-BN (scalar), ReLU
        upd = _mm(xb, wn_ref[l]) + bn_ref[l] + aggr
        xb = jnp.maximum(upd * BN_SCALE, 0.0).astype(bf16)

    # ---- global_mean_pool via one-hot matmul --------------------------------
    psum = jnp.dot(oh_pool.astype(bf16), xb,
                   preferred_element_type=jnp.float32)                # (G,64)
    cnt = jnp.sum(oh_pool, axis=-1, keepdims=True)                    # (G,1)
    pooled = psum / jnp.maximum(cnt, 1.0)

    # ---- final_projection: Linear (BN folded) + ReLU (+ eval Dropout = id) --
    g = jnp.maximum(_mm(pooled, wf_ref[...]) + bf_ref[...], 0.0)      # (G,128)

    # ---- ph_processor: Linear+BN(folded)+ReLU x2, Linear --------------------
    h = jnp.maximum(_mm(ph_ref[...], wp1_ref[...]) + bp1_ref[...], 0.0)
    h = jnp.maximum(_mm(h, wp2_ref[...]) + bp2_ref[...], 0.0)
    h = _mm(h, wp3_ref[...]) + bp3_ref[...]                           # (G,64)

    # ---- classifier: cat([g, h]) @ Wc1 == g @ Wc1[:128] + h @ Wc1[128:] -----
    c = jnp.maximum(_mm(g, wc1g_ref[...]) + _mm(h, wc1h_ref[...])
                    + bc1_ref[...], 0.0)
    c = jnp.maximum(_mm(c, wc2_ref[...]) + bc2_ref[...], 0.0)
    # final Linear(64, 2) zero-padded to 128 output lanes; wrapper slices [:, :2]
    o_ref[...] = _mm(c, wc3_ref[...]) + bc3_ref[...]


def topological_classifier_forward(p, node_x, edge_src, edge_dst, edge_attr,
                                   batch, ph):
    N = node_x.shape[0]
    E = edge_src.shape[0]
    G = ph.shape[0]

    # lane-aligned PH features (padding rows of wp1 are zero -> exact result)
    ph_p = jnp.pad(ph, ((0, 0), (0, PH_DIM_PAD - ph.shape[1])))

    src2 = edge_src.astype(jnp.int32).reshape(E, 1)
    dst2 = edge_dst.astype(jnp.int32).reshape(1, E)
    batch2 = batch.astype(jnp.int32).reshape(1, N)

    out_padded = pl.pallas_call(
        _topo_kernel,
        out_shape=jax.ShapeDtypeStruct((G, 128), jnp.float32),
        in_specs=[_vmem()] * 29,
        out_specs=_vmem(),
        compiler_params=pltpu.CompilerParams(vmem_limit_bytes=48 * 1024 * 1024),
    )(src2, dst2, batch2,
      node_x, edge_attr, ph_p,
      p["w_nemb"], p["b_nemb"],
      p["wn"], p["bn"], p["ve"], p["ce"], p["wg"], p["bg"],
      p["wf"], p["bf"],
      p["wp1"], p["bp1"], p["wp2"], p["bp2"], p["wp3"], p["bp3"],
      p["wc1g"], p["wc1h"], p["bc1"], p["wc2"], p["bc2"], p["wc3"], p["bc3"])
    return out_padded[:, :2]


# ---------------------------------------------------------------------------
# Parameters (deterministic, PyTorch-style uniform init), stored pre-folded:
#   * weights transposed to (in, out), cast to bf16 (MXU); biases f32 rows.
#   * eval BatchNorm folded into the preceding Linear where exact.
#   * scalar edge path (edge_embedding -> edge_linear) collapsed to v_l, c_l.
# ---------------------------------------------------------------------------
def _linear_init(key, fan_in, fan_out):
    kw, kb = jax.random.split(key)
    bound = fan_in ** -0.5
    w = jax.random.uniform(kw, (fan_in, fan_out), jnp.float32, -bound, bound)
    b = jax.random.uniform(kb, (fan_out,), jnp.float32, -bound, bound)
    return w, b


def init_params(key):
    node_dim, edge_dim, hidden_dim = 64, 32, 128
    s = BN_SCALE
    ks = iter(jax.random.split(key, 32))
    p = {}

    # node embedding
    w, b = _linear_init(next(ks), 27 + 50, node_dim)
    p["w_nemb"], p["b_nemb"] = w.astype(jnp.bfloat16), b.reshape(1, -1)

    # edge embedding (kept f32 for the algebraic collapse below)
    w_eemb, b_eemb = _linear_init(next(ks), 1, edge_dim)     # (1,32), (32,)
    b_eemb = b_eemb.reshape(1, -1)

    wn_l, bn_l, ve_l, ce_l, wg_l, bg_l = [], [], [], [], [], []
    for _ in range(3):
        wn, bn_ = _linear_init(next(ks), node_dim, node_dim)
        we, be = _linear_init(next(ks), edge_dim, node_dim)
        wg, bg = _linear_init(next(ks), 2 * node_dim, node_dim)
        wn_l.append(wn.astype(jnp.bfloat16))
        bn_l.append(bn_.reshape(1, -1))
        # edge_linear(edge_embedding(a)) == a * v + c   (a is a scalar per edge)
        ve_l.append(w_eemb @ we)                              # (1,64)
        ce_l.append(b_eemb @ we + be.reshape(1, -1))          # (1,64)
        wg_l.append(wg.astype(jnp.bfloat16))                  # (128,64), K=128
        bg_l.append(bg.reshape(1, -1))
    p["wn"], p["bn"] = jnp.stack(wn_l), jnp.stack(bn_l)
    p["ve"], p["ce"] = jnp.stack(ve_l), jnp.stack(ce_l)
    p["wg"], p["bg"] = jnp.stack(wg_l), jnp.stack(bg_l)

    # final_projection: Linear with eval-BN folded
    w, b = _linear_init(next(ks), node_dim, hidden_dim)
    p["wf"], p["bf"] = (w * s).astype(jnp.bfloat16), (b * s).reshape(1, -1)

    # ph_processor (BN folded into ph1/ph2); wp1 zero-padded 3115 -> 3200 rows
    w, b = _linear_init(next(ks), PH_DIM, 512)
    w = jnp.pad(w, ((0, PH_DIM_PAD - PH_DIM), (0, 0)))
    p["wp1"], p["bp1"] = (w * s).astype(jnp.bfloat16), (b * s).reshape(1, -1)
    w, b = _linear_init(next(ks), 512, 128)
    p["wp2"], p["bp2"] = (w * s).astype(jnp.bfloat16), (b * s).reshape(1, -1)
    w, b = _linear_init(next(ks), 128, 64)
    p["wp3"], p["bp3"] = w.astype(jnp.bfloat16), b.reshape(1, -1)

    # classifier head (BN folded into cls1; split for the g/h concat)
    w, b = _linear_init(next(ks), hidden_dim + 64, 128)
    p["wc1g"] = (w[:hidden_dim] * s).astype(jnp.bfloat16)
    p["wc1h"] = (w[hidden_dim:] * s).astype(jnp.bfloat16)
    p["bc1"] = (b * s).reshape(1, -1)
    w, b = _linear_init(next(ks), 128, 64)
    p["wc2"], p["bc2"] = w.astype(jnp.bfloat16), b.reshape(1, -1)
    w, b = _linear_init(next(ks), 64, 2)                      # pad 2 -> 128 lanes
    p["wc3"] = jnp.pad(w, ((0, 0), (0, 126))).astype(jnp.bfloat16)
    p["bc3"] = jnp.pad(b, (0, 126)).reshape(1, -1)
    return p


# ---------------------------------------------------------------------------
if __name__ == "__main__":
    key = jax.random.PRNGKey(0)
    k0, k1, k2, k3, k4, kp = jax.random.split(key, 6)

    N_NODES, N_EDGES, N_GRAPHS = 16, 32, 2

    node_x = jax.random.normal(k0, (N_NODES, 27 + 50), jnp.float32)
    edge_src = jax.random.randint(k1, (N_EDGES,), 0, N_NODES)
    edge_dst = jax.random.randint(k2, (N_EDGES,), 0, N_NODES)
    edge_attr = jax.random.normal(k3, (N_EDGES, 1), jnp.float32)
    batch = jnp.concatenate([jnp.zeros(N_NODES // 2, jnp.int32),
                             jnp.ones(N_NODES // 2, jnp.int32)])
    ph_features = jax.random.normal(k4, (N_GRAPHS, PH_DIM), jnp.float32)

    params = init_params(kp)

    out = topological_classifier_forward(params, node_x, edge_src, edge_dst,
                                         edge_attr, batch, ph_features)
    out = jax.block_until_ready(out)
    assert out.shape == (N_GRAPHS, 2) and out.dtype == jnp.float32
    assert bool(jnp.all(jnp.isfinite(out)))
    print("KERNEL_OK")
</pallas_src>

<mosaic_0001>
module attributes {stable_mosaic.version = 11 : i64} {
  func.func @_topo_kernel(%arg0: memref<32x1xi32, #tpu.memory_space<vmem>>, %arg1: memref<1x32xi32, #tpu.memory_space<vmem>>, %arg2: memref<1x16xi32, #tpu.memory_space<vmem>>, %arg3: memref<16x77xf32, #tpu.memory_space<vmem>>, %arg4: memref<32x1xf32, #tpu.memory_space<vmem>>, %arg5: memref<2x3200xf32, #tpu.memory_space<vmem>>, %arg6: memref<77x64xbf16, #tpu.memory_space<vmem>>, %arg7: memref<1x64xf32, #tpu.memory_space<vmem>>, %arg8: memref<3x64x64xbf16, #tpu.memory_space<vmem>>, %arg9: memref<3x1x64xf32, #tpu.memory_space<vmem>>, %arg10: memref<3x1x64xf32, #tpu.memory_space<vmem>>, %arg11: memref<3x1x64xf32, #tpu.memory_space<vmem>>, %arg12: memref<3x128x64xbf16, #tpu.memory_space<vmem>>, %arg13: memref<3x1x64xf32, #tpu.memory_space<vmem>>, %arg14: memref<64x128xbf16, #tpu.memory_space<vmem>>, %arg15: memref<1x128xf32, #tpu.memory_space<vmem>>, %arg16: memref<3200x512xbf16, #tpu.memory_space<vmem>>, %arg17: memref<1x512xf32, #tpu.memory_space<vmem>>, %arg18: memref<512x128xbf16, #tpu.memory_space<vmem>>, %arg19: memref<1x128xf32, #tpu.memory_space<vmem>>, %arg20: memref<128x64xbf16, #tpu.memory_space<vmem>>, %arg21: memref<1x64xf32, #tpu.memory_space<vmem>>, %arg22: memref<128x128xbf16, #tpu.memory_space<vmem>>, %arg23: memref<64x128xbf16, #tpu.memory_space<vmem>>, %arg24: memref<1x128xf32, #tpu.memory_space<vmem>>, %arg25: memref<128x64xbf16, #tpu.memory_space<vmem>>, %arg26: memref<1x64xf32, #tpu.memory_space<vmem>>, %arg27: memref<64x128xbf16, #tpu.memory_space<vmem>>, %arg28: memref<1x128xf32, #tpu.memory_space<vmem>>, %arg29: memref<2x128xf32, #tpu.memory_space<vmem>>) attributes {dimension_semantics = [], scalar_prefetch = 0 : i64, scratch_operands = 0 : i64, tpu.core_type = #tpu.core_type<tc>} {
    %c0 = arith.constant 0 : index
    %c0_0 = arith.constant 0 : index
    %0 = vector.load %arg0[%c0, %c0_0] : memref<32x1xi32, #tpu.memory_space<vmem>>, vector<32x1xi32>
    %1 = tpu.iota {dimensions = array<i32: 1>} : vector<32x16xi32>
    %2 = vector.broadcast %0 : vector<32x1xi32> to vector<32x16xi32>
    %3 = arith.cmpi eq, %2, %1 : vector<32x16xi32>
    %4 = arith.extui %3 : vector<32x16xi1> to vector<32x16xi32>
    %5 = arith.sitofp %4 : vector<32x16xi32> to vector<32x16xf32>
    %6 = arith.truncf %5 : vector<32x16xf32> to vector<32x16xbf16>
    %c0_1 = arith.constant 0 : index
    %c0_2 = arith.constant 0 : index
    %7 = vector.load %arg1[%c0_1, %c0_2] : memref<1x32xi32, #tpu.memory_space<vmem>>, vector<1x32xi32>
    %8 = tpu.iota {dimensions = array<i32: 0>} : vector<16x32xi32>
    %9 = vector.broadcast %7 : vector<1x32xi32> to vector<16x32xi32>
    %10 = arith.cmpi eq, %9, %8 : vector<16x32xi32>
    %11 = arith.extui %10 : vector<16x32xi1> to vector<16x32xi32>
    %12 = arith.sitofp %11 : vector<16x32xi32> to vector<16x32xf32>
    %13 = arith.truncf %12 : vector<16x32xf32> to vector<16x32xbf16>
    %c0_3 = arith.constant 0 : index
    %c0_4 = arith.constant 0 : index
    %14 = vector.load %arg2[%c0_3, %c0_4] : memref<1x16xi32, #tpu.memory_space<vmem>>, vector<1x16xi32>
    %15 = tpu.iota {dimensions = array<i32: 0>} : vector<2x16xi32>
    %16 = vector.broadcast %14 : vector<1x16xi32> to vector<2x16xi32>
    %17 = arith.cmpi eq, %16, %15 : vector<2x16xi32>
    %18 = arith.extui %17 : vector<2x16xi1> to vector<2x16xi32>
    %19 = arith.sitofp %18 : vector<2x16xi32> to vector<2x16xf32>
    %c0_5 = arith.constant 0 : index
    %c0_6 = arith.constant 0 : index
    %20 = vector.load %arg3[%c0_5, %c0_6] : memref<16x77xf32, #tpu.memory_space<vmem>>, vector<16x77xf32>
    %c0_7 = arith.constant 0 : index
    %c0_8 = arith.constant 0 : index
    %21 = vector.load %arg6[%c0_7, %c0_8] : memref<77x64xbf16, #tpu.memory_space<vmem>>, vector<77x64xbf16>
    %22 = arith.truncf %20 : vector<16x77xf32> to vector<16x77xbf16>
    %cst = arith.constant dense<0.000000e+00> : vector<16x64xf32>
    %23 = tpu.matmul %22, %21, %cst {dimension_numbers = #tpu.dot_dimension_numbers<[1], [0], [0], [1], [0, 0, 1, 1], [], []>} : vector<16x77xbf16>, vector<77x64xbf16>, vector<16x64xf32> -> vector<16x64xf32>
    %c0_9 = arith.constant 0 : index
    %c0_10 = arith.constant 0 : index
    %24 = vector.load %arg7[%c0_9, %c0_10] : memref<1x64xf32, #tpu.memory_space<vmem>>, vector<1x64xf32>
    %25 = vector.broadcast %24 : vector<1x64xf32> to vector<16x64xf32>
    %26 = arith.addf %23, %25 : vector<16x64xf32>
    %27 = arith.truncf %26 : vector<16x64xf32> to vector<16x64xbf16>
    %c0_11 = arith.constant 0 : index
    %c0_12 = arith.constant 0 : index
    %28 = vector.load %arg4[%c0_11, %c0_12] : memref<32x1xf32, #tpu.memory_space<vmem>>, vector<32x1xf32>
    %cst_13 = arith.constant dense<0.000000e+00> : vector<32x64xf32>
    %29 = tpu.matmul %6, %27, %cst_13 {dimension_numbers = #tpu.dot_dimension_numbers<[1], [0], [0], [1], [0, 0, 1, 1], [], []>} : vector<32x16xbf16>, vector<16x64xbf16>, vector<32x64xf32> -> vector<32x64xf32>
    %c0_14 = arith.constant 0 : index
    %c0_15 = arith.constant 0 : index
    %c0_16 = arith.constant 0 : index
    %30 = vector.load %arg10[%c0_14, %c0_15, %c0_16] : memref<3x1x64xf32, #tpu.memory_space<vmem>>, vector<1x1x64xf32>
    %31 = vector.shape_cast %30 : vector<1x1x64xf32> to vector<1x64xf32>
    %32 = vector.broadcast %28 : vector<32x1xf32> to vector<32x64xf32>
    %33 = vector.broadcast %31 : vector<1x64xf32> to vector<32x64xf32>
    %34 = arith.mulf %32, %33 : vector<32x64xf32>
    %c0_17 = arith.constant 0 : index
    %c0_18 = arith.constant 0 : index
    %c0_19 = arith.constant 0 : index
    %35 = vector.load %arg11[%c0_17, %c0_18, %c0_19] : memref<3x1x64xf32, #tpu.memory_space<vmem>>, vector<1x1x64xf32>
    %36 = vector.shape_cast %35 : vector<1x1x64xf32> to vector<1x64xf32>
    %37 = vector.broadcast %36 : vector<1x64xf32> to vector<32x64xf32>
    %38 = arith.addf %34, %37 : vector<32x64xf32>
    %39 = tpu.concatenate %29, %38 in 1 : vector<32x64xf32>, vector<32x64xf32> -> vector<32x128xf32>
    %40 = arith.truncf %39 : vector<32x128xf32> to vector<32x128xbf16>
    %c0_20 = arith.constant 0 : index
    %c0_21 = arith.constant 0 : index
    %c0_22 = arith.constant 0 : index
    %41 = vector.load %arg12[%c0_20, %c0_21, %c0_22] : memref<3x128x64xbf16, #tpu.memory_space<vmem>>, vector<1x128x64xbf16>
    %42 = vector.shape_cast %41 : vector<1x128x64xbf16> to vector<128x64xbf16>
    %cst_23 = arith.constant dense<0.000000e+00> : vector<32x64xf32>
    %43 = tpu.matmul %40, %42, %cst_23 {dimension_numbers = #tpu.dot_dimension_numbers<[1], [0], [0], [1], [0, 0, 1, 1], [], []>} : vector<32x128xbf16>, vector<128x64xbf16>, vector<32x64xf32> -> vector<32x64xf32>
    %c0_24 = arith.constant 0 : index
    %c0_25 = arith.constant 0 : index
    %c0_26 = arith.constant 0 : index
    %44 = vector.load %arg13[%c0_24, %c0_25, %c0_26] : memref<3x1x64xf32, #tpu.memory_space<vmem>>, vector<1x1x64xf32>
    %45 = vector.shape_cast %44 : vector<1x1x64xf32> to vector<1x64xf32>
    %46 = vector.broadcast %45 : vector<1x64xf32> to vector<32x64xf32>
    %47 = arith.addf %43, %46 : vector<32x64xf32>
    %48 = arith.negf %47 : vector<32x64xf32>
    %49 = math.exp %48 : vector<32x64xf32>
    %cst_27 = arith.constant 1.000000e+00 : f32
    %50 = vector.broadcast %cst_27 : f32 to vector<32x64xf32>
    %51 = arith.addf %50, %49 : vector<32x64xf32>
    %52 = arith.divf %50, %51 : vector<32x64xf32>
    %53 = arith.mulf %52, %29 : vector<32x64xf32>
    %54 = arith.truncf %53 : vector<32x64xf32> to vector<32x64xbf16>
    %cst_28 = arith.constant dense<0.000000e+00> : vector<16x64xf32>
    %55 = tpu.matmul %13, %54, %cst_28 {dimension_numbers = #tpu.dot_dimension_numbers<[1], [0], [0], [1], [0, 0, 1, 1], [], []>} : vector<16x32xbf16>, vector<32x64xbf16>, vector<16x64xf32> -> vector<16x64xf32>
    %c0_29 = arith.constant 0 : index
    %c0_30 = arith.constant 0 : index
    %c0_31 = arith.constant 0 : index
    %56 = vector.load %arg8[%c0_29, %c0_30, %c0_31] : memref<3x64x64xbf16, #tpu.memory_space<vmem>>, vector<1x64x64xbf16>
    %57 = vector.shape_cast %56 : vector<1x64x64xbf16> to vector<64x64xbf16>
    %cst_32 = arith.constant dense<0.000000e+00> : vector<16x64xf32>
    %58 = tpu.matmul %27, %57, %cst_32 {dimension_numbers = #tpu.dot_dimension_numbers<[1], [0], [0], [1], [0, 0, 1, 1], [], []>} : vector<16x64xbf16>, vector<64x64xbf16>, vector<16x64xf32> -> vector<16x64xf32>
    %c0_33 = arith.constant 0 : index
    %c0_34 = arith.constant 0 : index
    %c0_35 = arith.constant 0 : index
    %59 = vector.load %arg9[%c0_33, %c0_34, %c0_35] : memref<3x1x64xf32, #tpu.memory_space<vmem>>, vector<1x1x64xf32>
    %60 = vector.shape_cast %59 : vector<1x1x64xf32> to vector<1x64xf32>
    %61 = vector.broadcast %60 : vector<1x64xf32> to vector<16x64xf32>
    %62 = arith.addf %58, %61 : vector<16x64xf32>
    %63 = arith.addf %62, %55 : vector<16x64xf32>
    %cst_36 = arith.constant 0.999994993 : f32
    %64 = vector.broadcast %cst_36 : f32 to vector<16x64xf32>
    %65 = arith.mulf %63, %64 : vector<16x64xf32>
    %cst_37 = arith.constant 0.000000e+00 : f32
    %66 = vector.broadcast %cst_37 : f32 to vector<16x64xf32>
    %67 = arith.maximumf %65, %66 : vector<16x64xf32>
    %68 = arith.truncf %67 : vector<16x64xf32> to vector<16x64xbf16>
    %cst_38 = arith.constant dense<0.000000e+00> : vector<32x64xf32>
    %69 = tpu.matmul %6, %68, %cst_38 {dimension_numbers = #tpu.dot_dimension_numbers<[1], [0], [0], [1], [0, 0, 1, 1], [], []>} : vector<32x16xbf16>, vector<16x64xbf16>, vector<32x64xf32> -> vector<32x64xf32>
    %c1 = arith.constant 1 : index
    %c0_39 = arith.constant 0 : index
    %c0_40 = arith.constant 0 : index
    %70 = vector.load %arg10[%c1, %c0_39, %c0_40] : memref<3x1x64xf32, #tpu.memory_space<vmem>>, vector<1x1x64xf32>
    %71 = vector.shape_cast %70 : vector<1x1x64xf32> to vector<1x64xf32>
    %72 = vector.broadcast %28 : vector<32x1xf32> to vector<32x64xf32>
    %73 = vector.broadcast %71 : vector<1x64xf32> to vector<32x64xf32>
    %74 = arith.mulf %72, %73 : vector<32x64xf32>
    %c1_41 = arith.constant 1 : index
    %c0_42 = arith.constant 0 : index
    %c0_43 = arith.constant 0 : index
    %75 = vector.load %arg11[%c1_41, %c0_42, %c0_43] : memref<3x1x64xf32, #tpu.memory_space<vmem>>, vector<1x1x64xf32>
    %76 = vector.shape_cast %75 : vector<1x1x64xf32> to vector<1x64xf32>
    %77 = vector.broadcast %76 : vector<1x64xf32> to vector<32x64xf32>
    %78 = arith.addf %74, %77 : vector<32x64xf32>
    %79 = tpu.concatenate %69, %78 in 1 : vector<32x64xf32>, vector<32x64xf32> -> vector<32x128xf32>
    %80 = arith.truncf %79 : vector<32x128xf32> to vector<32x128xbf16>
    %c1_44 = arith.constant 1 : index
    %c0_45 = arith.constant 0 : index
    %c0_46 = arith.constant 0 : index
    %81 = vector.load %arg12[%c1_44, %c0_45, %c0_46] : memref<3x128x64xbf16, #tpu.memory_space<vmem>>, vector<1x128x64xbf16>
    %82 = vector.shape_cast %81 : vector<1x128x64xbf16> to vector<128x64xbf16>
    %cst_47 = arith.constant dense<0.000000e+00> : vector<32x64xf32>
    %83 = tpu.matmul %80, %82, %cst_47 {dimension_numbers = #tpu.dot_dimension_numbers<[1], [0], [0], [1], [0, 0, 1, 1], [], []>} : vector<32x128xbf16>, vector<128x64xbf16>, vector<32x64xf32> -> vector<32x64xf32>
    %c1_48 = arith.constant 1 : index
    %c0_49 = arith.constant 0 : index
    %c0_50 = arith.constant 0 : index
    %84 = vector.load %arg13[%c1_48, %c0_49, %c0_50] : memref<3x1x64xf32, #tpu.memory_space<vmem>>, vector<1x1x64xf32>
    %85 = vector.shape_cast %84 : vector<1x1x64xf32> to vector<1x64xf32>
    %86 = vector.broadcast %85 : vector<1x64xf32> to vector<32x64xf32>
    %87 = arith.addf %83, %86 : vector<32x64xf32>
    %88 = arith.negf %87 : vector<32x64xf32>
    %89 = math.exp %88 : vector<32x64xf32>
    %cst_51 = arith.constant 1.000000e+00 : f32
    %90 = vector.broadcast %cst_51 : f32 to vector<32x64xf32>
    %91 = arith.addf %90, %89 : vector<32x64xf32>
    %92 = arith.divf %90, %91 : vector<32x64xf32>
    %93 = arith.mulf %92, %69 : vector<32x64xf32>
    %94 = arith.truncf %93 : vector<32x64xf32> to vector<32x64xbf16>
    %cst_52 = arith.constant dense<0.000000e+00> : vector<16x64xf32>
    %95 = tpu.matmul %13, %94, %cst_52 {dimension_numbers = #tpu.dot_dimension_numbers<[1], [0], [0], [1], [0, 0, 1, 1], [], []>} : vector<16x32xbf16>, vector<32x64xbf16>, vector<16x64xf32> -> vector<16x64xf32>
    %c1_53 = arith.constant 1 : index
    %c0_54 = arith.constant 0 : index
    %c0_55 = arith.constant 0 : index
    %96 = vector.load %arg8[%c1_53, %c0_54, %c0_55] : memref<3x64x64xbf16, #tpu.memory_space<vmem>>, vector<1x64x64xbf16>
    %97 = vector.shape_cast %96 : vector<1x64x64xbf16> to vector<64x64xbf16>
    %cst_56 = arith.constant dense<0.000000e+00> : vector<16x64xf32>
    %98 = tpu.matmul %68, %97, %cst_56 {dimension_numbers = #tpu.dot_dimension_numbers<[1], [0], [0], [1], [0, 0, 1, 1], [], []>} : vector<16x64xbf16>, vector<64x64xbf16>, vector<16x64xf32> -> vector<16x64xf32>
    %c1_57 = arith.constant 1 : index
    %c0_58 = arith.constant 0 : index
    %c0_59 = arith.constant 0 : index
    %99 = vector.load %arg9[%c1_57, %c0_58, %c0_59] : memref<3x1x64xf32, #tpu.memory_space<vmem>>, vector<1x1x64xf32>
    %100 = vector.shape_cast %99 : vector<1x1x64xf32> to vector<1x64xf32>
    %101 = vector.broadcast %100 : vector<1x64xf32> to vector<16x64xf32>
    %102 = arith.addf %98, %101 : vector<16x64xf32>
    %103 = arith.addf %102, %95 : vector<16x64xf32>
    %cst_60 = arith.constant 0.999994993 : f32
    %104 = vector.broadcast %cst_60 : f32 to vector<16x64xf32>
    %105 = arith.mulf %103, %104 : vector<16x64xf32>
    %cst_61 = arith.constant 0.000000e+00 : f32
    %106 = vector.broadcast %cst_61 : f32 to vector<16x64xf32>
    %107 = arith.maximumf %105, %106 : vector<16x64xf32>
    %108 = arith.truncf %107 : vector<16x64xf32> to vector<16x64xbf16>
    %cst_62 = arith.constant dense<0.000000e+00> : vector<32x64xf32>
    %109 = tpu.matmul %6, %108, %cst_62 {dimension_numbers = #tpu.dot_dimension_numbers<[1], [0], [0], [1], [0, 0, 1, 1], [], []>} : vector<32x16xbf16>, vector<16x64xbf16>, vector<32x64xf32> -> vector<32x64xf32>
    %c2 = arith.constant 2 : index
    %c0_63 = arith.constant 0 : index
    %c0_64 = arith.constant 0 : index
    %110 = vector.load %arg10[%c2, %c0_63, %c0_64] : memref<3x1x64xf32, #tpu.memory_space<vmem>>, vector<1x1x64xf32>
    %111 = vector.shape_cast %110 : vector<1x1x64xf32> to vector<1x64xf32>
    %112 = vector.broadcast %28 : vector<32x1xf32> to vector<32x64xf32>
    %113 = vector.broadcast %111 : vector<1x64xf32> to vector<32x64xf32>
    %114 = arith.mulf %112, %113 : vector<32x64xf32>
    %c2_65 = arith.constant 2 : index
    %c0_66 = arith.constant 0 : index
    %c0_67 = arith.constant 0 : index
    %115 = vector.load %arg11[%c2_65, %c0_66, %c0_67] : memref<3x1x64xf32, #tpu.memory_space<vmem>>, vector<1x1x64xf32>
    %116 = vector.shape_cast %115 : vector<1x1x64xf32> to vector<1x64xf32>
    %117 = vector.broadcast %116 : vector<1x64xf32> to vector<32x64xf32>
    %118 = arith.addf %114, %117 : vector<32x64xf32>
    %119 = tpu.concatenate %109, %118 in 1 : vector<32x64xf32>, vector<32x64xf32> -> vector<32x128xf32>
    %120 = arith.truncf %119 : vector<32x128xf32> to vector<32x128xbf16>
    %c2_68 = arith.constant 2 : index
    %c0_69 = arith.constant 0 : index
    %c0_70 = arith.constant 0 : index
    %121 = vector.load %arg12[%c2_68, %c0_69, %c0_70] : memref<3x128x64xbf16, #tpu.memory_space<vmem>>, vector<1x128x64xbf16>
    %122 = vector.shape_cast %121 : vector<1x128x64xbf16> to vector<128x64xbf16>
    %cst_71 = arith.constant dense<0.000000e+00> : vector<32x64xf32>
    %123 = tpu.matmul %120, %122, %cst_71 {dimension_numbers = #tpu.dot_dimension_numbers<[1], [0], [0], [1], [0, 0, 1, 1], [], []>} : vector<32x128xbf16>, vector<128x64xbf16>, vector<32x64xf32> -> vector<32x64xf32>
    %c2_72 = arith.constant 2 : index
    %c0_73 = arith.constant 0 : index
    %c0_74 = arith.constant 0 : index
    %124 = vector.load %arg13[%c2_72, %c0_73, %c0_74] : memref<3x1x64xf32, #tpu.memory_space<vmem>>, vector<1x1x64xf32>
    %125 = vector.shape_cast %124 : vector<1x1x64xf32> to vector<1x64xf32>
    %126 = vector.broadcast %125 : vector<1x64xf32> to vector<32x64xf32>
    %127 = arith.addf %123, %126 : vector<32x64xf32>
    %128 = arith.negf %127 : vector<32x64xf32>
    %129 = math.exp %128 : vector<32x64xf32>
    %cst_75 = arith.constant 1.000000e+00 : f32
    %130 = vector.broadcast %cst_75 : f32 to vector<32x64xf32>
    %131 = arith.addf %130, %129 : vector<32x64xf32>
    %132 = arith.divf %130, %131 : vector<32x64xf32>
    %133 = arith.mulf %132, %109 : vector<32x64xf32>
    %134 = arith.truncf %133 : vector<32x64xf32> to vector<32x64xbf16>
    %cst_76 = arith.constant dense<0.000000e+00> : vector<16x64xf32>
    %135 = tpu.matmul %13, %134, %cst_76 {dimension_numbers = #tpu.dot_dimension_numbers<[1], [0], [0], [1], [0, 0, 1, 1], [], []>} : vector<16x32xbf16>, vector<32x64xbf16>, vector<16x64xf32> -> vector<16x64xf32>
    %c2_77 = arith.constant 2 : index
    %c0_78 = arith.constant 0 : index
    %c0_79 = arith.constant 0 : index
    %136 = vector.load %arg8[%c2_77, %c0_78, %c0_79] : memref<3x64x64xbf16, #tpu.memory_space<vmem>>, vector<1x64x64xbf16>
    %137 = vector.shape_cast %136 : vector<1x64x64xbf16> to vector<64x64xbf16>
    %cst_80 = arith.constant dense<0.000000e+00> : vector<16x64xf32>
    %138 = tpu.matmul %108, %137, %cst_80 {dimension_numbers = #tpu.dot_dimension_numbers<[1], [0], [0], [1], [0, 0, 1, 1], [], []>} : vector<16x64xbf16>, vector<64x64xbf16>, vector<16x64xf32> -> vector<16x64xf32>
    %c2_81 = arith.constant 2 : index
    %c0_82 = arith.constant 0 : index
    %c0_83 = arith.constant 0 : index
    %139 = vector.load %arg9[%c2_81, %c0_82, %c0_83] : memref<3x1x64xf32, #tpu.memory_space<vmem>>, vector<1x1x64xf32>
    %140 = vector.shape_cast %139 : vector<1x1x64xf32> to vector<1x64xf32>
    %141 = vector.broadcast %140 : vector<1x64xf32> to vector<16x64xf32>
    %142 = arith.addf %138, %141 : vector<16x64xf32>
    %143 = arith.addf %142, %135 : vector<16x64xf32>
    %cst_84 = arith.constant 0.999994993 : f32
    %144 = vector.broadcast %cst_84 : f32 to vector<16x64xf32>
    %145 = arith.mulf %143, %144 : vector<16x64xf32>
    %cst_85 = arith.constant 0.000000e+00 : f32
    %146 = vector.broadcast %cst_85 : f32 to vector<16x64xf32>
    %147 = arith.maximumf %145, %146 : vector<16x64xf32>
    %148 = arith.truncf %147 : vector<16x64xf32> to vector<16x64xbf16>
    %149 = arith.truncf %19 : vector<2x16xf32> to vector<2x16xbf16>
    %cst_86 = arith.constant dense<0.000000e+00> : vector<2x64xf32>
    %150 = tpu.matmul %149, %148, %cst_86 {dimension_numbers = #tpu.dot_dimension_numbers<[1], [0], [0], [1], [0, 0, 1, 1], [], []>} : vector<2x16xbf16>, vector<16x64xbf16>, vector<2x64xf32> -> vector<2x64xf32>
    %cst_87 = arith.constant dense<0.000000e+00> : vector<2xf32>
    %151 = vector.multi_reduction <add>, %19, %cst_87 [1] : vector<2x16xf32> to vector<2xf32>
    %152 = vector.shape_cast %151 : vector<2xf32> to vector<2x1xf32>
    %cst_88 = arith.constant 1.000000e+00 : f32
    %153 = vector.broadcast %cst_88 : f32 to vector<2x1xf32>
    %154 = arith.maximumf %152, %153 : vector<2x1xf32>
    %155 = vector.broadcast %154 : vector<2x1xf32> to vector<2x64xf32>
    %156 = arith.divf %150, %155 : vector<2x64xf32>
    %c0_89 = arith.constant 0 : index
    %c0_90 = arith.constant 0 : index
    %157 = vector.load %arg14[%c0_89, %c0_90] : memref<64x128xbf16, #tpu.memory_space<vmem>>, vector<64x128xbf16>
    %158 = arith.truncf %156 : vector<2x64xf32> to vector<2x64xbf16>
    %cst_91 = arith.constant dense<0.000000e+00> : vector<2x128xf32>
    %159 = tpu.matmul %158, %157, %cst_91 {dimension_numbers = #tpu.dot_dimension_numbers<[1], [0], [0], [1], [0, 0, 1, 1], [], []>} : vector<2x64xbf16>, vector<64x128xbf16>, vector<2x128xf32> -> vector<2x128xf32>
    %c0_92 = arith.constant 0 : index
    %c0_93 = arith.constant 0 : index
    %160 = vector.load %arg15[%c0_92, %c0_93] : memref<1x128xf32, #tpu.memory_space<vmem>>, vector<1x128xf32>
    %161 = vector.broadcast %160 : vector<1x128xf32> to vector<2x128xf32>
    %162 = arith.addf %159, %161 : vector<2x128xf32>
    %cst_94 = arith.constant 0.000000e+00 : f32
    %163 = vector.broadcast %cst_94 : f32 to vector<2x128xf32>
    %164 = arith.maximumf %162, %163 : vector<2x128xf32>
    %c0_95 = arith.constant 0 : index
    %c0_96 = arith.constant 0 : index
    %165 = vector.load %arg5[%c0_95, %c0_96] : memref<2x3200xf32, #tpu.memory_space<vmem>>, vector<2x3200xf32>
    %c0_97 = arith.constant 0 : index
    %c0_98 = arith.constant 0 : index
    %166 = vector.load %arg16[%c0_97, %c0_98] : memref<3200x512xbf16, #tpu.memory_space<vmem>>, vector<3200x512xbf16>
    %167 = arith.truncf %165 : vector<2x3200xf32> to vector<2x3200xbf16>
    %cst_99 = arith.constant dense<0.000000e+00> : vector<2x512xf32>
    %168 = tpu.matmul %167, %166, %cst_99 {dimension_numbers = #tpu.dot_dimension_numbers<[1], [0], [0], [1], [0, 0, 1, 1], [], []>} : vector<2x3200xbf16>, vector<3200x512xbf16>, vector<2x512xf32> -> vector<2x512xf32>
    %c0_100 = arith.constant 0 : index
    %c0_101 = arith.constant 0 : index
    %169 = vector.load %arg17[%c0_100, %c0_101] : memref<1x512xf32, #tpu.memory_space<vmem>>, vector<1x512xf32>
    %170 = vector.broadcast %169 : vector<1x512xf32> to vector<2x512xf32>
    %171 = arith.addf %168, %170 : vector<2x512xf32>
    %cst_102 = arith.constant 0.000000e+00 : f32
    %172 = vector.broadcast %cst_102 : f32 to vector<2x512xf32>
    %173 = arith.maximumf %171, %172 : vector<2x512xf32>
    %c0_103 = arith.constant 0 : index
    %c0_104 = arith.constant 0 : index
    %174 = vector.load %arg18[%c0_103, %c0_104] : memref<512x128xbf16, #tpu.memory_space<vmem>>, vector<512x128xbf16>
    %175 = arith.truncf %173 : vector<2x512xf32> to vector<2x512xbf16>
    %cst_105 = arith.constant dense<0.000000e+00> : vector<2x128xf32>
    %176 = tpu.matmul %175, %174, %cst_105 {dimension_numbers = #tpu.dot_dimension_numbers<[1], [0], [0], [1], [0, 0, 1, 1], [], []>} : vector<2x512xbf16>, vector<512x128xbf16>, vector<2x128xf32> -> vector<2x128xf32>
    %c0_106 = arith.constant 0 : index
    %c0_107 = arith.constant 0 : index
    %177 = vector.load %arg19[%c0_106, %c0_107] : memref<1x128xf32, #tpu.memory_space<vmem>>, vector<1x128xf32>
    %178 = vector.broadcast %177 : vector<1x128xf32> to vector<2x128xf32>
    %179 = arith.addf %176, %178 : vector<2x128xf32>
    %cst_108 = arith.constant 0.000000e+00 : f32
    %180 = vector.broadcast %cst_108 : f32 to vector<2x128xf32>
    %181 = arith.maximumf %179, %180 : vector<2x128xf32>
    %c0_109 = arith.constant 0 : index
    %c0_110 = arith.constant 0 : index
    %182 = vector.load %arg20[%c0_109, %c0_110] : memref<128x64xbf16, #tpu.memory_space<vmem>>, vector<128x64xbf16>
    %183 = arith.truncf %181 : vector<2x128xf32> to vector<2x128xbf16>
    %cst_111 = arith.constant dense<0.000000e+00> : vector<2x64xf32>
    %184 = tpu.matmul %183, %182, %cst_111 {dimension_numbers = #tpu.dot_dimension_numbers<[1], [0], [0], [1], [0, 0, 1, 1], [], []>} : vector<2x128xbf16>, vector<128x64xbf16>, vector<2x64xf32> -> vector<2x64xf32>
    %c0_112 = arith.constant 0 : index
    %c0_113 = arith.constant 0 : index
    %185 = vector.load %arg21[%c0_112, %c0_113] : memref<1x64xf32, #tpu.memory_space<vmem>>, vector<1x64xf32>
    %186 = vector.broadcast %185 : vector<1x64xf32> to vector<2x64xf32>
    %187 = arith.addf %184, %186 : vector<2x64xf32>
    %c0_114 = arith.constant 0 : index
    %c0_115 = arith.constant 0 : index
    %188 = vector.load %arg22[%c0_114, %c0_115] : memref<128x128xbf16, #tpu.memory_space<vmem>>, vector<128x128xbf16>
    %189 = arith.truncf %164 : vector<2x128xf32> to vector<2x128xbf16>
    %cst_116 = arith.constant dense<0.000000e+00> : vector<2x128xf32>
    %190 = tpu.matmul %189, %188, %cst_116 {dimension_numbers = #tpu.dot_dimension_numbers<[1], [0], [0], [1], [0, 0, 1, 1], [], []>} : vector<2x128xbf16>, vector<128x128xbf16>, vector<2x128xf32> -> vector<2x128xf32>
    %c0_117 = arith.constant 0 : index
    %c0_118 = arith.constant 0 : index
    %191 = vector.load %arg23[%c0_117, %c0_118] : memref<64x128xbf16, #tpu.memory_space<vmem>>, vector<64x128xbf16>
    %192 = arith.truncf %187 : vector<2x64xf32> to vector<2x64xbf16>
    %cst_119 = arith.constant dense<0.000000e+00> : vector<2x128xf32>
    %193 = tpu.matmul %192, %191, %cst_119 {dimension_numbers = #tpu.dot_dimension_numbers<[1], [0], [0], [1], [0, 0, 1, 1], [], []>} : vector<2x64xbf16>, vector<64x128xbf16>, vector<2x128xf32> -> vector<2x128xf32>
    %194 = arith.addf %190, %193 : vector<2x128xf32>
    %c0_120 = arith.constant 0 : index
    %c0_121 = arith.constant 0 : index
    %195 = vector.load %arg24[%c0_120, %c0_121] : memref<1x128xf32, #tpu.memory_space<vmem>>, vector<1x128xf32>
    %196 = vector.broadcast %195 : vector<1x128xf32> to vector<2x128xf32>
    %197 = arith.addf %194, %196 : vector<2x128xf32>
    %cst_122 = arith.constant 0.000000e+00 : f32
    %198 = vector.broadcast %cst_122 : f32 to vector<2x128xf32>
    %199 = arith.maximumf %197, %198 : vector<2x128xf32>
    %c0_123 = arith.constant 0 : index
    %c0_124 = arith.constant 0 : index
    %200 = vector.load %arg25[%c0_123, %c0_124] : memref<128x64xbf16, #tpu.memory_space<vmem>>, vector<128x64xbf16>
    %201 = arith.truncf %199 : vector<2x128xf32> to vector<2x128xbf16>
    %cst_125 = arith.constant dense<0.000000e+00> : vector<2x64xf32>
    %202 = tpu.matmul %201, %200, %cst_125 {dimension_numbers = #tpu.dot_dimension_numbers<[1], [0], [0], [1], [0, 0, 1, 1], [], []>} : vector<2x128xbf16>, vector<128x64xbf16>, vector<2x64xf32> -> vector<2x64xf32>
    %c0_126 = arith.constant 0 : index
    %c0_127 = arith.constant 0 : index
    %203 = vector.load %arg26[%c0_126, %c0_127] : memref<1x64xf32, #tpu.memory_space<vmem>>, vector<1x64xf32>
    %204 = vector.broadcast %203 : vector<1x64xf32> to vector<2x64xf32>
    %205 = arith.addf %202, %204 : vector<2x64xf32>
    %cst_128 = arith.constant 0.000000e+00 : f32
    %206 = vector.broadcast %cst_128 : f32 to vector<2x64xf32>
    %207 = arith.maximumf %205, %206 : vector<2x64xf32>
    %c0_129 = arith.constant 0 : index
    %c0_130 = arith.constant 0 : index
    %208 = vector.load %arg27[%c0_129, %c0_130] : memref<64x128xbf16, #tpu.memory_space<vmem>>, vector<64x128xbf16>
    %209 = arith.truncf %207 : vector<2x64xf32> to vector<2x64xbf16>
    %cst_131 = arith.constant dense<0.000000e+00> : vector<2x128xf32>
    %210 = tpu.matmul %209, %208, %cst_131 {dimension_numbers = #tpu.dot_dimension_numbers<[1], [0], [0], [1], [0, 0, 1, 1], [], []>} : vector<2x64xbf16>, vector<64x128xbf16>, vector<2x128xf32> -> vector<2x128xf32>
    %c0_132 = arith.constant 0 : index
    %c0_133 = arith.constant 0 : index
    %211 = vector.load %arg28[%c0_132, %c0_133] : memref<1x128xf32, #tpu.memory_space<vmem>>, vector<1x128xf32>
    %212 = vector.broadcast %211 : vector<1x128xf32> to vector<2x128xf32>
    %213 = arith.addf %210, %212 : vector<2x128xf32>
    %c0_134 = arith.constant 0 : index
    %c0_135 = arith.constant 0 : index
    %214 = vector.load %arg29[%c0_134, %c0_135] : memref<2x128xf32, #tpu.memory_space<vmem>>, vector<2x128xf32>
    tpu.vector_store %arg29[%c0_134, %c0_135], %213 {strides = array<i32>} : memref<2x128xf32, #tpu.memory_space<vmem>>, vector<2x128xf32>,
    return
  }
}

</mosaic_0001>

<bundles_post_ra>
// kernel: tpu_custom_call.1
= control target key start
LH: loop header
LB: loop body
LE: loop exit
PB: predicated region body
PF: predicated region fallthrough
CT: control target
= control target key end

     0   :  { %s12221_s6 = smov 1   ;;  %s12222_s10 = smov 2   ;;  %s13070_s0 = inlined_call_operand.smem [shape: u32[30], index: -1, kind: input, shape index: {}] }
   0x1   :  { %s12294_s5 = sld [smem:[%s13070_s0]]   ;;  %s12223_s14 = smov 3  }
   0x2   :  { %s12299_s9 = sld [smem:[%s13070_s0 + %s12221_s6]]   ;;  %s12224_s18 = smov 4  }
   0x3   :  { %s12304_s13 = sld [smem:[%s13070_s0 + %s12222_s10]]   ;;  %s12225_s22 = smov 5  }
   0x4   :  { %s12309_s17 = sld [smem:[%s13070_s0 + %s12223_s14]]   ;;  %s12226_s26 = smov 6  }
   0x5   :  { %s12314_s21 = sld [smem:[%s13070_s0 + %s12224_s18]]   ;;  %s12227_s30 = smov 7  }
   0x6   :  { %s12319_s25 = sld [smem:[%s13070_s0 + %s12225_s22]]   ;;  %s12228_s4 = smov 8  }
   0x7   :  { %13077 = sst [smem:[#allocation52_spill]] %s12294_s5  ;;  %s12229_s10 = smov 9  }
   0x8   :  { %s12324_s29 = sld [smem:[%s13070_s0 + %s12226_s26]]   ;;  %s12230_s15 = smov 10  }
   0x9   :  { %s12329_s3 = sld [smem:[%s13070_s0 + %s12227_s30]]   ;;  %s12231_s20 = smov 11  }
   0xa   :  { %s12334_s8 = sld [smem:[%s13070_s0 + %s12228_s4]]   ;;  %s12232_s26 = smov 12  }
   0xb   :  { %13078 = sst [smem:[#allocation53_spill]] %s12314_s21  ;;  %s12233_s1 = smov 13  }
   0xc   :  { %s12339_s14 = sld [smem:[%s13070_s0 + %s12229_s10]]   ;;  %s12234_s7 = smov 14  }
   0xd   :  { %s12344_s19 = sld [smem:[%s13070_s0 + %s12230_s15]]   ;;  %s12235_s15 = smov 15  }
   0xe   :  { %13079 = sst [smem:[#allocation54_spill]] %s12324_s29  ;;  %s12236_s22 = smov 16  }
   0xf   :  { %s12349_s24 = sld [smem:[%s13070_s0 + %s12231_s20]]   ;;  %s12237_s28 = smov 17  }
  0x10   :  { %s12354_s30 = sld [smem:[%s13070_s0 + %s12232_s26]]  }
  0x11   :  { %s12359_s6 = sld [smem:[%s13070_s0 + %s12233_s1]]  }
  0x12   :  { %s12364_s12 = sld [smem:[%s13070_s0 + %s12234_s7]]   ;;  %s12238_s7 = smov 18  }
  0x13   :  { %s12369_s20 = sld [smem:[%s13070_s0 + %s12235_s15]]   ;;  %s12239_s15 = smov 19  }
  0x14   :  { %s12374_s27 = sld [smem:[%s13070_s0 + %s12236_s22]]   ;;  %s12240_s22 = smov 20  }
  0x15   :  { %13080 = sst [smem:[#allocation55_spill]] %s12349_s24 }
  0x16   :  { %13081 = sst [smem:[#allocation56_spill]] %s12354_s30 }
  0x17   :  { %s12379_s4 = sld [smem:[%s13070_s0 + %s12237_s28]]   ;;  %s12241_s28 = smov 21  }
  0x18   :  { %13082 = sst [smem:[#allocation57_spill]] %s12364_s12 }
  0x19   :  { %s12384_s30 = sld [smem:[%s13070_s0 + %s12238_s7]]   ;;  %s12242_s7 = smov 22  }
  0x1a   :  { %13083 = sst [smem:[#allocation58_spill]] %s12374_s27 }
  0x1b   :  { %s12389_s21 = sld [smem:[%s13070_s0 + %s12239_s15]]   ;;  %s12243_s15 = smov 23  }
  0x1c   :  { %s12394_s5 = sld [smem:[%s13070_s0 + %s12240_s22]]   ;;  %s12244_s22 = smov 24  }
  0x1d   :  { %s12399_s29 = sld [smem:[%s13070_s0 + %s12241_s28]]   ;;  %s12245_s28 = smov 25  }
  0x1e   :  { %s12409_s27 = sld [smem:[%s13070_s0 + %s12243_s15]]   ;;  %s12247_s15 = smov 27  }
  0x1f   :  { %13084 = sst [smem:[#allocation59_spill]] %s12384_s30 }
  0x20   :  { %s12404_s30 = sld [smem:[%s13070_s0 + %s12242_s7]]   ;;  %s12246_s7 = smov 26  }
  0x21   :  { %s12424_s12 = sld [smem:[%s13070_s0 + %s12246_s7]]  }
  0x22   :  { %13085 = sst [smem:[#allocation60_spill]] %s12394_s5 }
  0x23   :  { %13086 = sst [smem:[#allocation61_spill]] %s12399_s29 }
  0x24   :  { %13087 = sst [smem:[#allocation62_spill]] %s12409_s27 }
  0x25   :  { %s12414_s5 = sld [smem:[%s13070_s0 + %s12244_s22]]   ;;  %s12248_s22 = smov 28  }
  0x26   :  { %s12419_s29 = sld [smem:[%s13070_s0 + %s12245_s28]]   ;;  %s12249_s28 = smov 29  }
  0x27   :  { %s12429_s27 = sld [smem:[%s13070_s0 + %s12247_s15]]  }
  0x28   :  { %s12434_s24 = sld [smem:[%s13070_s0 + %s12248_s22]]  }
  0x2c   :  { %13088 = sst [smem:[#allocation63_spill]] %s12419_s29 }
  0x2d   :  { %s12439_s29 = sld [smem:[%s13070_s0 + %s12249_s28]]  }
  0x2e   :  { %64 = vsyncpa [#allocation3], 0 }
  0x2f   :  { %65 = vsyncpa [#allocation6], 0 }
  0x30   :  { %66 = vsyncpa [#allocation9], 0 }
  0x31   :  { %67 = vsyncpa [#allocation12], 0 }
  0x32   :  { %68 = vsyncpa [#allocation15], 0 }
  0x33   :  { %69 = vsyncpa [#allocation18], 0 }
  0x34   :  { %70 = vsyncpa [#allocation21], 0 }
  0x35   :  { %71 = vsyncpa [#allocation24], 0 }
  0x36   :  { %72 = vsyncpa [#allocation27], 0 }
  0x37   :  { %73 = vsyncpa [#allocation30], 0 }
  0x38   :  { %74 = vsyncpa [#allocation33], 0 }
  0x39   :  { %75 = vsyncpa [#allocation36], 0 }
  0x3a   :  { %76 = vsyncpa [#allocation4], 0  ;;  %s12250_s7 = smov [#allocation5]   ;;  %s12251_s11 = smov [#allocation8]  }
  0x3b   :  { %s95_s10 = sshll.u32 %s12250_s7, 4  ;;  %s119_s15 = sshll.u32 %s12251_s11, 4  ;;  %s96_s10 = int_to_ptr.vmem [resolvable:$true] %s95_s10  ;;  %s120_s15 = int_to_ptr.vmem [resolvable:$true] %s119_s15 }
  0x3c   :  { %s11723_s0 = scalar_lea.vmem %s96_s10, 16  ;;  %s11727_s16 = scalar_lea.vmem %s96_s10, 32 }
  0x3d   :  { %p11724_p0 = scmp.ne.s32.totalorder %s96_s10, %s11723_s0  ;;  %p11728_p1 = scmp.lt.s32.totalorder %s96_s10, %s96_s10 }
  0x3e   :  { %p11729_p2 = scmp.lt.s32.totalorder %s11727_s16, %s11723_s0 }
  0x40   :  { %p11730_p3 = por %p11729_p2, %p11728_p1 }
  0x42   :  { %p11731_p4 = pnand %p11730_p3, %p11724_p0 }
  0x44   :  { %11734 = shalt.err (!%p11731_p4)
}
  0x45   :  { %98 = dma.hbm_to_vmem [thread:$0]  %s12304_s13, 16, %s96_s10, [#allocation6]  }
  0x46   :  { %s11743_s18 = scalar_lea.vmem %s120_s15, 800  ;;  %p11748_p6 = scmp.lt.s32.totalorder %s120_s15, %s120_s15 }
  0x47   :  { %p11744_p5 = scmp.ne.s32.totalorder %s120_s15, %s11743_s18  ;;  %p11749_p7 = scmp.lt.s32.totalorder %s11743_s18, %s11743_s18 }
  0x49   :  { %p11750_p8 = por %p11749_p7, %p11748_p6 }
  0x4b   :  { %p11751_p9 = pnand %p11750_p8, %p11744_p5 }
  0x4d   :  { %11754 = shalt.err (!%p11751_p9)
}
  0x4e   :  { %122 = dma.hbm_to_vmem [thread:$0]  %s12319_s25, 800, %s120_s15, [#allocation9]  }
  0x4f   :  { %s12252_s22 = smov [#allocation11]  }
  0x50   :  { %s140_s23 = sshll.u32 %s12252_s22, 4  ;;  %s141_s23 = int_to_ptr.vmem [resolvable:$true] %s140_s23 }
  0x51   :  { %s11763_s26 = scalar_lea.vmem %s141_s23, 1536  ;;  %p11768_p11 = scmp.lt.s32.totalorder %s141_s23, %s141_s23 }
  0x52   :  { %p11764_p10 = scmp.ne.s32.totalorder %s141_s23, %s11763_s26  ;;  %p11769_p12 = scmp.lt.s32.totalorder %s11763_s26, %s11763_s26 }
  0x54   :  { %p11770_p13 = por %p11769_p12, %p11768_p11 }
  0x56   :  { %p11771_p0 = pnand %p11770_p13, %p11764_p10 }
  0x58   :  { %11774 = shalt.err (!%p11771_p0)
}
  0x59   :  { %s12253_s13 = smov 64   ;;  %s12254_s28 = smov 4  }
  0x5a   :  { %146 = dma.hbm_to_vmem [thread:$0]  %s12334_s8, 1536, %s141_s23, [#allocation12], %s12253_s13, %s12253_s13, %s12254_s28  }
  0x5b   :  { %s12255_s1 = smov [#allocation14]   ;;  %s12256_s25 = smov [#allocation17]  }
  0x5c   :  { %s164_s2 = sshll.u32 %s12255_s1, 4  ;;  %s190_s7 = sshll.u32 %s12256_s25, 4  ;;  %s165_s2 = int_to_ptr.vmem [resolvable:$true] %s164_s2  ;;  %s191_s7 = int_to_ptr.vmem [resolvable:$true] %s190_s7 }
  0x5d   :  { %s11783_s10 = scalar_lea.vmem %s165_s2, 48  ;;  %s11787_s11 = scalar_lea.vmem %s165_s2, 64 }
  0x5e   :  { %p11784_p1 = scmp.ne.s32.totalorder %s165_s2, %s11783_s10  ;;  %p11788_p2 = scmp.lt.s32.totalorder %s165_s2, %s165_s2 }
  0x5f   :  { %p11789_p3 = scmp.lt.s32.totalorder %s11787_s11, %s11783_s10 }
  0x61   :  { %p11790_p4 = por %p11789_p3, %p11788_p2 }
  0x63   :  { %p11791_p5 = pnand %p11790_p4, %p11784_p1 }
  0x65   :  { %11794 = shalt.err (!%p11791_p5)
}
  0x66   :  { %s12257_s15 = smov 16   ;;  %s12258_s0 = smov 1  }
  0x67   :  { %170 = dma.hbm_to_vmem [thread:$0]  %s12344_s19, 48, %s165_s2, [#allocation15], %s12257_s15, %s12257_s15, %s12258_s0  }
  0x68   :  { %s11803_s8 = scalar_lea.vmem %s191_s7, 48  ;;  %s11807_s16 = scalar_lea.vmem %s191_s7, 64 }
  0x69   :  { %p11804_p6 = scmp.ne.s32.totalorder %s191_s7, %s11803_s8  ;;  %p11808_p7 = scmp.lt.s32.totalorder %s191_s7, %s191_s7 }
  0x6a   :  { %p11809_p8 = scmp.lt.s32.totalorder %s11807_s16, %s11803_s8 }
  0x6c   :  { %p11810_p9 = por %p11809_p8, %p11808_p7 }
  0x6e   :  { %p11811_p10 = pnand %p11810_p9, %p11804_p6 }
  0x70   :  { %11814 = shalt.err (!%p11811_p10)
}
  0x71   :  { %196 = dma.hbm_to_vmem [thread:$0]  %s12359_s6, 48, %s191_s7, [#allocation18], %s12257_s15, %s12257_s15, %s12258_s0  }
  0x72   :  { %s12259_s18 = smov [#allocation20]   ;;  %s12260_s23 = smov [#allocation23]  }
  0x73   :  { %s215_s22 = sshll.u32 %s12259_s18, 4  ;;  %s237_s26 = sshll.u32 %s12260_s23, 4  ;;  %s216_s22 = int_to_ptr.vmem [resolvable:$true] %s215_s22  ;;  %s238_s26 = int_to_ptr.vmem [resolvable:$true] %s237_s26 }
  0x74   :  { %s11823_s19 = scalar_lea.vmem %s216_s22, 16  ;;  %s11827_s1 = scalar_lea.vmem %s216_s22, 32 }
  0x75   :  { %p11824_p11 = scmp.ne.s32.totalorder %s216_s22, %s11823_s19  ;;  %p11828_p12 = scmp.lt.s32.totalorder %s216_s22, %s216_s22 }
  0x76   :  { %p11829_p13 = scmp.lt.s32.totalorder %s11827_s1, %s11823_s19 }
  0x78   :  { %p11830_p0 = por %p11829_p13, %p11828_p12 }
  0x7a   :  { %p11831_p1 = pnand %p11830_p0, %p11824_p11 }
  0x7c   :  { %11834 = shalt.err (!%p11831_p1)
}
  0x7d   :  { %218 = dma.hbm_to_vmem [thread:$0]  %s12369_s20, 16, %s216_s22, [#allocation21]  }
  0x7e   :  { %s11843_s2 = scalar_lea.vmem %s238_s26, 64  ;;  %p11848_p3 = scmp.lt.s32.totalorder %s238_s26, %s238_s26 }
  0x7f   :  { %p11844_p2 = scmp.ne.s32.totalorder %s238_s26, %s11843_s2  ;;  %p11849_p4 = scmp.lt.s32.totalorder %s11843_s2, %s11843_s2 }
  0x81   :  { %p11850_p5 = por %p11849_p4, %p11848_p3 }
  0x83   :  { %p11851_p6 = pnand %p11850_p5, %p11844_p2 }
  0x85   :  { %11854 = shalt.err (!%p11851_p6)
}
  0x86   :  { %240 = dma.hbm_to_vmem [thread:$0]  %s12379_s4, 64, %s238_s26, [#allocation24]  }
  0x87   :  { %s12261_s6 = smov [#allocation26]   ;;  %s12262_s7 = smov [#allocation29]  }
  0x88   :  { %s259_s25 = sshll.u32 %s12261_s6, 4  ;;  %s280_s10 = sshll.u32 %s12262_s7, 4  ;;  %s260_s25 = int_to_ptr.vmem [resolvable:$true] %s259_s25  ;;  %s281_s10 = int_to_ptr.vmem [resolvable:$true] %s280_s10 }
  0x89   :  { %s11863_s11 = scalar_lea.vmem %s260_s25, 16  ;;  %s11867_s8 = scalar_lea.vmem %s260_s25, 32 }
  0x8a   :  { %p11864_p7 = scmp.ne.s32.totalorder %s260_s25, %s11863_s11  ;;  %p11868_p8 = scmp.lt.s32.totalorder %s260_s25, %s260_s25 }
  0x8b   :  { %p11869_p9 = scmp.lt.s32.totalorder %s11867_s8, %s11863_s11 }
  0x8d   :  { %p11870_p10 = por %p11869_p9, %p11868_p8 }
  0x8f   :  { %p11871_p11 = pnand %p11870_p10, %p11864_p7 }
  0x91   :  { %11874 = shalt.err (!%p11871_p11)
}
  0x92   :  { %262 = dma.hbm_to_vmem [thread:$0]  %s12389_s21, 16, %s260_s25, [#allocation27]  }
  0x93   :  { %s11883_s20 = scalar_lea.vmem %s281_s10, 1024  ;;  %p11888_p13 = scmp.lt.s32.totalorder %s281_s10, %s281_s10 }
  0x94   :  { %p11884_p12 = scmp.ne.s32.totalorder %s281_s10, %s11883_s20  ;;  %p11889_p0 = scmp.lt.s32.totalorder %s11883_s20, %s11883_s20 }
  0x96   :  { %p11890_p1 = por %p11889_p0, %p11888_p13 }
  0x98   :  { %p11891_p2 = pnand %p11890_p1, %p11884_p12 }
  0x9a   :  { %11894 = shalt.err (!%p11891_p2)
}
  0x9b   :  { %286 = dma.hbm_to_vmem [thread:$0]  %s12404_s30, 1024, %s281_s10, [#allocation30], %s12253_s13, %s12253_s13, %s12254_s28  }
  0x9c   :  { %s12263_s4 = smov [#allocation32]   ;;  %s12264_s18 = smov [#allocation35]  }
  0x9d   :  { %s305_s16 = sshll.u32 %s12263_s4, 4  ;;  %s326_s22 = sshll.u32 %s12264_s18, 4  ;;  %s306_s16 = int_to_ptr.vmem [resolvable:$true] %s305_s16  ;;  %s327_s22 = int_to_ptr.vmem [resolvable:$true] %s326_s22 }
  0x9e   :  { %s11903_s23 = scalar_lea.vmem %s306_s16, 16  ;;  %s11907_s21 = scalar_lea.vmem %s306_s16, 32 }
  0x9f   :  { %p11904_p3 = scmp.ne.s32.totalorder %s306_s16, %s11903_s23  ;;  %p11908_p4 = scmp.lt.s32.totalorder %s306_s16, %s306_s16 }
  0xa0   :  { %p11909_p5 = scmp.lt.s32.totalorder %s11907_s21, %s11903_s23 }
  0xa2   :  { %p11910_p6 = por %p11909_p5, %p11908_p4 }
  0xa4   :  { %p11911_p7 = pnand %p11910_p6, %p11904_p3 }
  0xa6   :  { %11914 = shalt.err (!%p11911_p7)
}
  0xa7   :  { %308 = dma.hbm_to_vmem [thread:$0]  %s12414_s5, 16, %s306_s16, [#allocation33]  }
  0xa8   :  { %s11923_s26 = scalar_lea.vmem %s327_s22, 512  ;;  %p11928_p9 = scmp.lt.s32.totalorder %s327_s22, %s327_s22 }
  0xa9   :  { %p11924_p8 = scmp.ne.s32.totalorder %s327_s22, %s11923_s26  ;;  %p11929_p10 = scmp.lt.s32.totalorder %s11923_s26, %s11923_s26 }
  0xab   :  { %p11930_p11 = por %p11929_p10, %p11928_p9 }
  0xad   :  { %p11931_p12 = pnand %p11930_p11, %p11924_p8 }
  0xaf   :  { %11934 = shalt.err (!%p11931_p12)
}
  0xb0   :  { %332 = dma.hbm_to_vmem [thread:$0]  %s12429_s27, 512, %s327_s22, [#allocation36], %s12253_s13, %s12253_s13, %s12254_s28  }
  0xb1   :  { %s12265_s30 = smov [#allocation2]   ;;  %s12266_s1 = smov [#allocation7]  }
  0xb2   :  { %s85_s19 = sshll.u32 %s12265_s30, 4  ;;  %s104_s2 = sshll.u32 %s12266_s1, 4  ;;  %s86_s19 = int_to_ptr.vmem [resolvable:$true] %s85_s19  ;;  %s105_s2 = int_to_ptr.vmem [resolvable:$true] %s104_s2 }
  0xb3   :  { %s11943_s6 = scalar_lea.vmem %s86_s19, 16  ;;  %s11947_s5 = scalar_lea.vmem %s86_s19, 32 }
  0xb4   :  { %p11944_p13 = scmp.ne.s32.totalorder %s86_s19, %s11943_s6  ;;  %p11948_p0 = scmp.lt.s32.totalorder %s86_s19, %s86_s19 }
  0xb5   :  { %p11949_p1 = scmp.lt.s32.totalorder %s11947_s5, %s11943_s6 }
  0xb7   :  { %p11950_p2 = por %p11949_p1, %p11948_p0 }
  0xb9   :  { %p11951_p3 = pnand %p11950_p2, %p11944_p13 }
  0xbb   :  { %11954 = shalt.err (!%p11951_p3)
}
  0xbc   :  { %88 = dma.hbm_to_vmem [thread:$0]  %s12299_s9, 16, %s86_s19, [#allocation3]  }
  0xbd   :  { %s11963_s25 = scalar_lea.vmem %s105_s2, 256  ;;  %p11968_p5 = scmp.lt.s32.totalorder %s105_s2, %s105_s2 }
  0xbe   :  { %p11964_p4 = scmp.ne.s32.totalorder %s105_s2, %s11963_s25  ;;  %p11969_p6 = scmp.lt.s32.totalorder %s11963_s25, %s11963_s25 }
  0xc0   :  { %p11970_p7 = por %p11969_p6, %p11968_p5 }
  0xc2   :  { %p11971_p8 = pnand %p11970_p7, %p11964_p4 }
  0xc4   :  { %11974 = shalt.err (!%p11971_p8)
}
  0xc5   :  { %s12267_s27 = smov 128   ;;  %s12268_s7 = smov 8  }
  0xc6   :  { %110 = dma.hbm_to_vmem [thread:$0]  %s12309_s17, 256, %s105_s2, [#allocation6], %s12267_s27, %s12267_s27, %s12268_s7  }
  0xc7   :  { %s12269_s10 = smov [#allocation10]   ;;  %s12270_s8 = smov [#allocation13]  }
  0xc8   :  { %s131_s11 = sshll.u32 %s12269_s10, 4  ;;  %s152_s20 = sshll.u32 %s12270_s8, 4  ;;  %s132_s11 = int_to_ptr.vmem [resolvable:$true] %s131_s11  ;;  %s153_s20 = int_to_ptr.vmem [resolvable:$true] %s152_s20 }
  0xc9   :  { %s11983_s4 = scalar_lea.vmem %s132_s11, 16  ;;  %s11987_s9 = scalar_lea.vmem %s132_s11, 32 }
  0xca   :  { %p11984_p9 = scmp.ne.s32.totalorder %s132_s11, %s11983_s4  ;;  %p11988_p10 = scmp.lt.s32.totalorder %s132_s11, %s132_s11 }
  0xcb   :  { %p11989_p11 = scmp.lt.s32.totalorder %s11987_s9, %s11983_s4 }
  0xcd   :  { %p11990_p12 = por %p11989_p11, %p11988_p10 }
  0xcf   :  { %p11991_p13 = pnand %p11990_p12, %p11984_p9 }
  0xd1   :  { %11994 = shalt.err (!%p11991_p13)
}
  0xd2   :  { %134 = dma.hbm_to_vmem [thread:$0]  %s12329_s3, 16, %s132_s11, [#allocation9]  }
  0xd3   :  { %s12003_s16 = scalar_lea.vmem %s153_s20, 48  ;;  %s12007_s18 = scalar_lea.vmem %s153_s20, 64 }
  0xd4   :  { %p12004_p0 = scmp.ne.s32.totalorder %s153_s20, %s12003_s16  ;;  %p12008_p1 = scmp.lt.s32.totalorder %s153_s20, %s153_s20 }
  0xd5   :  { %p12009_p2 = scmp.lt.s32.totalorder %s12007_s18, %s12003_s16 }
  0xd7   :  { %p12010_p3 = por %p12009_p2, %p12008_p1 }
  0xd9   :  { %p12011_p4 = pnand %p12010_p3, %p12004_p0 }
  0xdb   :  { %12014 = shalt.err (!%p12011_p4)
}
  0xdc   :  { %158 = dma.hbm_to_vmem [thread:$0]  %s12339_s14, 48, %s153_s20, [#allocation12], %s12257_s15, %s12257_s15, %s12258_s0  }
  0xdd   :  { %s12271_s17 = smov [#allocation16]   ;;  %s12272_s23 = smov [#allocation19]  }
  0xde   :  { %s176_s22 = sshll.u32 %s12271_s17, 4  ;;  %s202_s21 = sshll.u32 %s12272_s23, 4  ;;  %s177_s22 = int_to_ptr.vmem [resolvable:$true] %s176_s22  ;;  %s203_s21 = int_to_ptr.vmem [resolvable:$true] %s202_s21 }
  0xdf   :  { %s12023_s3 = scalar_lea.vmem %s177_s22, 48  ;;  %s12027_s26 = scalar_lea.vmem %s177_s22, 64 }
  0xe0   :  { %p12024_p5 = scmp.ne.s32.totalorder %s177_s22, %s12023_s3  ;;  %p12028_p6 = scmp.lt.s32.totalorder %s177_s22, %s177_s22 }
  0xe1   :  { %p12029_p7 = scmp.lt.s32.totalorder %s12027_s26, %s12023_s3 }
  0xe3   :  { %p12030_p8 = por %p12029_p7, %p12028_p6 }
  0xe5   :  { %p12031_p9 = pnand %p12030_p8, %p12024_p5 }
  0xe7   :  { %12034 = shalt.err (!%p12031_p9)
}
  0xe8   :  { %s13089_s30 = sld [smem:[#allocation55_spill]]  ;;  %s12043_s14 = scalar_lea.vmem %s203_s21, 512 }
  0xe9   :  { %p12044_p10 = scmp.ne.s32.totalorder %s203_s21, %s12043_s14  ;;  %p12048_p11 = scmp.lt.s32.totalorder %s203_s21, %s203_s21 }
  0xea   :  { %p12049_p12 = scmp.lt.s32.totalorder %s12043_s14, %s12043_s14 }
  0xec   :  { %p12050_p13 = por %p12049_p12, %p12048_p11 }
  0xee   :  { %182 = dma.hbm_to_vmem [thread:$0]  %s13089_s30, 48, %s177_s22, [#allocation15], %s12257_s15, %s12257_s15, %s12258_s0  }
  0xef   :  { %p12051_p0 = pnand %p12050_p13, %p12044_p10 }
  0xf1   :  { %12054 = shalt.err (!%p12051_p0)
}
  0xf2   :  { %s13090_s19 = sld [smem:[#allocation57_spill]]  ;;  %s12273_s1 = smov [#allocation22]  }
  0xf3   :  { %s224_s2 = sshll.u32 %s12273_s1, 4  ;;  %s225_s2 = int_to_ptr.vmem [resolvable:$true] %s224_s2 }
  0xf4   :  { %s12063_s6 = scalar_lea.vmem %s225_s2, 102400  ;;  %p12068_p2 = scmp.lt.s32.totalorder %s225_s2, %s225_s2 }
  0xf5   :  { %p12064_p1 = scmp.ne.s32.totalorder %s225_s2, %s12063_s6  ;;  %p12069_p3 = scmp.lt.s32.totalorder %s12063_s6, %s12063_s6 }
  0xf7   :  { %p12070_p4 = por %p12069_p3, %p12068_p2 }
  0xf8   :  { %208 = dma.hbm_to_vmem [thread:$0]  %s13090_s19, 512, %s203_s21, [#allocation18], %s12253_s13, %s12253_s13, %s12254_s28  }
  0xf9   :  { %p12071_p5 = pnand %p12070_p4, %p12064_p1 }
  0xfb   :  { %12074 = shalt.err (!%p12071_p5)
}
  0xfc   :  { %s12274_s0 = smov 256   ;;  %s13091_s5 = sld [smem:[#allocation58_spill]] }
  0xfd   :  { %s12275_s25 = smov [#allocation25]   ;;  %s12276_s7 = smov [#allocation28]  }
  0xfe   :  { %s246_s27 = sshll.u32 %s12275_s25, 4  ;;  %s271_s10 = sshll.u32 %s12276_s7, 4  ;;  %s247_s27 = int_to_ptr.vmem [resolvable:$true] %s246_s27  ;;  %s272_s10 = int_to_ptr.vmem [resolvable:$true] %s271_s10 }
  0xff   :  { %s12083_s11 = scalar_lea.vmem %s247_s27, 4096  ;;  %p12088_p7 = scmp.lt.s32.totalorder %s247_s27, %s247_s27 }
 0x100   :  { %p12084_p6 = scmp.ne.s32.totalorder %s247_s27, %s12083_s11  ;;  %p12089_p8 = scmp.lt.s32.totalorder %s12083_s11, %s12083_s11 }
 0x102   :  { %230 = dma.hbm_to_vmem [thread:$0]  %s13091_s5, 102400, %s225_s2, [#allocation21], %s12274_s0, %s12274_s0, %s12257_s15  }
 0x103   :  { %p12090_p9 = por %p12089_p8, %p12088_p7 }
 0x105   :  { %p12091_p10 = pnand %p12090_p9, %p12084_p6 }
 0x107   :  { %12094 = shalt.err (!%p12091_p10)
}
 0x108   :  { %s13092_s8 = sld [smem:[#allocation59_spill]]  ;;  %s12103_s20 = scalar_lea.vmem %s272_s10, 16 }
 0x109   :  { %p12104_p11 = scmp.ne.s32.totalorder %s272_s10, %s12103_s20  ;;  %s12107_s15 = scalar_lea.vmem %s272_s10, 32 }
 0x10a   :  { %p12108_p12 = scmp.lt.s32.totalorder %s272_s10, %s272_s10  ;;  %p12109_p13 = scmp.lt.s32.totalorder %s12107_s15, %s12103_s20 }
 0x10c   :  { %p12110_p0 = por %p12109_p13, %p12108_p12 }
 0x10e   :  { %252 = dma.hbm_to_vmem [thread:$0]  %s13092_s8, 4096, %s247_s27, [#allocation24], %s12253_s13, %s12253_s13, %s12254_s28  }
 0x10f   :  { %p12111_p1 = pnand %p12110_p0, %p12104_p11 }
 0x111   :  { %12114 = shalt.err (!%p12111_p1)
}
 0x112   :  { %s13093_s4 = sld [smem:[#allocation61_spill]]  ;;  %s12277_s9 = smov [#allocation31]  }
 0x113   :  { %s292_s16 = sshll.u32 %s12277_s9, 4  ;;  %s12278_s18 = smov [#allocation34]   ;;  %s293_s16 = int_to_ptr.vmem [resolvable:$true] %s292_s16 }
 0x114   :  { %s317_s17 = sshll.u32 %s12278_s18, 4  ;;  %s12123_s22 = scalar_lea.vmem %s293_s16, 512  ;;  %s318_s17 = int_to_ptr.vmem [resolvable:$true] %s317_s17 }
 0x115   :  { %p12124_p2 = scmp.ne.s32.totalorder %s293_s16, %s12123_s22  ;;  %p12128_p3 = scmp.lt.s32.totalorder %s293_s16, %s293_s16 }
 0x116   :  { %p12129_p4 = scmp.lt.s32.totalorder %s12123_s22, %s12123_s22 }
 0x118   :  { %274 = dma.hbm_to_vmem [thread:$0]  %s13093_s4, 16, %s272_s10, [#allocation27]  }
 0x119   :  { %p12130_p5 = por %p12129_p4, %p12128_p3 }
 0x11b   :  { %p12131_p6 = pnand %p12130_p5, %p12124_p2 }
 0x11d   :  { %12134 = shalt.err (!%p12131_p6)
}
 0x11e   :  { %s13094_s23 = sld [smem:[#allocation62_spill]]  ;;  %s12143_s21 = scalar_lea.vmem %s318_s17, 16 }
 0x11f   :  { %p12144_p7 = scmp.ne.s32.totalorder %s318_s17, %s12143_s21  ;;  %s12147_s3 = scalar_lea.vmem %s318_s17, 32 }
 0x120   :  { %p12148_p8 = scmp.lt.s32.totalorder %s318_s17, %s318_s17  ;;  %p12149_p9 = scmp.lt.s32.totalorder %s12147_s3, %s12143_s21 }
 0x122   :  { %p12150_p10 = por %p12149_p9, %p12148_p8 }
 0x124   :  { %298 = dma.hbm_to_vmem [thread:$0]  %s13094_s23, 512, %s293_s16, [#allocation30], %s12253_s13, %s12253_s13, %s12254_s28  }
 0x125   :  { %p12151_p11 = pnand %p12150_p10, %p12144_p7 }
 0x127   :  { %12154 = shalt.err (!%p12151_p11)
}
 0x128   :  { %320 = dma.hbm_to_vmem [thread:$0]  %s12424_s12, 16, %s318_s17, [#allocation33]  }
 0x129   :  { %s12279_s26 = smov [#allocation37]  }
 0x12a   :  { %s339_s30 = sshll.u32 %s12279_s26, 4  ;;  %s340_s30 = int_to_ptr.vmem [resolvable:$true] %s339_s30 }
 0x12b   :  { %s12163_s14 = scalar_lea.vmem %s340_s30, 16  ;;  %s12167_s19 = scalar_lea.vmem %s340_s30, 32 }
 0x12c   :  { %p12164_p12 = scmp.ne.s32.totalorder %s340_s30, %s12163_s14  ;;  %p12168_p13 = scmp.lt.s32.totalorder %s340_s30, %s340_s30 }
 0x12d   :  { %p12169_p0 = scmp.lt.s32.totalorder %s12167_s19, %s12163_s14 }
 0x12f   :  { %p12170_p1 = por %p12169_p0, %p12168_p13 }
 0x131   :  { %p12171_p2 = pnand %p12170_p1, %p12164_p12 }
 0x133   :  { %12174 = shalt.err (!%p12171_p2)
}
 0x134   :  { %342 = dma.hbm_to_vmem [thread:$0]  %s12434_s24, 16, %s340_s30, [#allocation36]  }
 0x135   :  { %12195 = dma.done.wait [#allocation3], 16  }
 0x136   :  { %12196 = vsyncadd [#allocation3], 4294967280 }
 0x137   :  { %12197 = dma.done.wait [#allocation6], 272  }
 0x138   :  { %12198 = vsyncadd [#allocation6], 4294967024 }
 0x139   :  { %12199 = dma.done.wait [#allocation9], 816  }
 0x13a   :  { %12200 = vsyncadd [#allocation9], 4294966480 }
 0x13b   :  { %12201 = dma.done.wait [#allocation12], 1584  }
 0x13c   :  { %12202 = vsyncadd [#allocation12], 4294965712 }
 0x13d   :  { %12203 = dma.done.wait [#allocation15], 96  }
 0x13e   :  { %12204 = vsyncadd [#allocation15], 4294967200 }
 0x13f   :  { %12205 = dma.done.wait [#allocation18], 560  }
 0x140   :  { %12206 = vsyncadd [#allocation18], 4294966736 }
 0x141   :  { %12207 = dma.done.wait [#allocation21], 102416  }
 0x142   :  { %12208 = vsyncadd [#allocation21], 4294864880 }
 0x143   :  { %12209 = dma.done.wait [#allocation24], 4160  }
 0x144   :  { %12210 = vsyncadd [#allocation24], 4294963136 }
 0x145   :  { %12211 = dma.done.wait [#allocation27], 32  }
 0x146   :  { %12212 = vsyncadd [#allocation27], 4294967264 }
 0x147   :  { %12213 = dma.done.wait [#allocation30], 1536  }
 0x148   :  { %12214 = vsyncadd [#allocation30], 4294965760 }
 0x149   :  { %12215 = dma.done.wait [#allocation33], 32  }
 0x14a   :  { %12216 = vsyncadd [#allocation33], 4294967264 }
 0x14b   :  { %12217 = dma.done.wait [#allocation36], 528  }
 0x14c   :  { %12218 = vsyncadd [#allocation36], 4294966768  ;;  %s13095_s24 = sld [smem:[#allocation54_spill]]  ;;  %vm521_vm0 = vcmask 1045504   ;;  %v12280_v0 = vmov 0.0   ;;  %vm12281_vm1 = vmmov 0   ;;  %v417_v26 = vlaneseq }
 0x14d   :  { %s13096_s12 = sld [smem:[#allocation52_spill]]  ;;  %9998 = vmatprep.subr.bf16.mxu0 %v12280_v0  ;;  %10008 = vmatprep.mubr.msk.bf16.mxu0 %vm12281_vm1, %v12280_v0  ;;  %v12282_v1 = vmov 0   ;;  %vm522_vm2 = vcmask 1046528   ;;  %v12283_v2 = vmov 65535   ;;  %v468_v17 = vld [vmem:[#allocation7] sm:$0xff]  ;;  %v469_v18 = vld [vmem:[#allocation7 + $0x8] sm:$0xff] }
 0x14e   :  { %10318 = vset.pattern.permute.xlu1 %v12282_v1  ;;  %v523_v3 = vsel %vm521_vm0, 4294967295, %v12283_v2  ;;  %10317 = vset.pattern.permute.xlu0 %v12282_v1  ;;  %s13097_s28 = sld [smem:[#allocation53_spill]]  ;;  %vm517_vm3 = vcmask 629760   ;;  %v10354_v21 = vld [vmem:[#allocation11 + $0x18] sm:$0xff]   ;;  %v480_v22 = vpack.c.bf16 %v469_v18, %v468_v17  ;;  %v10355_v23 = vld [vmem:[#allocation11 + $0x10] sm:$0xff]   ;;  %v10356_v24 = vld [vmem:[#allocation11 + $0x8] sm:$0xff]  }
 0x14f   :  { %v524_v4 = vsel %vm522_vm2, %v523_v3, 0  ;;  %v10357_v25 = vld [vmem:[#allocation11] sm:$0xff]   ;;  %v418_v27 = vand.u32 127, %v417_v26  ;;  %v8861_v38 = vld [vmem:[#allocation16] ss:$0 sm:$0xff]  ;;  %vm574_vm8 = vcmask 130048  }
 0x150   :  { %v8860_v32 = vld [vmem:[#allocation14] ss:$0 sm:$0xff]  ;;  %v8884_v33 = vld [vmem:[#allocation14 + $0x1] ss:$0 sm:$0xff]  ;;  %v8924_v36 = vld [vmem:[#allocation14 + $0x2] ss:$0 sm:$0xff] }
 0x151   :  { %v8885_v41 = vld [vmem:[#allocation16 + $0x1] ss:$0 sm:$0xff]  ;;  %v8925_v47 = vld [vmem:[#allocation16 + $0x2] ss:$0 sm:$0xff]  ;;  %s13098_s1 = sld [smem:[#allocation56_spill]]  ;;  %vm688_vm9 = vcmask 523264  }
 0x152   :  { %v10349_v5 = vld [vmem:[%s13095_s24 + $0x20] sm:$0x7f]   ;;  %v10350_v7 = vld [vmem:[%s13095_s24 + $0x18] sm:$0xff]   ;;  %v10351_v10 = vld [vmem:[%s13095_s24 + $0x10] sm:$0xff]   ;;  %vm845_vm12 = vcmask 261120   ;;  %vm1784_vm14 = vcmask 123904  }
 0x153   :  { %v526_v6 = vand.u32 %v10349_v5, %v524_v4  ;;  %v415_v8 = vld [vmem:[%s13096_s12 + $0x10] sm:$0xff]  ;;  %v413_v9 = vld [vmem:[%s13096_s12] sm:$0xff]  ;;  %v416_v11 = vld [vmem:[%s13096_s12 + $0x18] sm:$0xff]  ;;  %s13100_s2 = sld [smem:[#allocation63_spill]]  ;;  %s12285_s6 = smov [#allocation38]  }
 0x154   :  { %426 = vperm.xlu1 %10318, %v415_v8   ;;  %420 = vperm.xlu0 %10317, %v413_v9   ;;  %v414_v12 = vld [vmem:[%s13096_s12 + $0x8] sm:$0xff]  ;;  %v570_v15 = vld [vmem:[%s13097_s28] sm:$0xff]  ;;  %v573_v19 = vld [vmem:[%s13097_s28 + $0x18] sm:$0xff]  ;;  %s8793_s0 = sshll.u32 %s12285_s6, 4  ;;  %s8794_s0 = int_to_ptr.vmem [resolvable:$true] %s8793_s0 }
 0x155   :  { %9999 = vmatpush3.bf16.msra.mxu0 %v526_v6  ;;  %v571_v13 = vld [vmem:[%s13097_s28 + $0x8] sm:$0xff]  ;;  %v10353_v16 = vld [vmem:[%s13095_s24] sm:$0xff]   ;;  %v572_v20 = vld [vmem:[%s13097_s28 + $0x10] sm:$0xff]  ;;  %s12175_s5 = scalar_lea.vmem %s8794_s0, 32  ;;  %p12180_p4 = scmp.lt.s32.totalorder %s8794_s0, %s8794_s0 }
 0x156   :  { %10000 = vmatprep.subr.bf16.mxu0 %v12280_v0  ;;  %v10352_v14 = vld [vmem:[%s13095_s24 + $0x8] sm:$0xff]   ;;  %p12176_p3 = scmp.ne.s32.totalorder %s8794_s0, %s12175_s5  ;;  %p12181_p5 = scmp.lt.s32.totalorder %s12175_s5, %s12175_s5 }
 0x158   :  { %429 = vperm.xlu1 %10318, %v416_v11   ;;  %423 = vperm.xlu0 %10317, %v414_v12   ;;  %p12182_p6 = por %p12181_p5, %p12180_p4 }
 0x159   :  { %10001 = vmatpush3.bf16.msra.mxu0 %v10350_v7 }
 0x15a   :  { %10002 = vmatprep.subr.bf16.mxu0 %v12280_v0  ;;  %p12183_p7 = pnand %p12182_p6, %p12176_p3 }
 0x15c   :  { %638 = vperm.xlu1 %10318, %v571_v13   ;;  %633 = vperm.xlu0 %10317, %v570_v15  }
 0x15d   :  { %10003 = vmatpush3.bf16.msra.mxu0 %v10351_v10 }
 0x15e   :  { %10004 = vmatprep.subr.bf16.mxu0 %v12280_v0 }
 0x160   :  { %648 = vperm.xlu1 %10318, %v573_v19   ;;  %643 = vperm.xlu0 %10317, %v572_v20  }
 0x161   :  { %10005 = vmatpush3.bf16.msra.mxu0 %v10352_v14 }
 0x162   :  { %10006 = vmatprep.subr.bf16.mxu0 %v12280_v0 }
 0x165   :  { %10007 = vmatpush3.bf16.msra.mxu0 %v10353_v16  ;;  %v8851_v16 = vld [vmem:[#allocation10] ss:$0 sm:$0xff] }
 0x166   :  { %10046 = vmatprep.subr.bf16.mxu0 %v12280_v0 }
 0x168   :  { %10009 = vmatmul.mubr.msk.bf16.vlgmr.msra.gmra.mxu0 %vm517_vm3, %v480_v22  ;;  %v10358_v22 = vld [vmem:[%s13098_s1 + $0x38] sm:$0xff]  }
 0x169   :  { %10047 = vmatpush3.bf16.msra.mxu0 %v10354_v21  ;;  %10054 = vmatprep.mubr.msk.bf16.mxu0 %vm12281_vm1, %v12280_v0 }
 0x16a   :  { %10048 = vmatprep.subr.bf16.mxu0 %v12280_v0 }
 0x16d   :  { %10049 = vmatpush3.bf16.msra.mxu0 %v10355_v23 }
 0x16e   :  { %10050 = vmatprep.subr.bf16.mxu0 %v12280_v0 }
 0x171   :  { %10051 = vmatpush3.bf16.msra.mxu0 %v10356_v24 }
 0x172   :  { %10052 = vmatprep.subr.bf16.mxu0 %v12280_v0 }
 0x175   :  { %10053 = vmatpush3.bf16.msra.mxu0 %v10357_v25  ;;  %v10359_v25 = vld [vmem:[%s13098_s1 + $0x30] sm:$0xff]  }
 0x1cf   :  { %v427_v28 = vpop.permute.xlu1 %426  ;;  %v421_v29 = vpop.permute.xlu0 %420 }
 0x1d0   :  { %vm433_vm4 = vcmp.eq.s32.totalorder %v427_v28, %v418_v27  ;;  %vm431_vm5 = vcmp.eq.s32.totalorder %v421_v29, %v418_v27  ;;  %v10361_v28 = vld [vmem:[%s13098_s1 + $0x20] sm:$0xff]   ;;  %v10362_v29 = vld [vmem:[%s13098_s1 + $0x18] sm:$0xff]  }
 0x1d1   :  { %v8844_v30 = vsel %vm433_vm4, 1.0, %v12280_v0  ;;  %v8842_v34 = vsel %vm431_vm5, 1.0, %v12280_v0 }
 0x1d3   :  { %v430_v31 = vpop.permute.xlu1 %429  ;;  %v424_v35 = vpop.permute.xlu0 %423 }
 0x1d4   :  { %vm434_vm6 = vcmp.eq.s32.totalorder %v430_v31, %v418_v27  ;;  %vm432_vm7 = vcmp.eq.s32.totalorder %v424_v35, %v418_v27  ;;  %v10360_v27 = vld [vmem:[%s13098_s1 + $0x28] sm:$0xff]  }
 0x1d5   :  { %v8845_v37 = vsel %vm434_vm6, 1.0, %v12280_v0  ;;  %v8843_v40 = vsel %vm432_vm7, 1.0, %v12280_v0  ;;  %v10364_v31 = vld [vmem:[%s13098_s1 + $0x8] sm:$0xff]  }
 0x1d6   :  { %v12527_v39 = vpack.c.bf16 %v8845_v37, %v8844_v30  ;;  %v12530_v42 = vpack.c.bf16 %v8843_v40, %v8842_v34  ;;  %v10363_v30 = vld [vmem:[%s13098_s1 + $0x10] sm:$0xff]  }
 0x1d7   :  { %v639_v43 = vpop.permute.xlu1 %638  ;;  %v634_v46 = vpop.permute.xlu0 %633 }
 0x1d8   :  { %v658_v44 = vmul.f32 %v8860_v32, %v639_v43  ;;  %v1038_v45 = vmul.f32 %v8884_v33, %v639_v43  ;;  %v1418_v48 = vmul.f32 %v8924_v36, %v639_v43  ;;  %v657_v49 = vmul.f32 %v8860_v32, %v634_v46  ;;  %10014 = vmatprep.mubr.msk.bf16.mxu1 %vm574_vm8, %v12530_v42 }
 0x1d9   :  { %v1037_v50 = vmul.f32 %v8884_v33, %v634_v46  ;;  %v1417_v51 = vmul.f32 %v8924_v36, %v634_v46 }
 0x1da   :  { %v669_v52 = vadd.f32 %v8861_v38, %v658_v44  ;;  %v668_v54 = vadd.f32 %v8861_v38, %v657_v49  ;;  %v1050_v56 = vadd.f32 %v8885_v41, %v1038_v45  ;;  %v1430_v63 = vadd.f32 %v8925_v47, %v1418_v48 }
 0x1db   :  { %v649_v53 = vpop.permute.xlu1 %648  ;;  %v1049_v55 = vadd.f32 %v8885_v41, %v1037_v50  ;;  %v644_v59 = vpop.permute.xlu0 %643  ;;  %v1429_v5 = vadd.f32 %v8925_v47, %v1417_v51 }
 0x1dc   :  { %v660_v57 = vmul.f32 %v8860_v32, %v649_v53  ;;  %v1040_v58 = vmul.f32 %v8884_v33, %v649_v53  ;;  %v659_v60 = vmul.f32 %v8860_v32, %v644_v59  ;;  %v1039_v61 = vmul.f32 %v8884_v33, %v644_v59  ;;  %v10365_v32 = vld [vmem:[%s13098_s1] sm:$0xff]  }
 0x1dd   :  { %v10319_v62 = vpack.i.bf16 %v669_v52, %v668_v54  ;;  %v1420_v2 = vmul.f32 %v8924_v36, %v649_v53  ;;  %v1419_v3 = vmul.f32 %v8924_v36, %v644_v59  ;;  %v10329_v7 = vpack.i.bf16 %v1050_v56, %v1049_v55  ;;  %v8862_v55 = vld [vmem:[#allocation17] ss:$0 sm:$0xff] }
 0x1de   :  { %v671_v4 = vadd.f32 %v8861_v38, %v660_v57  ;;  %v670_v6 = vadd.f32 %v8861_v38, %v659_v60  ;;  %v1051_v8 = vadd.f32 %v8885_v41, %v1039_v61  ;;  %v1052_v9 = vadd.f32 %v8885_v41, %v1040_v58 }
 0x1df   :  { %10320 = vrot.lane.b32.xlu0 %v10319_v62, %s12253_s13  ;;  %v10339_v11 = vpack.i.bf16 %v1430_v63, %v1429_v5  ;;  %v1431_v13 = vadd.f32 %v8925_v47, %v1419_v3  ;;  %v1432_v14 = vadd.f32 %v8925_v47, %v1420_v2 }
 0x1e0   :  { %v10324_v10 = vpack.i.bf16 %v671_v4, %v670_v6  ;;  %v10334_v12 = vpack.i.bf16 %v1052_v9, %v1051_v8 }
 0x1e1   :  { %v10344_v15 = vpack.i.bf16 %v1432_v14, %v1431_v13  ;;  %v12563_v14 = vshrl.u32 %v417_v26, 7 }
 0x1e2   :  { %10325 = vrot.lane.b32.xlu1 %v10324_v10, %s12253_s13 }
 0x1e3   :  { %10330 = vrot.lane.b32.xlu0 %v10329_v7, %s12253_s13 }
 0x1e6   :  { %10335 = vrot.lane.b32.xlu1 %v10334_v12, %s12253_s13 }
 0x1e7   :  { %10340 = vrot.lane.b32.xlu0 %v10339_v11, %s12253_s13 }
 0x1ea   :  { %10345 = vrot.lane.b32.xlu1 %v10344_v15, %s12253_s13  ;;  %s13099_s13 = sld [smem:[#allocation60_spill]] }
 0x228   :  { %v562_v17 = vpop.f32.mrf.mxu0 }
 0x229   :  { %v563_v20 = vadd.f32 %v8851_v16, %v562_v17  ;;  %v8846_v17 = vld [vmem:[#allocation2] ss:$0 sm:$0xff] }
 0x22a   :  { %v10010_v18 = vpop.f32.mrf.mxu0  ;;  %vm453_vm10 = vcmp.eq.s32.totalorder %v8846_v17, %v12563_v14 }
 0x22c   :  { %v565_v19 = vpop.f32.mrf.mxu0 }
 0x22d   :  { %v566_v21 = vadd.f32 %v8851_v16, %v565_v19  ;;  %v448_v16 = vadd.s32 8, %v12563_v14 }
 0x22e   :  { %v10011_v23 = vpop.f32.mrf.mxu0 }
 0x22f   :  { %v569_v24 = vpack.c.bf16 %v566_v21, %v563_v20  ;;  %vm454_vm11 = vcmp.eq.s32.totalorder %v8846_v17, %v448_v16 }
 0x231   :  { %10012 = vmatprep.subr.bf16.mxu1 %v569_v24  ;;  %10055 = vmatmul.mubr.msk.bf16.vlgmr.msra.gmra.mxu0 %vm688_vm9, %v569_v24 }
 0x232   :  { %10013 = vmatpush3.bf16.msra.mxu1 %v569_v24 }
 0x233   :  { %10018 = vmatprep.subr.bf16.mxu1 %v10358_v22 }
 0x235   :  { %10015 = vmatmul.mubr.msk.bf16.vlgmr.msra.gmra.mxu1 %vm574_vm8, %v12527_v39 }
 0x236   :  { %10019 = vmatpush3.bf16.msra.mxu1 %v10358_v22 }
 0x237   :  { %10020 = vmatprep.subr.bf16.mxu1 %v10359_v25 }
 0x23a   :  { %10021 = vmatpush3.bf16.msra.mxu1 %v10359_v25  ;;  %v8847_v25 = vsel %vm453_vm10, 1.0, %v12280_v0 }
 0x23b   :  { %10022 = vmatprep.subr.bf16.mxu1 %v10360_v27 }
 0x23e   :  { %10023 = vmatpush3.bf16.msra.mxu1 %v10360_v27  ;;  %v8848_v27 = vsel %vm454_vm11, 1.0, %v12280_v0 }
 0x23f   :  { %10024 = vmatprep.subr.bf16.mxu1 %v10361_v28 }
 0x242   :  { %10025 = vmatpush3.bf16.msra.mxu1 %v10361_v28 }
 0x243   :  { %10026 = vmatprep.subr.bf16.mxu1 %v10362_v29 }
 0x246   :  { %10027 = vmatpush3.bf16.msra.mxu1 %v10362_v29  ;;  %v12570_v29 = vpack.c.bf16 %v8848_v27, %v8847_v25 }
 0x247   :  { %10028 = vmatprep.subr.bf16.mxu1 %v10363_v30 }
 0x24a   :  { %10029 = vmatpush3.bf16.msra.mxu1 %v10363_v30  ;;  %v10366_v30 = vld [vmem:[%s13098_s1 + $0x78] sm:$0xff]  }
 0x24b   :  { %10030 = vmatprep.subr.bf16.mxu1 %v10364_v31  ;;  %10064 = vmatprep.subr.bf16.mxu0 %v10366_v30 }
 0x24c   :  { %10065 = vmatpush3.bf16.msra.mxu0 %v10366_v30 }
 0x24e   :  { %10031 = vmatpush3.bf16.msra.mxu1 %v10364_v31  ;;  %v10367_v31 = vld [vmem:[%s13098_s1 + $0x70] sm:$0xff]  }
 0x24f   :  { %10032 = vmatprep.subr.bf16.mxu1 %v10365_v32  ;;  %10066 = vmatprep.subr.bf16.mxu0 %v10367_v31 }
 0x250   :  { %10067 = vmatpush3.bf16.msra.mxu0 %v10367_v31 }
 0x251   :  { %v10321_v43 = vpop.permute.xlu0 %10320 }
 0x252   :  { %10033 = vmatpush3.bf16.msra.mxu1 %v10365_v32  ;;  %v10323_v45 = vunpack.i.h.bf16 %v10321_v43  ;;  %v10322_v46 = vunpack.i.l.bf16 %v10321_v43  ;;  %v10368_v32 = vld [vmem:[%s13098_s1 + $0x68] sm:$0xff]  }
 0x253   :  { %10038 = vmatprep.subr.bf16.mxu1 %v12280_v0  ;;  %10068 = vmatprep.subr.bf16.mxu0 %v10368_v32 }
 0x254   :  { %v10326_v40 = vpop.permute.xlu1 %10325  ;;  %10069 = vmatpush3.bf16.msra.mxu0 %v10368_v32 }
 0x255   :  { %v10328_v41 = vunpack.i.h.bf16 %v10326_v40  ;;  %v10327_v47 = vunpack.i.l.bf16 %v10326_v40 }
 0x2f1   :  { %v12552_v33 = vpop.f32.mrf.mxu0 }
 0x2f3   :  { %v10056_v34 = vpop.f32.mrf.mxu0 }
 0x2f4   :  { %v10369_v34 = vld [vmem:[%s13098_s1 + $0x60] sm:$0xff]  }
 0x2f5   :  { %v10016_v35 = vpop.f32.mrf.mxu1  ;;  %v12554_v36 = vpop.f32.mrf.mxu0  ;;  %10070 = vmatprep.subr.bf16.mxu0 %v10369_v34 }
 0x2f6   :  { %v691_v52 = vsel %vm688_vm9, %v10016_v35, %v10327_v47  ;;  %10071 = vmatpush3.bf16.msra.mxu0 %v10369_v34 }
 0x2f7   :  { %v615_v37 = vpop.f32.mrf.mxu1  ;;  %v10057_v38 = vpop.f32.mrf.mxu0 }
 0x2f8   :  { %v689_v50 = vsel %vm688_vm9, %v615_v37, %v10322_v46  ;;  %v8876_v38 = vld [vmem:[#allocation13] ss:$0 sm:$0xff] }
 0x2f9   :  { %v10017_v44 = vpop.f32.mrf.mxu1  ;;  %v967_v40 = vadd.f32 %v8876_v38, %v12552_v33  ;;  %v10372_v33 = vld [vmem:[%s13098_s1 + $0x48] sm:$0xff]  }
 0x2fa   :  { %v692_v48 = vsel %vm688_vm9, %v10017_v44, %v10328_v41 }
 0x2fb   :  { %v618_v49 = vpop.f32.mrf.mxu1  ;;  %v694_v54 = vpack.c.bf16 %v692_v48, %v691_v52 }
 0x2fc   :  { %v690_v51 = vsel %vm688_vm9, %v618_v49, %v10323_v45  ;;  %v970_v45 = vadd.f32 %v8876_v38, %v12554_v36  ;;  %v10373_v36 = vld [vmem:[%s13098_s1 + $0x40] sm:$0xff]  }
 0x2fd   :  { %v693_v53 = vpack.c.bf16 %v690_v51, %v689_v50 }
 0x2ff   :  { %10034 = vmatprep.mubr.bf16.mxu1 %v693_v53 }
 0x300   :  { %10035 = vmatmul.mubr.bf16.vlgmr.msra.gmra.mxu1 %v694_v54 }
 0x301   :  { %10042 = vmatprep.mubr.msk.bf16.mxu1 %vm12281_vm1, %v12280_v0 }
 0x3c0   :  { %v10036_v56 = vpop.f32.mrf.mxu1 }
 0x3c1   :  { %v809_v57 = vadd.f32 %v10036_v56, %v8862_v55  ;;  %v10336_v56 = vpop.permute.xlu1 %10335 }
 0x3c2   :  { %v800_v58 = vpop.f32.mrf.mxu1 }
 0x3c3   :  { %v8873_v59 = vmul.f32 -1.442695, %v809_v57  ;;  %v801_v60 = vadd.f32 %v8862_v55, %v800_v58  ;;  %v10338_v57 = vunpack.i.h.bf16 %v10336_v56  ;;  %v10331_v58 = vpop.permute.xlu0 %10330 }
 0x3c4   :  { %v10037_v61 = vpop.f32.mrf.mxu1 }
 0x3c5   :  { %11664 = vpow2.f32 %v8873_v59  ;;  %v8871_v62 = vmul.f32 -1.442695, %v801_v60  ;;  %v812_v63 = vadd.f32 %v10037_v61, %v8862_v55  ;;  %v10333_v60 = vunpack.i.h.bf16 %v10331_v58 }
 0x3c6   :  { %v803_v2 = vpop.f32.mrf.mxu1  ;;  %v10332_v61 = vunpack.i.l.bf16 %v10331_v58 }
 0x3c7   :  { %11666 = vpow2.f32 %v8871_v62  ;;  %v8874_v3 = vmul.f32 -1.442695, %v812_v63  ;;  %v804_v4 = vadd.f32 %v8862_v55, %v803_v2  ;;  %v10337_v62 = vunpack.i.l.bf16 %v10336_v56  ;;  %v8916_v56 = vld [vmem:[#allocation13 + $0x1] ss:$0 sm:$0xff] }
 0x3c9   :  { %11668 = vpow2.f32 %v8874_v3  ;;  %v8872_v5 = vmul.f32 -1.442695, %v804_v4 }
 0x3cb   :  { %11670 = vpow2.f32 %v8872_v5 }
 0x3d2   :  { %v11665_v6 = vpop.eup %11664 }
 0x3d3   :  { %v829_v7 = vadd.f32 1.0, %v11665_v6 }
 0x3d4   :  { %v11667_v8 = vpop.eup %11666 }
 0x3d5   :  { %v827_v10 = vadd.f32 1.0, %v11667_v8  ;;  %11672 = vrcp.f32 %v829_v7  ;;  %v8902_v8 = vld [vmem:[#allocation17 + $0x1] ss:$0 sm:$0xff] }
 0x3d6   :  { %v11669_v9 = vpop.eup %11668 }
 0x3d7   :  { %v830_v11 = vadd.f32 1.0, %v11669_v9 }
 0x3d8   :  { %v11671_v12 = vpop.eup %11670 }
 0x3d9   :  { %11674 = vrcp.f32 %v830_v11  ;;  %v828_v13 = vadd.f32 1.0, %v11671_v12 }
 0x3da   :  { %11676 = vrcp.f32 %v827_v10 }
 0x3db   :  { %11678 = vrcp.f32 %v828_v13 }
 0x3e2   :  { %v11673_v15 = vpop.eup %11672 }
 0x3e3   :  { %v841_v20 = vmul.f32 %v11673_v15, %v10016_v35  ;;  %v10370_v35 = vld [vmem:[%s13098_s1 + $0x58] sm:$0xff]  }
 0x3e4   :  { %10072 = vmatprep.subr.bf16.mxu0 %v10370_v35 }
 0x3e5   :  { %10073 = vmatpush3.bf16.msra.mxu0 %v10370_v35 }
 0x3e6   :  { %v11675_v18 = vpop.eup %11674 }
 0x3e7   :  { %v11677_v19 = vpop.eup %11676  ;;  %v842_v21 = vmul.f32 %v11675_v18, %v10017_v44 }
 0x3e8   :  { %v11679_v22 = vpop.eup %11678  ;;  %v839_v26 = vmul.f32 %v11677_v19, %v615_v37  ;;  %v10371_v37 = vld [vmem:[%s13098_s1 + $0x50] sm:$0xff]  }
 0x3e9   :  { %v844_v23 = vpack.c.bf16 %v842_v21, %v841_v20  ;;  %v840_v24 = vmul.f32 %v11679_v22, %v618_v49  ;;  %10074 = vmatprep.subr.bf16.mxu0 %v10371_v37 }
 0x3ea   :  { %10075 = vmatpush3.bf16.msra.mxu0 %v10371_v37 }
 0x3eb   :  { %10039 = vmatpush3.bf16.msra.mxu1 %v844_v23  ;;  %v843_v28 = vpack.c.bf16 %v840_v24, %v839_v26  ;;  %10076 = vmatprep.subr.bf16.mxu0 %v10372_v33 }
 0x3ec   :  { %10040 = vmatprep.subr.bf16.mxu1 %v12280_v0 }
 0x3ee   :  { %10077 = vmatpush3.bf16.msra.mxu0 %v10372_v33  ;;  %v10382_v33 = vld [vmem:[%s13098_s1 + $0x98] sm:$0xff]  }
 0x3ef   :  { %10041 = vmatpush3.bf16.msra.mxu1 %v843_v28  ;;  %10078 = vmatprep.subr.bf16.mxu0 %v10373_v36 }
 0x3f2   :  { %10043 = vmatmul.mubr.msk.bf16.vlgmr.msra.gmra.mxu1 %vm845_vm12, %v12570_v29  ;;  %10079 = vmatpush3.bf16.msra.mxu0 %v10373_v36  ;;  %v10383_v36 = vld [vmem:[%s13098_s1 + $0x90] sm:$0xff]  }
 0x3f3   :  { %10060 = vmatprep.mubr.msk.bf16.mxu1 %vm574_vm8, %v12530_v42 }
 0x4b2   :  { %v883_v41 = vpop.f32.mrf.mxu1 }
 0x4b3   :  { %v973_v43 = vadd.f32 %v967_v40, %v883_v41 }
 0x4b4   :  { %v10044_v44 = vpop.f32.mrf.mxu1 }
 0x4b5   :  { %v975_v47 = vmul.f32 0.999995, %v973_v43 }
 0x4b6   :  { %v886_v46 = vpop.f32.mrf.mxu1 }
 0x4b7   :  { %v974_v48 = vadd.f32 %v970_v45, %v886_v46  ;;  %v977_v51 = vmax.f32 %v975_v47, 0.0  ;;  %v10374_v45 = vld [vmem:[#allocation11 + $0x38] sm:$0xff]   ;;  %v10375_v46 = vld [vmem:[#allocation11 + $0x30] sm:$0xff]   ;;  %v10376_v47 = vld [vmem:[#allocation11 + $0x28] sm:$0xff]  }
 0x4b8   :  { %v10045_v49 = vpop.f32.mrf.mxu1 }
 0x4b9   :  { %v976_v50 = vmul.f32 0.999995, %v974_v48  ;;  %v10377_v48 = vld [vmem:[#allocation11 + $0x20] sm:$0xff]   ;;  %v10378_v49 = vld [vmem:[%s13098_s1 + $0xb8] sm:$0xff]  }
 0x4ba   :  { %10110 = vmatprep.subr.bf16.mxu0 %v10378_v49 }
 0x4bb   :  { %v978_v52 = vmax.f32 %v976_v50, 0.0  ;;  %v10379_v50 = vld [vmem:[%s13098_s1 + $0xb0] sm:$0xff]  }
 0x4bd   :  { %v12584_v53 = vpack.c.bf16 %v978_v52, %v977_v51  ;;  %v10380_v51 = vld [vmem:[%s13098_s1 + $0xa8] sm:$0xff]   ;;  %v10381_v52 = vld [vmem:[%s13098_s1 + $0xa0] sm:$0xff]  }
 0x4bf   :  { %10058 = vmatprep.subr.bf16.mxu1 %v12584_v53 }
 0x4c0   :  { %10059 = vmatpush3.bf16.msra.mxu1 %v12584_v53 }
 0x4c1   :  { %10084 = vmatprep.subr.bf16.mxu1 %v12280_v0 }
 0x4c3   :  { %10061 = vmatmul.mubr.msk.bf16.vlgmr.msra.gmra.mxu1 %vm574_vm8, %v12527_v39 }
 0x4c4   :  { %10088 = vmatprep.mubr.msk.bf16.mxu1 %vm12281_vm1, %v12280_v0 }
 0x583   :  { %v10062_v54 = vpop.f32.mrf.mxu1 }
 0x584   :  { %v1071_v5 = vsel %vm688_vm9, %v10062_v54, %v10337_v62 }
 0x585   :  { %v1014_v55 = vpop.f32.mrf.mxu1 }
 0x586   :  { %v1069_v3 = vsel %vm688_vm9, %v1014_v55, %v10332_v61 }
 0x587   :  { %v10063_v59 = vpop.f32.mrf.mxu1 }
 0x588   :  { %v1072_v63 = vsel %vm688_vm9, %v10063_v59, %v10338_v57 }
 0x589   :  { %v1017_v2 = vpop.f32.mrf.mxu1  ;;  %v1074_v7 = vpack.c.bf16 %v1072_v63, %v1071_v5 }
 0x58a   :  { %v1070_v4 = vsel %vm688_vm9, %v1017_v2, %v10333_v60 }
 0x58b   :  { %v1073_v6 = vpack.c.bf16 %v1070_v4, %v1069_v3 }
 0x58d   :  { %10080 = vmatprep.mubr.bf16.mxu0 %v1073_v6 }
 0x58e   :  { %10081 = vmatmul.mubr.bf16.vlgmr.msra.gmra.mxu0 %v1074_v7 }
 0x58f   :  { %10111 = vmatpush3.bf16.msra.mxu0 %v10378_v49 }
 0x590   :  { %10112 = vmatprep.subr.bf16.mxu0 %v10379_v50 }
 0x593   :  { %10113 = vmatpush3.bf16.msra.mxu0 %v10379_v50 }
 0x594   :  { %10114 = vmatprep.subr.bf16.mxu0 %v10380_v51 }
 0x597   :  { %10115 = vmatpush3.bf16.msra.mxu0 %v10380_v51 }
 0x598   :  { %10116 = vmatprep.subr.bf16.mxu0 %v10381_v52 }
 0x59b   :  { %10117 = vmatpush3.bf16.msra.mxu0 %v10381_v52 }
 0x59c   :  { %10118 = vmatprep.subr.bf16.mxu0 %v10382_v33 }
 0x59f   :  { %10119 = vmatpush3.bf16.msra.mxu0 %v10382_v33 }
 0x5a0   :  { %10120 = vmatprep.subr.bf16.mxu0 %v10383_v36 }
 0x5a3   :  { %10121 = vmatpush3.bf16.msra.mxu0 %v10383_v36 }
 0x64e   :  { %v10082_v9 = vpop.f32.mrf.mxu0 }
 0x64f   :  { %v1191_v10 = vadd.f32 %v10082_v9, %v8902_v8  ;;  %v10385_v9 = vld [vmem:[%s13098_s1 + $0x80] sm:$0xff]  }
 0x650   :  { %v1182_v11 = vpop.f32.mrf.mxu0 }
 0x651   :  { %v8913_v12 = vmul.f32 -1.442695, %v1191_v10  ;;  %v1183_v13 = vadd.f32 %v8902_v8, %v1182_v11  ;;  %v10346_v11 = vpop.permute.xlu1 %10345 }
 0x652   :  { %v10083_v15 = vpop.f32.mrf.mxu0 }
 0x653   :  { %11680 = vpow2.f32 %v8913_v12  ;;  %v8911_v16 = vmul.f32 -1.442695, %v1183_v13  ;;  %v1194_v17 = vadd.f32 %v10083_v15, %v8902_v8  ;;  %v10341_v12 = vpop.permute.xlu0 %10340  ;;  %v10348_v15 = vunpack.i.h.bf16 %v10346_v11 }
 0x654   :  { %v1185_v18 = vpop.f32.mrf.mxu0 }
 0x655   :  { %11682 = vpow2.f32 %v8911_v16  ;;  %v8914_v19 = vmul.f32 -1.442695, %v1194_v17  ;;  %v1186_v20 = vadd.f32 %v8902_v8, %v1185_v18  ;;  %v10384_v8 = vld [vmem:[%s13098_s1 + $0x88] sm:$0xff]   ;;  %v10343_v17 = vunpack.i.h.bf16 %v10341_v12 }
 0x656   :  { %10122 = vmatprep.subr.bf16.mxu0 %v10384_v8  ;;  %v10342_v18 = vunpack.i.l.bf16 %v10341_v12 }
 0x657   :  { %11684 = vpow2.f32 %v8914_v19  ;;  %v8912_v21 = vmul.f32 -1.442695, %v1186_v20  ;;  %10123 = vmatpush3.bf16.msra.mxu0 %v10384_v8  ;;  %v12284_v8 = vmov 1983009808  }
 0x658   :  { %10124 = vmatprep.subr.bf16.mxu0 %v10385_v9 }
 0x659   :  { %11686 = vpow2.f32 %v8912_v21 }
 0x65b   :  { %10125 = vmatpush3.bf16.msra.mxu0 %v10385_v9  ;;  %v2691_v9 = vunpack.c.l.s4 %v12284_v8  ;;  %v10536_v8 = vld [vmem:[#allocation19 + $0x8] sm:$0xff]  }
 0x65c   :  { %10156 = vmatprep.subr.bf16.mxu0 %v12280_v0 }
 0x660   :  { %v11681_v22 = vpop.eup %11680 }
 0x661   :  { %v1211_v23 = vadd.f32 1.0, %v11681_v22 }
 0x662   :  { %v11683_v24 = vpop.eup %11682 }
 0x663   :  { %v1209_v25 = vadd.f32 1.0, %v11683_v24  ;;  %11688 = vrcp.f32 %v1211_v23 }
 0x664   :  { %v11685_v26 = vpop.eup %11684 }
 0x665   :  { %v1212_v27 = vadd.f32 1.0, %v11685_v26 }
 0x666   :  { %v11687_v28 = vpop.eup %11686 }
 0x667   :  { %11690 = vrcp.f32 %v1212_v27  ;;  %v1210_v30 = vadd.f32 1.0, %v11687_v28 }
 0x668   :  { %11692 = vrcp.f32 %v1209_v25  ;;  %v8942_v25 = vld [vmem:[#allocation17 + $0x2] ss:$0 sm:$0xff] }
 0x669   :  { %11694 = vrcp.f32 %v1210_v30 }
 0x670   :  { %v11689_v31 = vpop.eup %11688 }
 0x671   :  { %v1223_v35 = vmul.f32 %v11689_v31, %v10062_v54 }
 0x674   :  { %v11691_v32 = vpop.eup %11690 }
 0x675   :  { %v11693_v34 = vpop.eup %11692  ;;  %v1224_v37 = vmul.f32 %v11691_v32, %v10063_v59 }
 0x676   :  { %v11695_v38 = vpop.eup %11694  ;;  %v1221_v43 = vmul.f32 %v11693_v34, %v1014_v55 }
 0x677   :  { %v1226_v40 = vpack.c.bf16 %v1224_v37, %v1223_v35  ;;  %v1222_v41 = vmul.f32 %v11695_v38, %v1017_v2 }
 0x679   :  { %10085 = vmatpush3.bf16.msra.mxu1 %v1226_v40  ;;  %v1225_v44 = vpack.c.bf16 %v1222_v41, %v1221_v43 }
 0x67a   :  { %10086 = vmatprep.subr.bf16.mxu1 %v12280_v0 }
 0x67d   :  { %10087 = vmatpush3.bf16.msra.mxu1 %v1225_v44 }
 0x67e   :  { %10092 = vmatprep.subr.bf16.mxu1 %v12280_v0 }
 0x680   :  { %10089 = vmatmul.mubr.msk.bf16.vlgmr.msra.gmra.mxu1 %vm845_vm12, %v12570_v29 }
 0x681   :  { %10093 = vmatpush3.bf16.msra.mxu1 %v10374_v45  ;;  %10100 = vmatprep.mubr.msk.bf16.mxu1 %vm12281_vm1, %v12280_v0 }
 0x682   :  { %10094 = vmatprep.subr.bf16.mxu1 %v12280_v0 }
 0x685   :  { %10095 = vmatpush3.bf16.msra.mxu1 %v10375_v46 }
 0x686   :  { %10096 = vmatprep.subr.bf16.mxu1 %v12280_v0 }
 0x689   :  { %10097 = vmatpush3.bf16.msra.mxu1 %v10376_v47 }
 0x68a   :  { %10098 = vmatprep.subr.bf16.mxu1 %v12280_v0 }
 0x68d   :  { %10099 = vmatpush3.bf16.msra.mxu1 %v10377_v48 }
 0x690   :  { %10101 = vmatmul.mubr.msk.bf16.vlgmr.msra.gmra.mxu1 %vm688_vm9, %v12584_v53 }
 0x691   :  { %10106 = vmatprep.mubr.msk.bf16.mxu1 %vm574_vm8, %v12530_v42 }
 0x740   :  { %v1261_v53 = vpop.f32.mrf.mxu1 }
 0x742   :  { %v10090_v42 = vpop.f32.mrf.mxu1 }
 0x744   :  { %v1264_v54 = vpop.f32.mrf.mxu1 }
 0x746   :  { %v10091_v55 = vpop.f32.mrf.mxu1 }
 0x750   :  { %v1346_v57 = vpop.f32.mrf.mxu1 }
 0x751   :  { %v1347_v58 = vadd.f32 %v8916_v56, %v1346_v57 }
 0x752   :  { %v10102_v59 = vpop.f32.mrf.mxu1 }
 0x753   :  { %v1353_v60 = vadd.f32 %v1347_v58, %v1261_v53  ;;  %v10386_v59 = vld [vmem:[#allocation11 + $0x58] sm:$0xff]  }
 0x754   :  { %v1349_v61 = vpop.f32.mrf.mxu1 }
 0x755   :  { %v1350_v62 = vadd.f32 %v8916_v56, %v1349_v61  ;;  %v1355_v2 = vmul.f32 0.999995, %v1353_v60  ;;  %v10387_v60 = vld [vmem:[#allocation11 + $0x50] sm:$0xff]   ;;  %v10388_v61 = vld [vmem:[#allocation11 + $0x48] sm:$0xff]  }
 0x756   :  { %v10103_v63 = vpop.f32.mrf.mxu1 }
 0x757   :  { %v1354_v3 = vadd.f32 %v1350_v62, %v1264_v54  ;;  %v1357_v5 = vmax.f32 %v1355_v2, 0.0  ;;  %v10389_v62 = vld [vmem:[#allocation11 + $0x40] sm:$0xff]  }
 0x759   :  { %v1356_v4 = vmul.f32 0.999995, %v1354_v3 }
 0x75b   :  { %v1358_v6 = vmax.f32 %v1356_v4, 0.0 }
 0x75d   :  { %v12618_v7 = vpack.c.bf16 %v1358_v6, %v1357_v5 }
 0x75f   :  { %10104 = vmatprep.subr.bf16.mxu1 %v12618_v7 }
 0x760   :  { %10105 = vmatpush3.bf16.msra.mxu1 %v12618_v7 }
 0x761   :  { %10130 = vmatprep.subr.bf16.mxu1 %v12280_v0 }
 0x763   :  { %10107 = vmatmul.mubr.msk.bf16.vlgmr.msra.gmra.mxu1 %vm574_vm8, %v12527_v39  ;;  %v10347_v39 = vunpack.i.l.bf16 %v10346_v11  ;;  %v2692_v11 = vunpack.c.0.s8 %v2691_v9 }
 0x764   :  { %10134 = vmatprep.mubr.msk.bf16.mxu1 %vm12281_vm1, %v12280_v0 }
 0x823   :  { %v10108_v10 = vpop.f32.mrf.mxu1 }
 0x824   :  { %v1451_v23 = vsel %vm688_vm9, %v10108_v10, %v10347_v39 }
 0x825   :  { %v1394_v13 = vpop.f32.mrf.mxu1 }
 0x826   :  { %v1449_v21 = vsel %vm688_vm9, %v1394_v13, %v10342_v18  ;;  %v12655_v18 = vld [vmem:[#allocation8] sm:$0xff] }
 0x827   :  { %v10109_v16 = vpop.f32.mrf.mxu1 }
 0x828   :  { %v1452_v19 = vsel %vm688_vm9, %v10109_v16, %v10348_v15 }
 0x829   :  { %v1397_v20 = vpop.f32.mrf.mxu1  ;;  %v1454_v26 = vpack.c.bf16 %v1452_v19, %v1451_v23 }
 0x82a   :  { %v1450_v22 = vsel %vm688_vm9, %v1397_v20, %v10343_v17 }
 0x82b   :  { %v1453_v24 = vpack.c.bf16 %v1450_v22, %v1449_v21 }
 0x82d   :  { %10126 = vmatprep.mubr.bf16.mxu0 %v1453_v24 }
 0x82e   :  { %10127 = vmatmul.mubr.bf16.vlgmr.msra.gmra.mxu0 %v1454_v26 }
 0x82f   :  { %10164 = vmatprep.mubr.msk.bf16.mxu0 %vm12281_vm1, %v12280_v0 }
 0x8ee   :  { %v10128_v27 = vpop.f32.mrf.mxu0 }
 0x8ef   :  { %v1571_v28 = vadd.f32 %v10128_v27, %v8942_v25  ;;  %v10392_v27 = vld [vmem:[#allocation22 + $0xe4] ss:$16 sps:$4 sm:$0xff]  }
 0x8f0   :  { %v1562_v30 = vpop.f32.mrf.mxu0 }
 0x8f1   :  { %v8953_v31 = vmul.f32 -1.442695, %v1571_v28  ;;  %v1563_v32 = vadd.f32 %v8942_v25, %v1562_v30 }
 0x8f2   :  { %v10129_v34 = vpop.f32.mrf.mxu0 }
 0x8f3   :  { %11696 = vpow2.f32 %v8953_v31  ;;  %v8951_v35 = vmul.f32 -1.442695, %v1563_v32  ;;  %v1574_v37 = vadd.f32 %v10129_v34, %v8942_v25  ;;  %v10390_v31 = vld [vmem:[#allocation22 + $0xe0] ss:$16 sps:$4 sm:$0xff]   ;;  %v10395_v34 = vld [vmem:[#allocation22 + $0xc4] ss:$16 sps:$4 sm:$0xff]  }
 0x8f4   :  { %v1565_v38 = vpop.f32.mrf.mxu0 }
 0x8f5   :  { %11698 = vpow2.f32 %v8951_v35  ;;  %v8954_v40 = vmul.f32 -1.442695, %v1574_v37  ;;  %v1566_v41 = vadd.f32 %v8942_v25, %v1565_v38  ;;  %v10393_v35 = vld [vmem:[#allocation22 + $0xc0] ss:$16 sps:$4 sm:$0xff]   ;;  %v10398_v37 = vld [vmem:[#allocation22 + $0xa4] ss:$16 sps:$4 sm:$0xff]  }
 0x8f6   :  { %v10396_v38 = vld [vmem:[#allocation22 + $0xa0] ss:$16 sps:$4 sm:$0xff]  }
 0x8f7   :  { %11700 = vpow2.f32 %v8954_v40  ;;  %v8952_v43 = vmul.f32 -1.442695, %v1566_v41  ;;  %v10401_v40 = vld [vmem:[#allocation22 + $0x84] ss:$16 sps:$4 sm:$0xff]   ;;  %v10399_v41 = vld [vmem:[#allocation22 + $0x80] ss:$16 sps:$4 sm:$0xff]  }
 0x8f9   :  { %11702 = vpow2.f32 %v8952_v43  ;;  %v10404_v43 = vld [vmem:[#allocation22 + $0x64] ss:$16 sps:$4 sm:$0xff]  }
 0x900   :  { %v11697_v44 = vpop.eup %11696 }
 0x901   :  { %v1591_v45 = vadd.f32 1.0, %v11697_v44  ;;  %v10402_v44 = vld [vmem:[#allocation22 + $0x60] ss:$16 sps:$4 sm:$0xff]  }
 0x902   :  { %v11699_v46 = vpop.eup %11698 }
 0x903   :  { %v1589_v48 = vadd.f32 1.0, %v11699_v46  ;;  %11704 = vrcp.f32 %v1591_v45  ;;  %v10407_v45 = vld [vmem:[#allocation22 + $0x44] ss:$16 sps:$4 sm:$0xff]   ;;  %v10405_v46 = vld [vmem:[#allocation22 + $0x40] ss:$16 sps:$4 sm:$0xff]  }
 0x904   :  { %v11701_v47 = vpop.eup %11700 }
 0x905   :  { %v1592_v49 = vadd.f32 1.0, %v11701_v47  ;;  %v10410_v47 = vld [vmem:[#allocation22 + $0x24] ss:$16 sps:$4 sm:$0xff]  }
 0x906   :  { %v11703_v50 = vpop.eup %11702 }
 0x907   :  { %11706 = vrcp.f32 %v1592_v49  ;;  %v1590_v51 = vadd.f32 1.0, %v11703_v50  ;;  %v10413_v49 = vld [vmem:[#allocation22 + $0x4] ss:$16 sps:$4 sm:$0xff]   ;;  %v10411_v50 = vld [vmem:[#allocation22] ss:$16 sps:$4 sm:$0xff]  }
 0x908   :  { %11708 = vrcp.f32 %v1589_v48  ;;  %v10408_v48 = vld [vmem:[#allocation22 + $0x20] ss:$16 sps:$4 sm:$0xff]  }
 0x909   :  { %11710 = vrcp.f32 %v1590_v51  ;;  %v10416_v51 = vld [vmem:[#allocation22 + $0x1e4] ss:$16 sps:$4 sm:$0xff]  }
 0x910   :  { %v11705_v52 = vpop.eup %11704 }
 0x911   :  { %v1603_v53 = vmul.f32 %v11705_v52, %v10108_v10  ;;  %v8956_v10 = vld [vmem:[#allocation13 + $0x2] ss:$0 sm:$0xff] }
 0x912   :  { %v10414_v52 = vld [vmem:[#allocation22 + $0x1e0] ss:$16 sps:$4 sm:$0xff]  }
 0x914   :  { %v11707_v33 = vpop.eup %11706 }
 0x915   :  { %v11709_v36 = vpop.eup %11708  ;;  %v1604_v42 = vmul.f32 %v11707_v33, %v10109_v16  ;;  %v12653_v16 = vsub.s32 %v2692_v11, %v12563_v14  ;;  %v10419_v33 = vld [vmem:[#allocation22 + $0x1c4] ss:$16 sps:$4 sm:$0xff]  }
 0x916   :  { %v11711_v54 = vpop.eup %11710  ;;  %v1601_v57 = vmul.f32 %v11709_v36, %v1394_v13  ;;  %v10417_v36 = vld [vmem:[#allocation22 + $0x1c0] ss:$16 sps:$4 sm:$0xff]  }
 0x917   :  { %v1606_v55 = vpack.c.bf16 %v1604_v42, %v1603_v53  ;;  %v1602_v56 = vmul.f32 %v11711_v54, %v1397_v20  ;;  %v12659_v22 = vrot.slane %v12655_v18, %v12653_v16  ;;  %v10422_v53 = vld [vmem:[#allocation22 + $0x1a4] ss:$16 sps:$4 sm:$0xff]   ;;  %v10420_v42 = vld [vmem:[#allocation22 + $0x1a0] ss:$16 sps:$4 sm:$0xff]  }
 0x918   :  { %v10425_v54 = vld [vmem:[#allocation22 + $0x184] ss:$16 sps:$4 sm:$0xff]  }
 0x919   :  { %10131 = vmatpush3.bf16.msra.mxu1 %v1606_v55  ;;  %v1605_v58 = vpack.c.bf16 %v1602_v56, %v1601_v57  ;;  %v2704_v25 = vcombine.high %v12659_v22, %v12659_v22  ;;  %v10423_v55 = vld [vmem:[#allocation22 + $0x180] ss:$16 sps:$4 sm:$0xff]   ;;  %v10428_v56 = vld [vmem:[#allocation22 + $0x164] ss:$16 sps:$4 sm:$0xff]   ;;  %v12679_v9 = vpack.c.bf16 %v12659_v22, %v12659_v22 }
 0x91a   :  { %10132 = vmatprep.subr.bf16.mxu1 %v12280_v0  ;;  %v10426_v57 = vld [vmem:[#allocation22 + $0x160] ss:$16 sps:$4 sm:$0xff]  }
 0x91b   :  { %v12663_v32 = vpack.c.bf16 %v2704_v25, %v2704_v25  ;;  %v10450_v22 = vld [vmem:[#allocation22 + $0x460] ss:$16 sps:$4 sm:$0xff]  }
 0x91c   :  { %v10456_v25 = vld [vmem:[#allocation22 + $0x420] ss:$16 sps:$4 sm:$0xff]  }
 0x91d   :  { %10133 = vmatpush3.bf16.msra.mxu1 %v1605_v58  ;;  %v10431_v58 = vld [vmem:[#allocation22 + $0x144] ss:$16 sps:$4 sm:$0xff]  }
 0x91e   :  { %10138 = vmatprep.subr.bf16.mxu1 %v12280_v0 }
 0x920   :  { %10135 = vmatmul.mubr.msk.bf16.vlgmr.msra.gmra.mxu1 %vm845_vm12, %v12570_v29  ;;  %v8849_v29 = vld [vmem:[#allocation5] ss:$0 sm:$0xff] }
 0x921   :  { %10139 = vmatpush3.bf16.msra.mxu1 %v10386_v59  ;;  %10146 = vmatprep.mubr.msk.bf16.mxu1 %vm12281_vm1, %v12280_v0  ;;  %vm465_vm13 = vcmp.eq.s32.totalorder %v8849_v29, %v12563_v14  ;;  %v10429_v59 = vld [vmem:[#allocation22 + $0x140] ss:$16 sps:$4 sm:$0xff]  }
 0x922   :  { %10140 = vmatprep.subr.bf16.mxu1 %v12280_v0  ;;  %v8850_v63 = vsel %vm465_vm13, 1.0, %v12280_v0  ;;  %v10432_v29 = vld [vmem:[#allocation22 + $0x120] ss:$16 sps:$4 sm:$0xff]  }
 0x923   :  { %v1785_v2 = vsel %vm1784_vm14, %v8850_v63, 0.0  ;;  %v1740_v30 = vpack.c.bf16 %v8850_v63, %v8850_v63 }
 0x924   :  { %1786 = vadd.xlane.f32.xlu0 %v1785_v2  ;;  %v10437_v2 = vld [vmem:[#allocation22 + $0x104] ss:$16 sps:$4 sm:$0xff]  }
 0x925   :  { %10141 = vmatpush3.bf16.msra.mxu1 %v10387_v60  ;;  %v10434_v60 = vld [vmem:[#allocation22 + $0x124] ss:$16 sps:$4 sm:$0xff]  }
 0x926   :  { %10142 = vmatprep.subr.bf16.mxu1 %v12280_v0 }
 0x929   :  { %10143 = vmatpush3.bf16.msra.mxu1 %v10388_v61  ;;  %v12667_v61 = vld [vmem:[#allocation8 + $0x8] sm:$0xff] }
 0x92a   :  { %10144 = vmatprep.subr.bf16.mxu1 %v12280_v0  ;;  %v12671_v63 = vrot.slane %v12667_v61, %v12653_v16 }
 0x92d   :  { %10145 = vmatpush3.bf16.msra.mxu1 %v10389_v62  ;;  %v10528_v62 = vld [vmem:[#allocation19 + $0x18] sm:$0xff]  }
 0x92e   :  { %10150 = vmatprep.subr.bf16.mxu1 %v12280_v0  ;;  %10157 = vmatpush3.bf16.msra.mxu0 %v10528_v62  ;;  %v10500_v62 = vld [vmem:[#allocation22 + $0x864] ss:$16 sps:$4 sm:$0xff]  }
 0x92f   :  { %10158 = vmatprep.subr.bf16.mxu0 %v12280_v0 }
 0x930   :  { %10147 = vmatmul.mubr.msk.bf16.vlgmr.msra.gmra.mxu1 %vm688_vm9, %v12618_v7 }
 0x931   :  { %10152 = vmatprep.mubr.msk.bf16.mxu1 %vm12281_vm1, %v12280_v0 }
 0x9e0   :  { %v1641_v3 = vpop.f32.mrf.mxu1 }
 0x9e2   :  { %v10136_v4 = vpop.f32.mrf.mxu1 }
 0x9e3   :  { %v10435_v4 = vld [vmem:[#allocation22 + $0x100] ss:$16 sps:$4 sm:$0xff]  }
 0x9e4   :  { %v1644_v5 = vpop.f32.mrf.mxu1 }
 0x9e6   :  { %v10137_v6 = vpop.f32.mrf.mxu1 }
 0x9e7   :  { %v10440_v6 = vld [vmem:[#allocation22 + $0x4e4] ss:$16 sps:$4 sm:$0xff]  }
 0x9f0   :  { %v1726_v7 = vpop.f32.mrf.mxu1 }
 0x9f1   :  { %v1727_v12 = vadd.f32 %v8956_v10, %v1726_v7  ;;  %v10443_v7 = vld [vmem:[#allocation22 + $0x4c4] ss:$16 sps:$4 sm:$0xff]  }
 0x9f2   :  { %v10148_v13 = vpop.f32.mrf.mxu1 }
 0x9f3   :  { %v1733_v15 = vadd.f32 %v1727_v12, %v1641_v3  ;;  %v10532_v3 = vld [vmem:[#allocation19 + $0x10] sm:$0xff]   ;;  %v10540_v12 = vld [vmem:[#allocation19] sm:$0xff]  }
 0x9f4   :  { %v1729_v17 = vpop.f32.mrf.mxu1  ;;  %10159 = vmatpush3.bf16.msra.mxu0 %v10532_v3  ;;  %v10441_v13 = vld [vmem:[#allocation22 + $0x4c0] ss:$16 sps:$4 sm:$0xff]   ;;  %v10506_v3 = vld [vmem:[#allocation22 + $0x824] ss:$16 sps:$4 sm:$0xff]  }
 0x9f5   :  { %v1730_v39 = vadd.f32 %v8956_v10, %v1729_v17  ;;  %v1735_v20 = vmul.f32 0.999995, %v1733_v15  ;;  %10160 = vmatprep.subr.bf16.mxu0 %v12280_v0  ;;  %v10438_v10 = vld [vmem:[#allocation22 + $0x4e0] ss:$16 sps:$4 sm:$0xff]   ;;  %v10446_v15 = vld [vmem:[#allocation22 + $0x4a4] ss:$16 sps:$4 sm:$0xff]  }
 0x9f6   :  { %v10149_v19 = vpop.f32.mrf.mxu1  ;;  %v10543_v17 = vld [vmem:[#allocation22 + $0x2e4] ss:$16 sps:$4 sm:$0xff]  }
 0x9f7   :  { %v1734_v21 = vadd.f32 %v1730_v39, %v1644_v5  ;;  %v1737_v24 = vmax.f32 %v1735_v20, 0.0  ;;  %v2721_v5 = vcombine.high %v12671_v63, %v12671_v63  ;;  %v10444_v39 = vld [vmem:[#allocation22 + $0x4a0] ss:$16 sps:$4 sm:$0xff]   ;;  %v10449_v19 = vld [vmem:[#allocation22 + $0x484] ss:$16 sps:$4 sm:$0xff]  }
 0x9f8   :  { %10161 = vmatpush3.bf16.msra.mxu0 %v10536_v8  ;;  %v10447_v20 = vld [vmem:[#allocation22 + $0x480] ss:$16 sps:$4 sm:$0xff]   ;;  %v10512_v8 = vld [vmem:[#allocation22 + $0x9e4] ss:$16 sps:$4 sm:$0xff]  }
 0x9f9   :  { %v1736_v23 = vmul.f32 0.999995, %v1734_v21  ;;  %v12681_v11 = vpack.c.bf16 %v2721_v5, %v2721_v5  ;;  %10162 = vmatprep.subr.bf16.mxu0 %v12280_v0  ;;  %v10452_v21 = vld [vmem:[#allocation22 + $0x464] ss:$16 sps:$4 sm:$0xff]  }
 0x9fa   :  { %v10509_v5 = vld [vmem:[#allocation22 + $0x804] ss:$16 sps:$4 sm:$0xff]  }
 0x9fb   :  { %v1738_v26 = vmax.f32 %v1736_v23, 0.0  ;;  %v10455_v23 = vld [vmem:[#allocation22 + $0x444] ss:$16 sps:$4 sm:$0xff]  }
 0x9fc   :  { %10163 = vmatpush3.bf16.msra.mxu0 %v10540_v12  ;;  %v10513_v12 = vld [vmem:[#allocation22 + $0x9c0] ss:$16 sps:$4 sm:$0xff]  }
 0x9fd   :  { %v1739_v28 = vpack.c.bf16 %v1738_v26, %v1737_v24  ;;  %6911 = vmatprep.subr.bf16.mxu0 %v10543_v17  ;;  %v10453_v24 = vld [vmem:[#allocation22 + $0x440] ss:$16 sps:$4 sm:$0xff]   ;;  %v10458_v26 = vld [vmem:[#allocation22 + $0x424] ss:$16 sps:$4 sm:$0xff]  }
 0x9fe   :  { %v10521_v17 = vld [vmem:[#allocation22 + $0x984] ss:$16 sps:$4 sm:$0xff]  }
 0x9ff   :  { %10151 = vmatpush3.bf16.msra.mxu1 %v1739_v28  ;;  %v10459_v28 = vld [vmem:[#allocation22 + $0x400] ss:$16 sps:$4 sm:$0xff]  }
 0xa00   :  { %6870 = vmatprep.subr.bf16.mxu1 %v10392_v27  ;;  %v10461_v27 = vld [vmem:[#allocation22 + $0x404] ss:$16 sps:$4 sm:$0xff]  }
 0xa02   :  { %10153 = vmatmul.mubr.msk.bf16.vlgmr.msra.gmra.mxu1 %vm574_vm8, %v1740_v30  ;;  %v10464_v30 = vld [vmem:[#allocation22 + $0x5e4] ss:$16 sps:$4 sm:$0xff]  }
 0xa03   :  { %6871 = vmatpush1.bf16.msra.mxu1 %v10390_v31  ;;  %6902 = vmatprep.mubr.bf16.mxu1 %v12663_v32  ;;  %v10462_v31 = vld [vmem:[#allocation22 + $0x5e0] ss:$16 sps:$4 sm:$0xff]  }
 0xa04   :  { %6872 = vmatprep.subr.bf16.mxu1 %v10395_v34  ;;  %v10467_v34 = vld [vmem:[#allocation22 + $0x5c4] ss:$16 sps:$4 sm:$0xff]  }
 0xa07   :  { %6873 = vmatpush1.bf16.msra.mxu1 %v10393_v35  ;;  %v10465_v35 = vld [vmem:[#allocation22 + $0x5c0] ss:$16 sps:$4 sm:$0xff]  }
 0xa08   :  { %6874 = vmatprep.subr.bf16.mxu1 %v10398_v37  ;;  %v10470_v37 = vld [vmem:[#allocation22 + $0x5a4] ss:$16 sps:$4 sm:$0xff]  }
 0xa0b   :  { %6875 = vmatpush1.bf16.msra.mxu1 %v10396_v38  ;;  %v10468_v38 = vld [vmem:[#allocation22 + $0x5a0] ss:$16 sps:$4 sm:$0xff]  }
 0xa0c   :  { %6876 = vmatprep.subr.bf16.mxu1 %v10401_v40  ;;  %v10473_v40 = vld [vmem:[#allocation22 + $0x584] ss:$16 sps:$4 sm:$0xff]  }
 0xa0f   :  { %6877 = vmatpush1.bf16.msra.mxu1 %v10399_v41  ;;  %v10471_v41 = vld [vmem:[#allocation22 + $0x580] ss:$16 sps:$4 sm:$0xff]  }
 0xa10   :  { %6878 = vmatprep.subr.bf16.mxu1 %v10404_v43  ;;  %v10476_v43 = vld [vmem:[#allocation22 + $0x564] ss:$16 sps:$4 sm:$0xff]  }
 0xa13   :  { %6879 = vmatpush1.bf16.msra.mxu1 %v10402_v44  ;;  %v10474_v44 = vld [vmem:[#allocation22 + $0x560] ss:$16 sps:$4 sm:$0xff]  }
 0xa14   :  { %6880 = vmatprep.subr.bf16.mxu1 %v10407_v45  ;;  %v10479_v45 = vld [vmem:[#allocation22 + $0x544] ss:$16 sps:$4 sm:$0xff]  }
 0xa17   :  { %6881 = vmatpush1.bf16.msra.mxu1 %v10405_v46  ;;  %v10477_v46 = vld [vmem:[#allocation22 + $0x540] ss:$16 sps:$4 sm:$0xff]  }
 0xa18   :  { %6882 = vmatprep.subr.bf16.mxu1 %v10410_v47  ;;  %v10482_v47 = vld [vmem:[#allocation22 + $0x524] ss:$16 sps:$4 sm:$0xff]  }
 0xa1b   :  { %6883 = vmatpush1.bf16.msra.mxu1 %v10408_v48  ;;  %v12686_v48 = vld [vmem:[#allocation8 + $0x10] sm:$0xff] }
 0xa1c   :  { %6884 = vmatprep.subr.bf16.mxu1 %v10413_v49  ;;  %v10480_v49 = vld [vmem:[#allocation22 + $0x520] ss:$16 sps:$4 sm:$0xff]  }
 0xa1f   :  { %6885 = vmatpush1.bf16.msra.mxu1 %v10411_v50  ;;  %v12690_v50 = vrot.slane %v12686_v48, %v12653_v16 }
 0xa20   :  { %6886 = vmatprep.subr.bf16.mxu1 %v10416_v51  ;;  %v10485_v51 = vld [vmem:[#allocation22 + $0x504] ss:$16 sps:$4 sm:$0xff]  }
 0xa23   :  { %6887 = vmatpush2.bf16.msra.mxu1 %v10414_v52  ;;  %v10483_v52 = vld [vmem:[#allocation22 + $0x500] ss:$16 sps:$4 sm:$0xff]  }
 0xa24   :  { %6888 = vmatprep.subr.bf16.mxu1 %v10419_v33  ;;  %v2738_v33 = vcombine.high %v12690_v50, %v12690_v50 }
 0xa27   :  { %6889 = vmatpush2.bf16.msra.mxu1 %v10417_v36  ;;  %v10488_v36 = vld [vmem:[#allocation22 + $0x8e4] ss:$16 sps:$4 sm:$0xff]  }
 0xa28   :  { %6890 = vmatprep.subr.bf16.mxu1 %v10422_v53  ;;  %v12696_v53 = vpack.c.bf16 %v12671_v63, %v12671_v63  ;;  %v10503_v63 = vld [vmem:[#allocation22 + $0x844] ss:$16 sps:$4 sm:$0xff]  }
 0xa2b   :  { %6891 = vmatpush2.bf16.msra.mxu1 %v10420_v42  ;;  %v10486_v42 = vld [vmem:[#allocation22 + $0x8e0] ss:$16 sps:$4 sm:$0xff]  }
 0xa2c   :  { %6892 = vmatprep.subr.bf16.mxu1 %v10425_v54  ;;  %v12698_v54 = vpack.c.bf16 %v2738_v33, %v2738_v33 }
 0xa2f   :  { %6893 = vmatpush2.bf16.msra.mxu1 %v10423_v55  ;;  %v10491_v55 = vld [vmem:[#allocation22 + $0x8c4] ss:$16 sps:$4 sm:$0xff]  }
 0xa30   :  { %6894 = vmatprep.subr.bf16.mxu1 %v10428_v56  ;;  %v10489_v56 = vld [vmem:[#allocation22 + $0x8c0] ss:$16 sps:$4 sm:$0xff]  }
 0xa33   :  { %6895 = vmatpush2.bf16.msra.mxu1 %v10426_v57  ;;  %v10494_v57 = vld [vmem:[#allocation22 + $0x8a4] ss:$16 sps:$4 sm:$0xff]  }
 0xa34   :  { %6896 = vmatprep.subr.bf16.mxu1 %v10431_v58  ;;  %v10492_v58 = vld [vmem:[#allocation22 + $0x8a0] ss:$16 sps:$4 sm:$0xff]  }
 0xa37   :  { %6897 = vmatpush2.bf16.msra.mxu1 %v10429_v59  ;;  %v10497_v59 = vld [vmem:[#allocation22 + $0x884] ss:$16 sps:$4 sm:$0xff]  }
 0xa38   :  { %6898 = vmatprep.subr.bf16.mxu1 %v10434_v60  ;;  %v10495_v60 = vld [vmem:[#allocation22 + $0x880] ss:$16 sps:$4 sm:$0xff]  }
 0xa3b   :  { %6899 = vmatpush2.bf16.msra.mxu1 %v10432_v29  ;;  %v10498_v29 = vld [vmem:[#allocation22 + $0x860] ss:$16 sps:$4 sm:$0xff]  }
 0xa3c   :  { %6900 = vmatprep.subr.bf16.mxu1 %v10437_v2  ;;  %v10501_v2 = vld [vmem:[#allocation22 + $0x840] ss:$16 sps:$4 sm:$0xff]  }
 0xa3f   :  { %6901 = vmatpush2.bf16.msra.mxu1 %v10435_v4  ;;  %v10504_v4 = vld [vmem:[#allocation22 + $0x820] ss:$16 sps:$4 sm:$0xff]  }
 0xa40   :  { %6952 = vmatprep.subr.bf16.mxu1 %v10440_v6  ;;  %v10507_v6 = vld [vmem:[#allocation22 + $0x800] ss:$16 sps:$4 sm:$0xff]  }
 0xa42   :  { %6903 = vmatmul.mubr.bf16.vlgmr.msra.gmra.mxu1 %v12679_v9 }
 0xa43   :  { %6953 = vmatpush1.bf16.msra.mxu1 %v10438_v10  ;;  %6984 = vmatprep.mubr.bf16.mxu1 %v12681_v11  ;;  %v10510_v10 = vld [vmem:[#allocation22 + $0x9e0] ss:$16 sps:$4 sm:$0xff]  }
 0xa44   :  { %6954 = vmatprep.subr.bf16.mxu1 %v10443_v7  ;;  %v10515_v7 = vld [vmem:[#allocation22 + $0x9c4] ss:$16 sps:$4 sm:$0xff]  }
 0xa47   :  { %6955 = vmatpush1.bf16.msra.mxu1 %v10441_v13  ;;  %v10518_v13 = vld [vmem:[#allocation22 + $0x9a4] ss:$16 sps:$4 sm:$0xff]  }
 0xa48   :  { %6956 = vmatprep.subr.bf16.mxu1 %v10446_v15  ;;  %v10516_v15 = vld [vmem:[#allocation22 + $0x9a0] ss:$16 sps:$4 sm:$0xff]  }
 0xa4b   :  { %6957 = vmatpush1.bf16.msra.mxu1 %v10444_v39  ;;  %v10519_v39 = vld [vmem:[#allocation22 + $0x980] ss:$16 sps:$4 sm:$0xff]  }
 0xa4c   :  { %6958 = vmatprep.subr.bf16.mxu1 %v10449_v19  ;;  %v1787_v19 = vpop.xlane.xlu0 %1786 }
 0xa4f   :  { %6959 = vmatpush1.bf16.msra.mxu1 %v10447_v20  ;;  %v10524_v20 = vld [vmem:[#allocation22 + $0x964] ss:$16 sps:$4 sm:$0xff]  }
 0xa50   :  { %6960 = vmatprep.subr.bf16.mxu1 %v10452_v21  ;;  %v1788_v21 = vmax.f32 %v1787_v19, 1.0  ;;  %v10580_v19 = vld [vmem:[#allocation22 + $0xc00] ss:$16 sps:$4 sm:$0xff]  }
 0xa52   :  { %11712 = vrcp.f32 %v1788_v21  ;;  %v10588_v21 = vld [vmem:[#allocation22 + $0xde4] ss:$16 sps:$4 sm:$0xff]  }
 0xa53   :  { %6961 = vmatpush1.bf16.msra.mxu1 %v10450_v22  ;;  %v10522_v22 = vld [vmem:[#allocation22 + $0x960] ss:$16 sps:$4 sm:$0xff]  }
 0xa54   :  { %6962 = vmatprep.subr.bf16.mxu1 %v10455_v23  ;;  %v10527_v23 = vld [vmem:[#allocation22 + $0x944] ss:$16 sps:$4 sm:$0xff]  }
 0xa57   :  { %6963 = vmatpush1.bf16.msra.mxu1 %v10453_v24  ;;  %v10525_v24 = vld [vmem:[#allocation22 + $0x940] ss:$16 sps:$4 sm:$0xff]  }
 0xa58   :  { %6964 = vmatprep.subr.bf16.mxu1 %v10458_v26  ;;  %v10531_v26 = vld [vmem:[#allocation22 + $0x924] ss:$16 sps:$4 sm:$0xff]  }
 0xa5b   :  { %6965 = vmatpush1.bf16.msra.mxu1 %v10456_v25  ;;  %v12702_v25 = vld [vmem:[#allocation8 + $0x18] sm:$0xff] }
 0xa5c   :  { %6966 = vmatprep.subr.bf16.mxu1 %v10461_v27  ;;  %v10529_v27 = vld [vmem:[#allocation22 + $0x920] ss:$16 sps:$4 sm:$0xff]  }
 0xa5f   :  { %6967 = vmatpush1.bf16.msra.mxu1 %v10459_v28  ;;  %v12706_v28 = vrot.slane %v12702_v25, %v12653_v16 }
 0xa60   :  { %6968 = vmatprep.subr.bf16.mxu1 %v10464_v30  ;;  %v10535_v30 = vld [vmem:[#allocation22 + $0x904] ss:$16 sps:$4 sm:$0xff]  }
 0xa63   :  { %6969 = vmatpush2.bf16.msra.mxu1 %v10462_v31  ;;  %v2689_v31 = vcombine.high %v12655_v18, %v12655_v18  ;;  %v10546_v18 = vld [vmem:[#allocation22 + $0xcc4] ss:$16 sps:$4 sm:$0xff]  }
 0xa64   :  { %6970 = vmatprep.subr.bf16.mxu1 %v10467_v34  ;;  %v10533_v34 = vld [vmem:[#allocation22 + $0x900] ss:$16 sps:$4 sm:$0xff]  }
 0xa67   :  { %6971 = vmatpush2.bf16.msra.mxu1 %v10465_v35  ;;  %v2755_v35 = vcombine.high %v12706_v28, %v12706_v28 }
 0xa68   :  { %6972 = vmatprep.subr.bf16.mxu1 %v10470_v37  ;;  %v10539_v37 = vld [vmem:[#allocation22 + $0xce4] ss:$16 sps:$4 sm:$0xff]  }
 0xa6b   :  { %6973 = vmatpush2.bf16.msra.mxu1 %v10468_v38  ;;  %v12713_v38 = vrot.slane %v2689_v31, %v12653_v16  ;;  %v10589_v31 = vld [vmem:[#allocation22 + $0x3e0] ss:$16 sps:$4 sm:$0xff]  }
 0xa6c   :  { %6974 = vmatprep.subr.bf16.mxu1 %v10473_v40  ;;  %v12717_v40 = vpack.c.bf16 %v12690_v50, %v12690_v50 }
 0xa6f   :  { %6975 = vmatpush2.bf16.msra.mxu1 %v10471_v41  ;;  %v10537_v41 = vld [vmem:[#allocation22 + $0xce0] ss:$16 sps:$4 sm:$0xff]  }
 0xa70   :  { %6976 = vmatprep.subr.bf16.mxu1 %v10476_v43  ;;  %v12719_v43 = vpack.c.bf16 %v2755_v35, %v2755_v35  ;;  %v10597_v35 = vld [vmem:[#allocation22 + $0x3c4] ss:$16 sps:$4 sm:$0xff]  }
 0xa73   :  { %6977 = vmatpush2.bf16.msra.mxu1 %v10474_v44  ;;  %v11713_v44 = vpop.eup %11712 }
 0xa74   :  { %6978 = vmatprep.subr.bf16.mxu1 %v10479_v45  ;;  %v2705_v45 = vcombine.high %v12713_v38, %v12713_v38 }
 0xa77   :  { %6979 = vmatpush2.bf16.msra.mxu1 %v10477_v46 }
 0xa78   :  { %6980 = vmatprep.subr.bf16.mxu1 %v10482_v47 }
 0xa7b   :  { %6981 = vmatpush2.bf16.msra.mxu1 %v10480_v49  ;;  %v10544_v49 = vld [vmem:[#allocation22 + $0xcc0] ss:$16 sps:$4 sm:$0xff]  }
 0xa7c   :  { %6982 = vmatprep.subr.bf16.mxu1 %v10485_v51  ;;  %v10541_v51 = vld [vmem:[#allocation22 + $0x2e0] ss:$16 sps:$4 sm:$0xff]  }
 0xa7f   :  { %6983 = vmatpush2.bf16.msra.mxu1 %v10483_v52  ;;  %v10552_v52 = vld [vmem:[#allocation22 + $0xca4] ss:$16 sps:$4 sm:$0xff]  }
 0xa80   :  { %7034 = vmatprep.subr.bf16.mxu1 %v10488_v36  ;;  %v10549_v36 = vld [vmem:[#allocation22 + $0x2c4] ss:$16 sps:$4 sm:$0xff]  }
 0xa82   :  { %6985 = vmatmul.mubr.bf16.vlgmr.msra.gmra.mxu1 %v12696_v53 }
 0xa83   :  { %7035 = vmatpush1.bf16.msra.mxu1 %v10486_v42  ;;  %7066 = vmatprep.mubr.bf16.mxu1 %v12698_v54  ;;  %v12725_v42 = vpack.c.bf16 %v2705_v45, %v2705_v45  ;;  %v10604_v45 = vld [vmem:[#allocation22 + $0xd80] ss:$16 sps:$4 sm:$0xff]  }
 0xa84   :  { %7036 = vmatprep.subr.bf16.mxu1 %v10491_v55 }
 0xa87   :  { %7037 = vmatpush1.bf16.msra.mxu1 %v10489_v56  ;;  %v10550_v56 = vld [vmem:[#allocation22 + $0xca0] ss:$16 sps:$4 sm:$0xff]  }
 0xa88   :  { %7038 = vmatprep.subr.bf16.mxu1 %v10494_v57 }
 0xa8b   :  { %7039 = vmatpush1.bf16.msra.mxu1 %v10492_v58  ;;  %v10547_v58 = vld [vmem:[#allocation22 + $0x2c0] ss:$16 sps:$4 sm:$0xff]  }
 0xa8c   :  { %7040 = vmatprep.subr.bf16.mxu1 %v10497_v59  ;;  %v10558_v59 = vld [vmem:[#allocation22 + $0xc84] ss:$16 sps:$4 sm:$0xff]  }
 0xa8f   :  { %7041 = vmatpush1.bf16.msra.mxu1 %v10495_v60  ;;  %v10555_v60 = vld [vmem:[#allocation22 + $0x2a4] ss:$16 sps:$4 sm:$0xff]  }
 0xa90   :  { %7042 = vmatprep.subr.bf16.mxu1 %v10500_v62  ;;  %v10556_v62 = vld [vmem:[#allocation22 + $0xc80] ss:$16 sps:$4 sm:$0xff]  }
 0xa93   :  { %7043 = vmatpush1.bf16.msra.mxu1 %v10498_v29  ;;  %v10553_v29 = vld [vmem:[#allocation22 + $0x2a0] ss:$16 sps:$4 sm:$0xff]  }
 0xa94   :  { %7044 = vmatprep.subr.bf16.mxu1 %v10503_v63  ;;  %v10564_v63 = vld [vmem:[#allocation22 + $0xc64] ss:$16 sps:$4 sm:$0xff]  }
 0xa97   :  { %7045 = vmatpush1.bf16.msra.mxu1 %v10501_v2  ;;  %v10561_v2 = vld [vmem:[#allocation22 + $0x284] ss:$16 sps:$4 sm:$0xff]  }
 0xa98   :  { %7046 = vmatprep.subr.bf16.mxu1 %v10506_v3  ;;  %v10562_v3 = vld [vmem:[#allocation22 + $0xc60] ss:$16 sps:$4 sm:$0xff]  }
 0xa9b   :  { %7047 = vmatpush1.bf16.msra.mxu1 %v10504_v4  ;;  %v10559_v4 = vld [vmem:[#allocation22 + $0x280] ss:$16 sps:$4 sm:$0xff]  }
 0xa9c   :  { %7048 = vmatprep.subr.bf16.mxu1 %v10509_v5  ;;  %v10570_v5 = vld [vmem:[#allocation22 + $0xc44] ss:$16 sps:$4 sm:$0xff]  }
 0xa9f   :  { %7049 = vmatpush1.bf16.msra.mxu1 %v10507_v6  ;;  %v10567_v6 = vld [vmem:[#allocation22 + $0x264] ss:$16 sps:$4 sm:$0xff]  }
 0xaa0   :  { %7050 = vmatprep.subr.bf16.mxu1 %v10512_v8  ;;  %v10568_v8 = vld [vmem:[#allocation22 + $0xc40] ss:$16 sps:$4 sm:$0xff]  }
 0xaa3   :  { %7051 = vmatpush2.bf16.msra.mxu1 %v10510_v10  ;;  %v10565_v10 = vld [vmem:[#allocation22 + $0x260] ss:$16 sps:$4 sm:$0xff]  }
 0xaa4   :  { %7052 = vmatprep.subr.bf16.mxu1 %v10515_v7  ;;  %v10576_v7 = vld [vmem:[#allocation22 + $0xc24] ss:$16 sps:$4 sm:$0xff]  }
 0xaa7   :  { %7053 = vmatpush2.bf16.msra.mxu1 %v10513_v12  ;;  %v10573_v12 = vld [vmem:[#allocation22 + $0x244] ss:$16 sps:$4 sm:$0xff]  }
 0xaa8   :  { %7054 = vmatprep.subr.bf16.mxu1 %v10518_v13  ;;  %v10574_v13 = vld [vmem:[#allocation22 + $0xc20] ss:$16 sps:$4 sm:$0xff]  }
 0xaab   :  { %7055 = vmatpush2.bf16.msra.mxu1 %v10516_v15  ;;  %v10571_v15 = vld [vmem:[#allocation22 + $0x240] ss:$16 sps:$4 sm:$0xff]  }
 0xaac   :  { %7056 = vmatprep.subr.bf16.mxu1 %v10521_v17  ;;  %v10582_v17 = vld [vmem:[#allocation22 + $0xc04] ss:$16 sps:$4 sm:$0xff]  }
 0xaaf   :  { %7057 = vmatpush2.bf16.msra.mxu1 %v10519_v39  ;;  %v10579_v39 = vld [vmem:[#allocation22 + $0x224] ss:$16 sps:$4 sm:$0xff]  }
 0xab0   :  { %7058 = vmatprep.subr.bf16.mxu1 %v10524_v20  ;;  %v10577_v20 = vld [vmem:[#allocation22 + $0x220] ss:$16 sps:$4 sm:$0xff]  }
 0xab3   :  { %7059 = vmatpush2.bf16.msra.mxu1 %v10522_v22  ;;  %v10585_v22 = vld [vmem:[#allocation22 + $0x204] ss:$16 sps:$4 sm:$0xff]  }
 0xab4   :  { %7060 = vmatprep.subr.bf16.mxu1 %v10527_v23  ;;  %v10586_v23 = vld [vmem:[#allocation22 + $0xde0] ss:$16 sps:$4 sm:$0xff]  }
 0xab7   :  { %7061 = vmatpush2.bf16.msra.mxu1 %v10525_v24  ;;  %v10583_v24 = vld [vmem:[#allocation22 + $0x200] ss:$16 sps:$4 sm:$0xff]  }
 0xab8   :  { %7062 = vmatprep.subr.bf16.mxu1 %v10531_v26  ;;  %v10594_v26 = vld [vmem:[#allocation22 + $0xdc4] ss:$16 sps:$4 sm:$0xff]  }
 0xabb   :  { %7063 = vmatpush2.bf16.msra.mxu1 %v10529_v27  ;;  %v10591_v27 = vld [vmem:[#allocation22 + $0x3e4] ss:$16 sps:$4 sm:$0xff]  }
 0xabc   :  { %7064 = vmatprep.subr.bf16.mxu1 %v10535_v30  ;;  %v10592_v30 = vld [vmem:[#allocation22 + $0xdc0] ss:$16 sps:$4 sm:$0xff]  }
 0xabf   :  { %7065 = vmatpush2.bf16.msra.mxu1 %v10533_v34  ;;  %v10600_v34 = vld [vmem:[#allocation22 + $0xda4] ss:$16 sps:$4 sm:$0xff]  }
 0xac0   :  { %7116 = vmatprep.subr.bf16.mxu1 %v10539_v37  ;;  %v10598_v37 = vld [vmem:[#allocation22 + $0xda0] ss:$16 sps:$4 sm:$0xff]  }
 0xac2   :  { %v1778_v46 = vpop.f32.mrf.mxu1  ;;  %7067 = vmatmul.mubr.bf16.vlgmr.msra.gmra.mxu1 %v12717_v40 }
 0xac3   :  { %v1790_v47 = vmul.f32 %v11713_v44, %v1778_v46  ;;  %7117 = vmatpush1.bf16.msra.mxu1 %v10537_v41  ;;  %7148 = vmatprep.mubr.bf16.mxu1 %v12719_v43  ;;  %v10595_v41 = vld [vmem:[#allocation22 + $0x3c0] ss:$16 sps:$4 sm:$0xff]   ;;  %v10606_v44 = vld [vmem:[#allocation22 + $0xd84] ss:$16 sps:$4 sm:$0xff]  }
 0xac4   :  { %v10154_v50 = vpop.f32.mrf.mxu1  ;;  %7118 = vmatprep.subr.bf16.mxu1 %v10546_v18  ;;  %v10603_v18 = vld [vmem:[#allocation22 + $0x3a4] ss:$16 sps:$4 sm:$0xff]   ;;  %v10601_v46 = vld [vmem:[#allocation22 + $0x3a0] ss:$16 sps:$4 sm:$0xff]  }
 0xac5   :  { %v1799_v33 = vpack.c.bf16 %v1790_v47, %v1790_v47  ;;  %v10612_v47 = vld [vmem:[#allocation22 + $0xd64] ss:$16 sps:$4 sm:$0xff]   ;;  %v10610_v50 = vld [vmem:[#allocation22 + $0xd60] ss:$16 sps:$4 sm:$0xff]  }
 0xac6   :  { %v1781_v55 = vpop.f32.mrf.mxu1 }
 0xac7   :  { %10165 = vmatmul.mubr.msk.bf16.vlgmr.msra.gmra.mxu0 %vm688_vm9, %v1799_v33  ;;  %7119 = vmatpush1.bf16.msra.mxu1 %v10544_v49  ;;  %v10609_v49 = vld [vmem:[#allocation22 + $0x384] ss:$16 sps:$4 sm:$0xff]   ;;  %v10613_v55 = vld [vmem:[#allocation22 + $0x360] ss:$16 sps:$4 sm:$0xff]  }
 0xac8   :  { %6912 = vmatpush1.bf16.msra.mxu0 %v10541_v51  ;;  %v10155_v57 = vpop.f32.mrf.mxu1  ;;  %7120 = vmatprep.subr.bf16.mxu1 %v10552_v52  ;;  %v10607_v51 = vld [vmem:[#allocation22 + $0x380] ss:$16 sps:$4 sm:$0xff]   ;;  %v10618_v52 = vld [vmem:[#allocation22 + $0xd44] ss:$16 sps:$4 sm:$0xff]  }
 0xac9   :  { %6913 = vmatprep.subr.bf16.mxu0 %v10549_v36  ;;  %6943 = vmatprep.mubr.bf16.mxu0 %v12725_v42  ;;  %v10615_v33 = vld [vmem:[#allocation22 + $0x364] ss:$16 sps:$4 sm:$0xff]   ;;  %v10616_v36 = vld [vmem:[#allocation22 + $0xd40] ss:$16 sps:$4 sm:$0xff]  }
 0xaca   :  { %v12729_v57 = vld [vmem:[#allocation8 + $0x20] sm:$0xff] }
 0xacb   :  { %7121 = vmatpush1.bf16.msra.mxu1 %v10550_v56  ;;  %v10624_v56 = vld [vmem:[#allocation22 + $0xd24] ss:$16 sps:$4 sm:$0xff]  }
 0xacc   :  { %6914 = vmatpush1.bf16.msra.mxu0 %v10547_v58  ;;  %7122 = vmatprep.subr.bf16.mxu1 %v10558_v59  ;;  %v10621_v58 = vld [vmem:[#allocation22 + $0x344] ss:$16 sps:$4 sm:$0xff]   ;;  %v10622_v59 = vld [vmem:[#allocation22 + $0xd20] ss:$16 sps:$4 sm:$0xff]  }
 0xacd   :  { %6915 = vmatprep.subr.bf16.mxu0 %v10555_v60  ;;  %v12733_v60 = vrot.slane %v12729_v57, %v12653_v16 }
 0xacf   :  { %7123 = vmatpush1.bf16.msra.mxu1 %v10556_v62  ;;  %v10619_v62 = vld [vmem:[#allocation22 + $0x340] ss:$16 sps:$4 sm:$0xff]  }
 0xad0   :  { %6916 = vmatpush1.bf16.msra.mxu0 %v10553_v29  ;;  %7124 = vmatprep.subr.bf16.mxu1 %v10564_v63  ;;  %v10630_v29 = vld [vmem:[#allocation22 + $0xd04] ss:$16 sps:$4 sm:$0xff]  }
 0xad1   :  { %6917 = vmatprep.subr.bf16.mxu0 %v10561_v2  ;;  %v10627_v63 = vld [vmem:[#allocation22 + $0x324] ss:$16 sps:$4 sm:$0xff]   ;;  %v2706_v2 = vcombine.high %v12667_v61, %v12667_v61  ;;  %v10634_v61 = vld [vmem:[#allocation22 + $0x10e0] ss:$16 sps:$4 sm:$0xff]  }
 0xad3   :  { %7125 = vmatpush1.bf16.msra.mxu1 %v10562_v3  ;;  %v10628_v3 = vld [vmem:[#allocation22 + $0xd00] ss:$16 sps:$4 sm:$0xff]  }
 0xad4   :  { %6918 = vmatpush1.bf16.msra.mxu0 %v10559_v4  ;;  %7126 = vmatprep.subr.bf16.mxu1 %v10570_v5  ;;  %v2772_v4 = vcombine.high %v12733_v60, %v12733_v60  ;;  %v10625_v5 = vld [vmem:[#allocation22 + $0x320] ss:$16 sps:$4 sm:$0xff]  }
 0xad5   :  { %6919 = vmatprep.subr.bf16.mxu0 %v10567_v6  ;;  %v10636_v6 = vld [vmem:[#allocation22 + $0x10e4] ss:$16 sps:$4 sm:$0xff]  }
 0xad7   :  { %7127 = vmatpush1.bf16.msra.mxu1 %v10568_v8  ;;  %v10633_v8 = vld [vmem:[#allocation22 + $0x304] ss:$16 sps:$4 sm:$0xff]  }
 0xad8   :  { %6920 = vmatpush1.bf16.msra.mxu0 %v10565_v10  ;;  %7128 = vmatprep.subr.bf16.mxu1 %v10576_v7  ;;  %v12740_v10 = vrot.slane %v2706_v2, %v12653_v16  ;;  %v12744_v7 = vpack.c.bf16 %v12706_v28, %v12706_v28  ;;  %v12753_v28 = vpack.c.bf16 %v12713_v38, %v12713_v38  ;;  %v10655_v38 = vld [vmem:[#allocation22 + $0x1084] ss:$16 sps:$4 sm:$0xff]   ;;  %v10689_v2 = vld [vmem:[#allocation22 + $0x11c0] ss:$16 sps:$4 sm:$0xff]  }
 0xad9   :  { %6921 = vmatprep.subr.bf16.mxu0 %v10573_v12  ;;  %v12746_v12 = vpack.c.bf16 %v2772_v4, %v2772_v4  ;;  %v10697_v4 = vld [vmem:[#allocation22 + $0x11a4] ss:$16 sps:$4 sm:$0xff]  }
 0xadb   :  { %7129 = vmatpush1.bf16.msra.mxu1 %v10574_v13  ;;  %v10631_v13 = vld [vmem:[#allocation22 + $0x300] ss:$16 sps:$4 sm:$0xff]  }
 0xadc   :  { %6922 = vmatpush1.bf16.msra.mxu0 %v10571_v15  ;;  %7130 = vmatprep.subr.bf16.mxu1 %v10582_v17  ;;  %v10643_v15 = vld [vmem:[#allocation22 + $0x10c4] ss:$16 sps:$4 sm:$0xff]  }
 0xadd   :  { %6923 = vmatprep.subr.bf16.mxu0 %v10579_v39  ;;  %v10640_v17 = vld [vmem:[#allocation22 + $0x6e4] ss:$16 sps:$4 sm:$0xff]   ;;  %v2722_v39 = vcombine.high %v12740_v10, %v12740_v10 }
 0xadf   :  { %7131 = vmatpush1.bf16.msra.mxu1 %v10580_v19  ;;  %v10641_v19 = vld [vmem:[#allocation22 + $0x10c0] ss:$16 sps:$4 sm:$0xff]  }
 0xae0   :  { %6924 = vmatpush1.bf16.msra.mxu0 %v10577_v20  ;;  %7132 = vmatprep.subr.bf16.mxu1 %v10588_v21  ;;  %v10638_v20 = vld [vmem:[#allocation22 + $0x6e0] ss:$16 sps:$4 sm:$0xff]   ;;  %v10649_v21 = vld [vmem:[#allocation22 + $0x10a4] ss:$16 sps:$4 sm:$0xff]  }
 0xae1   :  { %6925 = vmatprep.subr.bf16.mxu0 %v10585_v22  ;;  %v10646_v22 = vld [vmem:[#allocation22 + $0x6c4] ss:$16 sps:$4 sm:$0xff]  }
 0xae3   :  { %7133 = vmatpush2.bf16.msra.mxu1 %v10586_v23  ;;  %v12756_v23 = vpack.c.bf16 %v2722_v39, %v2722_v39  ;;  %v10709_v39 = vld [vmem:[#allocation22 + $0x1164] ss:$16 sps:$4 sm:$0xff]  }
 0xae4   :  { %6926 = vmatpush1.bf16.msra.mxu0 %v10583_v24  ;;  %7134 = vmatprep.subr.bf16.mxu1 %v10594_v26  ;;  %v10647_v24 = vld [vmem:[#allocation22 + $0x10a0] ss:$16 sps:$4 sm:$0xff]  }
 0xae5   :  { %6927 = vmatprep.subr.bf16.mxu0 %v10591_v27  ;;  %v10644_v26 = vld [vmem:[#allocation22 + $0x6c0] ss:$16 sps:$4 sm:$0xff]   ;;  %v10652_v27 = vld [vmem:[#allocation22 + $0x6a4] ss:$16 sps:$4 sm:$0xff]  }
 0xae7   :  { %7135 = vmatpush2.bf16.msra.mxu1 %v10592_v30  ;;  %v10653_v30 = vld [vmem:[#allocation22 + $0x1080] ss:$16 sps:$4 sm:$0xff]  }
 0xae8   :  { %6928 = vmatpush2.bf16.msra.mxu0 %v10589_v31  ;;  %7136 = vmatprep.subr.bf16.mxu1 %v10600_v34  ;;  %v10650_v31 = vld [vmem:[#allocation22 + $0x6a0] ss:$16 sps:$4 sm:$0xff]   ;;  %v10661_v34 = vld [vmem:[#allocation22 + $0x1064] ss:$16 sps:$4 sm:$0xff]  }
 0xae9   :  { %6929 = vmatprep.subr.bf16.mxu0 %v10597_v35  ;;  %v10658_v35 = vld [vmem:[#allocation22 + $0x684] ss:$16 sps:$4 sm:$0xff]  }
 0xaeb   :  { %7137 = vmatpush2.bf16.msra.mxu1 %v10598_v37  ;;  %v10659_v37 = vld [vmem:[#allocation22 + $0x1060] ss:$16 sps:$4 sm:$0xff]  }
 0xaec   :  { %6930 = vmatpush2.bf16.msra.mxu0 %v10595_v41  ;;  %7138 = vmatprep.subr.bf16.mxu1 %v10606_v44  ;;  %v10656_v41 = vld [vmem:[#allocation22 + $0x680] ss:$16 sps:$4 sm:$0xff]   ;;  %v10667_v44 = vld [vmem:[#allocation22 + $0x1044] ss:$16 sps:$4 sm:$0xff]  }
 0xaed   :  { %6931 = vmatprep.subr.bf16.mxu0 %v10603_v18  ;;  %v10664_v18 = vld [vmem:[#allocation22 + $0x664] ss:$16 sps:$4 sm:$0xff]  }
 0xaef   :  { %7139 = vmatpush2.bf16.msra.mxu1 %v10604_v45  ;;  %v10665_v45 = vld [vmem:[#allocation22 + $0x1040] ss:$16 sps:$4 sm:$0xff]  }
 0xaf0   :  { %6932 = vmatpush2.bf16.msra.mxu0 %v10601_v46  ;;  %7140 = vmatprep.subr.bf16.mxu1 %v10612_v47  ;;  %v10662_v46 = vld [vmem:[#allocation22 + $0x660] ss:$16 sps:$4 sm:$0xff]   ;;  %v10673_v47 = vld [vmem:[#allocation22 + $0x1024] ss:$16 sps:$4 sm:$0xff]  }
 0xaf1   :  { %6933 = vmatprep.subr.bf16.mxu0 %v10609_v49  ;;  %v10670_v49 = vld [vmem:[#allocation22 + $0x644] ss:$16 sps:$4 sm:$0xff]  }
 0xaf3   :  { %7141 = vmatpush2.bf16.msra.mxu1 %v10610_v50  ;;  %v10671_v50 = vld [vmem:[#allocation22 + $0x1020] ss:$16 sps:$4 sm:$0xff]  }
 0xaf4   :  { %6934 = vmatpush2.bf16.msra.mxu0 %v10607_v51  ;;  %7142 = vmatprep.subr.bf16.mxu1 %v10618_v52  ;;  %v10668_v51 = vld [vmem:[#allocation22 + $0x640] ss:$16 sps:$4 sm:$0xff]   ;;  %v10679_v52 = vld [vmem:[#allocation22 + $0x1004] ss:$16 sps:$4 sm:$0xff]  }
 0xaf5   :  { %6935 = vmatprep.subr.bf16.mxu0 %v10615_v33  ;;  %v10676_v33 = vld [vmem:[#allocation22 + $0x624] ss:$16 sps:$4 sm:$0xff]  }
 0xaf7   :  { %7143 = vmatpush2.bf16.msra.mxu1 %v10616_v36  ;;  %v10677_v36 = vld [vmem:[#allocation22 + $0x1000] ss:$16 sps:$4 sm:$0xff]  }
 0xaf8   :  { %6936 = vmatpush2.bf16.msra.mxu0 %v10613_v55  ;;  %7144 = vmatprep.subr.bf16.mxu1 %v10624_v56  ;;  %v10674_v55 = vld [vmem:[#allocation22 + $0x620] ss:$16 sps:$4 sm:$0xff]   ;;  %v10685_v56 = vld [vmem:[#allocation22 + $0x11e4] ss:$16 sps:$4 sm:$0xff]  }
 0xaf9   :  { %6937 = vmatprep.subr.bf16.mxu0 %v10621_v58  ;;  %v10682_v58 = vld [vmem:[#allocation22 + $0x604] ss:$16 sps:$4 sm:$0xff]  }
 0xafb   :  { %7145 = vmatpush2.bf16.msra.mxu1 %v10622_v59  ;;  %v10683_v59 = vld [vmem:[#allocation22 + $0x11e0] ss:$16 sps:$4 sm:$0xff]  }
 0xafc   :  { %6938 = vmatpush2.bf16.msra.mxu0 %v10619_v62  ;;  %7146 = vmatprep.subr.bf16.mxu1 %v10630_v29  ;;  %v10680_v62 = vld [vmem:[#allocation22 + $0x600] ss:$16 sps:$4 sm:$0xff]   ;;  %v10691_v29 = vld [vmem:[#allocation22 + $0x11c4] ss:$16 sps:$4 sm:$0xff]  }
 0xafd   :  { %6939 = vmatprep.subr.bf16.mxu0 %v10627_v63  ;;  %v10688_v63 = vld [vmem:[#allocation22 + $0x7e4] ss:$16 sps:$4 sm:$0xff]  }
 0xaff   :  { %7147 = vmatpush2.bf16.msra.mxu1 %v10628_v3  ;;  %v10686_v3 = vld [vmem:[#allocation22 + $0x7e0] ss:$16 sps:$4 sm:$0xff]  }
 0xb00   :  { %6940 = vmatpush2.bf16.msra.mxu0 %v10625_v5  ;;  %7198 = vmatprep.subr.bf16.mxu1 %v10636_v6  ;;  %v10694_v5 = vld [vmem:[#allocation22 + $0x7c4] ss:$16 sps:$4 sm:$0xff]   ;;  %v10695_v6 = vld [vmem:[#allocation22 + $0x11a0] ss:$16 sps:$4 sm:$0xff]  }
 0xb01   :  { %6941 = vmatprep.subr.bf16.mxu0 %v10633_v8  ;;  %v10692_v8 = vld [vmem:[#allocation22 + $0x7c0] ss:$16 sps:$4 sm:$0xff]  }
 0xb02   :  { %7149 = vmatmul.mubr.bf16.vlgmr.msra.gmra.mxu1 %v12744_v7 }
 0xb03   :  { %7199 = vmatpush1.bf16.msra.mxu1 %v10634_v61  ;;  %7230 = vmatprep.mubr.bf16.mxu1 %v12746_v12  ;;  %v10703_v61 = vld [vmem:[#allocation22 + $0x1184] ss:$16 sps:$4 sm:$0xff]  }
 0xb04   :  { %6942 = vmatpush2.bf16.msra.mxu0 %v10631_v13  ;;  %7200 = vmatprep.subr.bf16.mxu1 %v10643_v15  ;;  %v10700_v13 = vld [vmem:[#allocation22 + $0x7a4] ss:$16 sps:$4 sm:$0xff]   ;;  %v10701_v15 = vld [vmem:[#allocation22 + $0x1180] ss:$16 sps:$4 sm:$0xff]  }
 0xb05   :  { %6993 = vmatprep.subr.bf16.mxu0 %v10640_v17  ;;  %v10698_v17 = vld [vmem:[#allocation22 + $0x7a0] ss:$16 sps:$4 sm:$0xff]  }
 0xb07   :  { %6944 = vmatmul.mubr.bf16.vlgmr.msra.gmra.mxu0 %v12753_v28  ;;  %7201 = vmatpush1.bf16.msra.mxu1 %v10641_v19  ;;  %v10706_v19 = vld [vmem:[#allocation22 + $0x784] ss:$16 sps:$4 sm:$0xff]  }
 0xb08   :  { %6994 = vmatpush1.bf16.msra.mxu0 %v10638_v20  ;;  %7202 = vmatprep.subr.bf16.mxu1 %v10649_v21  ;;  %v10707_v20 = vld [vmem:[#allocation22 + $0x1160] ss:$16 sps:$4 sm:$0xff]  }
 0xb09   :  { %6995 = vmatprep.subr.bf16.mxu0 %v10646_v22  ;;  %7025 = vmatprep.mubr.bf16.mxu0 %v12756_v23  ;;  %v10704_v21 = vld [vmem:[#allocation22 + $0x780] ss:$16 sps:$4 sm:$0xff]   ;;  %v10715_v22 = vld [vmem:[#allocation22 + $0x1144] ss:$16 sps:$4 sm:$0xff]  }
 0xb0b   :  { %7203 = vmatpush1.bf16.msra.mxu1 %v10647_v24  ;;  %v10712_v24 = vld [vmem:[#allocation22 + $0x764] ss:$16 sps:$4 sm:$0xff]  }
 0xb0c   :  { %6996 = vmatpush1.bf16.msra.mxu0 %v10644_v26  ;;  %7204 = vmatprep.subr.bf16.mxu1 %v10655_v38  ;;  %v10713_v26 = vld [vmem:[#allocation22 + $0x1140] ss:$16 sps:$4 sm:$0xff]  }
 0xb0d   :  { %6997 = vmatprep.subr.bf16.mxu0 %v10652_v27  ;;  %v10710_v38 = vld [vmem:[#allocation22 + $0x760] ss:$16 sps:$4 sm:$0xff]   ;;  %v10721_v27 = vld [vmem:[#allocation22 + $0x1124] ss:$16 sps:$4 sm:$0xff]  }
 0xb0f   :  { %7205 = vmatpush1.bf16.msra.mxu1 %v10653_v30  ;;  %v12760_v30 = vld [vmem:[#allocation8 + $0x28] sm:$0xff] }
 0xb10   :  { %6998 = vmatpush1.bf16.msra.mxu0 %v10650_v31  ;;  %7206 = vmatprep.subr.bf16.mxu1 %v10661_v34  ;;  %v10718_v31 = vld [vmem:[#allocation22 + $0x744] ss:$16 sps:$4 sm:$0xff]   ;;  %v10719_v34 = vld [vmem:[#allocation22 + $0x1120] ss:$16 sps:$4 sm:$0xff]  }
 0xb11   :  { %6999 = vmatprep.subr.bf16.mxu0 %v10658_v35  ;;  %v12764_v35 = vrot.slane %v12760_v30, %v12653_v16 }
 0xb13   :  { %7207 = vmatpush1.bf16.msra.mxu1 %v10659_v37  ;;  %v10716_v37 = vld [vmem:[#allocation22 + $0x740] ss:$16 sps:$4 sm:$0xff]  }
 0xb14   :  { %7000 = vmatpush1.bf16.msra.mxu0 %v10656_v41  ;;  %7208 = vmatprep.subr.bf16.mxu1 %v10667_v44  ;;  %v10727_v41 = vld [vmem:[#allocation22 + $0x1104] ss:$16 sps:$4 sm:$0xff]  }
 0xb15   :  { %7001 = vmatprep.subr.bf16.mxu0 %v10664_v18  ;;  %v10724_v44 = vld [vmem:[#allocation22 + $0x724] ss:$16 sps:$4 sm:$0xff]   ;;  %v2723_v18 = vcombine.high %v12686_v48, %v12686_v48  ;;  %v10731_v48 = vld [vmem:[#allocation22 + $0x14e0] ss:$16 sps:$4 sm:$0xff]  }
 0xb17   :  { %7209 = vmatpush1.bf16.msra.mxu1 %v10665_v45  ;;  %v10725_v45 = vld [vmem:[#allocation22 + $0x1100] ss:$16 sps:$4 sm:$0xff]  }
 0xb18   :  { %7002 = vmatpush1.bf16.msra.mxu0 %v10662_v46  ;;  %7210 = vmatprep.subr.bf16.mxu1 %v10673_v47  ;;  %v2789_v46 = vcombine.high %v12764_v35, %v12764_v35  ;;  %v10722_v47 = vld [vmem:[#allocation22 + $0x720] ss:$16 sps:$4 sm:$0xff]  }
 0xb19   :  { %7003 = vmatprep.subr.bf16.mxu0 %v10670_v49  ;;  %v10733_v49 = vld [vmem:[#allocation22 + $0x14e4] ss:$16 sps:$4 sm:$0xff]  }
 0xb1b   :  { %7211 = vmatpush1.bf16.msra.mxu1 %v10671_v50  ;;  %v10730_v50 = vld [vmem:[#allocation22 + $0x704] ss:$16 sps:$4 sm:$0xff]  }
 0xb1c   :  { %7004 = vmatpush1.bf16.msra.mxu0 %v10668_v51  ;;  %7212 = vmatprep.subr.bf16.mxu1 %v10679_v52  ;;  %v12771_v51 = vrot.slane %v2723_v18, %v12653_v16  ;;  %v12775_v52 = vpack.c.bf16 %v12733_v60, %v12733_v60  ;;  %v12788_v60 = vpack.c.bf16 %v12740_v10, %v12740_v10  ;;  %v10741_v10 = vld [vmem:[#allocation22 + $0xac0] ss:$16 sps:$4 sm:$0xff]  }
 0xb1d   :  { %7005 = vmatprep.subr.bf16.mxu0 %v10676_v33  ;;  %v12777_v33 = vpack.c.bf16 %v2789_v46, %v2789_v46  ;;  %v10768_v18 = vld [vmem:[#allocation22 + $0x1420] ss:$16 sps:$4 sm:$0xff]   ;;  %v10776_v46 = vld [vmem:[#allocation22 + $0x1404] ss:$16 sps:$4 sm:$0xff]  }
 0xb1f   :  { %7213 = vmatpush1.bf16.msra.mxu1 %v10677_v36  ;;  %v10728_v36 = vld [vmem:[#allocation22 + $0x700] ss:$16 sps:$4 sm:$0xff]  }
 0xb20   :  { %7006 = vmatpush1.bf16.msra.mxu0 %v10674_v55  ;;  %7214 = vmatprep.subr.bf16.mxu1 %v10685_v56  ;;  %v10740_v55 = vld [vmem:[#allocation22 + $0x14c4] ss:$16 sps:$4 sm:$0xff]   ;;  %v12779_v56 = vpop.f32.mrf.mxu1 }
 0xb21   :  { %7007 = vmatprep.subr.bf16.mxu0 %v10682_v58  ;;  %v10737_v58 = vld [vmem:[#allocation22 + $0xae4] ss:$16 sps:$4 sm:$0xff]  }
 0xb23   :  { %7215 = vmatpush2.bf16.msra.mxu1 %v10683_v59  ;;  %v2739_v59 = vcombine.high %v12771_v51, %v12771_v51 }
 0xb24   :  { %7008 = vmatpush1.bf16.msra.mxu0 %v10680_v62  ;;  %7216 = vmatprep.subr.bf16.mxu1 %v10691_v29  ;;  %v12784_v62 = vpop.f32.mrf.mxu1  ;;  %v10738_v29 = vld [vmem:[#allocation22 + $0x14c0] ss:$16 sps:$4 sm:$0xff]  }
 0xb25   :  { %7009 = vmatprep.subr.bf16.mxu0 %v10688_v63  ;;  %v10735_v63 = vld [vmem:[#allocation22 + $0xae0] ss:$16 sps:$4 sm:$0xff]  }
 0xb27   :  { %7217 = vmatpush2.bf16.msra.mxu1 %v10689_v2  ;;  %v10746_v2 = vld [vmem:[#allocation22 + $0x14a4] ss:$16 sps:$4 sm:$0xff]  }
 0xb28   :  { %7010 = vmatpush2.bf16.msra.mxu0 %v10686_v3  ;;  %7218 = vmatprep.subr.bf16.mxu1 %v10697_v4  ;;  %v6908_v3 = vpop.f32.mrf.mxu1  ;;  %v10743_v4 = vld [vmem:[#allocation22 + $0xac4] ss:$16 sps:$4 sm:$0xff]  }
 0xb29   :  { %7011 = vmatprep.subr.bf16.mxu0 %v10694_v5  ;;  %v12791_v5 = vpack.c.bf16 %v2739_v59, %v2739_v59  ;;  %v10788_v59 = vld [vmem:[#allocation22 + $0x15c4] ss:$16 sps:$4 sm:$0xff]  }
 0xb2a   :  { %v10794_v3 = vld [vmem:[#allocation22 + $0x15a4] ss:$16 sps:$4 sm:$0xff]  }
 0xb2b   :  { %7219 = vmatpush2.bf16.msra.mxu1 %v10695_v6  ;;  %v6909_v6 = vpop.f32.mrf.mxu1 }
 0xb2c   :  { %7012 = vmatpush2.bf16.msra.mxu0 %v10692_v8  ;;  %7220 = vmatprep.subr.bf16.mxu1 %v10703_v61  ;;  %v10744_v8 = vld [vmem:[#allocation22 + $0x14a0] ss:$16 sps:$4 sm:$0xff]   ;;  %v10752_v61 = vld [vmem:[#allocation22 + $0x1484] ss:$16 sps:$4 sm:$0xff]  }
 0xb2d   :  { %7013 = vmatprep.subr.bf16.mxu0 %v10700_v13  ;;  %v10749_v13 = vld [vmem:[#allocation22 + $0xaa4] ss:$16 sps:$4 sm:$0xff]   ;;  %v10792_v6 = vld [vmem:[#allocation22 + $0x15a0] ss:$16 sps:$4 sm:$0xff]  }
 0xb2f   :  { %7221 = vmatpush2.bf16.msra.mxu1 %v10701_v15 }
 0xb30   :  { %7014 = vmatpush2.bf16.msra.mxu0 %v10698_v17  ;;  %7222 = vmatprep.subr.bf16.mxu1 %v10709_v39  ;;  %v10750_v17 = vld [vmem:[#allocation22 + $0x1480] ss:$16 sps:$4 sm:$0xff]  }
 0xb31   :  { %7015 = vmatprep.subr.bf16.mxu0 %v10706_v19  ;;  %v10747_v19 = vld [vmem:[#allocation22 + $0xaa0] ss:$16 sps:$4 sm:$0xff]  }
 0xb33   :  { %7223 = vmatpush2.bf16.msra.mxu1 %v10707_v20  ;;  %v10758_v20 = vld [vmem:[#allocation22 + $0x1464] ss:$16 sps:$4 sm:$0xff]  }
 0xb34   :  { %7016 = vmatpush2.bf16.msra.mxu0 %v10704_v21  ;;  %7224 = vmatprep.subr.bf16.mxu1 %v10715_v22  ;;  %v10755_v21 = vld [vmem:[#allocation22 + $0xa84] ss:$16 sps:$4 sm:$0xff]  }
 0xb35   :  { %7017 = vmatprep.subr.bf16.mxu0 %v10712_v24  ;;  %v10756_v24 = vld [vmem:[#allocation22 + $0x1460] ss:$16 sps:$4 sm:$0xff]  }
 0xb37   :  { %7225 = vmatpush2.bf16.msra.mxu1 %v10713_v26 }
 0xb38   :  { %7018 = vmatpush2.bf16.msra.mxu0 %v10710_v38  ;;  %7226 = vmatprep.subr.bf16.mxu1 %v10721_v27  ;;  %v10753_v38 = vld [vmem:[#allocation22 + $0xa80] ss:$16 sps:$4 sm:$0xff]   ;;  %v10764_v27 = vld [vmem:[#allocation22 + $0x1444] ss:$16 sps:$4 sm:$0xff]  }
 0xb39   :  { %7019 = vmatprep.subr.bf16.mxu0 %v10718_v31  ;;  %v10761_v31 = vld [vmem:[#allocation22 + $0xa64] ss:$16 sps:$4 sm:$0xff]  }
 0xb3b   :  { %7227 = vmatpush2.bf16.msra.mxu1 %v10719_v34  ;;  %v10762_v34 = vld [vmem:[#allocation22 + $0x1440] ss:$16 sps:$4 sm:$0xff]  }
 0xb3c   :  { %7020 = vmatpush2.bf16.msra.mxu0 %v10716_v37  ;;  %7228 = vmatprep.subr.bf16.mxu1 %v10727_v41  ;;  %v10759_v37 = vld [vmem:[#allocation22 + $0xa60] ss:$16 sps:$4 sm:$0xff]   ;;  %v10770_v41 = vld [vmem:[#allocation22 + $0x1424] ss:$16 sps:$4 sm:$0xff]  }
 0xb3d   :  { %7021 = vmatprep.subr.bf16.mxu0 %v10724_v44  ;;  %v10767_v44 = vld [vmem:[#allocation22 + $0xa44] ss:$16 sps:$4 sm:$0xff]  }
 0xb3f   :  { %7229 = vmatpush2.bf16.msra.mxu1 %v10725_v45  ;;  %v10765_v45 = vld [vmem:[#allocation22 + $0xa40] ss:$16 sps:$4 sm:$0xff]  }
 0xb40   :  { %7022 = vmatpush2.bf16.msra.mxu0 %v10722_v47  ;;  %7280 = vmatprep.subr.bf16.mxu1 %v10733_v49  ;;  %v10773_v47 = vld [vmem:[#allocation22 + $0xa24] ss:$16 sps:$4 sm:$0xff]   ;;  %v10774_v49 = vld [vmem:[#allocation22 + $0x1400] ss:$16 sps:$4 sm:$0xff]  }
 0xb41   :  { %7023 = vmatprep.subr.bf16.mxu0 %v10730_v50  ;;  %v10771_v50 = vld [vmem:[#allocation22 + $0xa20] ss:$16 sps:$4 sm:$0xff]  }
 0xb42   :  { %7231 = vmatmul.mubr.bf16.vlgmr.msra.gmra.mxu1 %v12775_v52  ;;  %v12795_v15 = vpop.f32.mrf.mxu1 }
 0xb43   :  { %7281 = vmatpush1.bf16.msra.mxu1 %v10731_v48  ;;  %7312 = vmatprep.mubr.bf16.mxu1 %v12777_v33  ;;  %v10782_v48 = vld [vmem:[#allocation22 + $0x15e4] ss:$16 sps:$4 sm:$0xff]  }
 0xb44   :  { %7024 = vmatpush2.bf16.msra.mxu0 %v10728_v36  ;;  %7282 = vmatprep.subr.bf16.mxu1 %v10740_v55  ;;  %v12797_v39 = vpop.f32.mrf.mxu1  ;;  %v10779_v36 = vld [vmem:[#allocation22 + $0xa04] ss:$16 sps:$4 sm:$0xff]   ;;  %v10780_v55 = vld [vmem:[#allocation22 + $0x15e0] ss:$16 sps:$4 sm:$0xff]  }
 0xb45   :  { %7075 = vmatprep.subr.bf16.mxu0 %v10737_v58  ;;  %v10777_v58 = vld [vmem:[#allocation22 + $0xa00] ss:$16 sps:$4 sm:$0xff]  }
 0xb46   :  { %v6990_v22 = vpop.f32.mrf.mxu1 }
 0xb47   :  { %7026 = vmatmul.mubr.bf16.vlgmr.msra.gmra.mxu0 %v12788_v60  ;;  %7283 = vmatpush1.bf16.msra.mxu1 %v10738_v29  ;;  %v10785_v29 = vld [vmem:[#allocation22 + $0xbe4] ss:$16 sps:$4 sm:$0xff]   ;;  %v10801_v22 = vld [vmem:[#allocation22 + $0xb80] ss:$16 sps:$4 sm:$0xff]  }
 0xb48   :  { %7076 = vmatpush1.bf16.msra.mxu0 %v10735_v63  ;;  %7284 = vmatprep.subr.bf16.mxu1 %v10746_v2  ;;  %v6991_v26 = vpop.f32.mrf.mxu1  ;;  %v10786_v63 = vld [vmem:[#allocation22 + $0x15c0] ss:$16 sps:$4 sm:$0xff]  }
 0xb49   :  { %7077 = vmatprep.subr.bf16.mxu0 %v10743_v4  ;;  %7107 = vmatprep.mubr.bf16.mxu0 %v12791_v5  ;;  %v10783_v2 = vld [vmem:[#allocation22 + $0xbe0] ss:$16 sps:$4 sm:$0xff]   ;;  %v10791_v4 = vld [vmem:[#allocation22 + $0xbc4] ss:$16 sps:$4 sm:$0xff]  }
 0xb4a   :  { %v10809_v26 = vld [vmem:[#allocation22 + $0xb64] ss:$16 sps:$4 sm:$0xff]  }
 0xb4b   :  { %7285 = vmatpush1.bf16.msra.mxu1 %v10744_v8  ;;  %v10789_v8 = vld [vmem:[#allocation22 + $0xbc0] ss:$16 sps:$4 sm:$0xff]  }
 0xb4c   :  { %7078 = vmatpush1.bf16.msra.mxu0 %v10741_v10  ;;  %7286 = vmatprep.subr.bf16.mxu1 %v10752_v61  ;;  %v10800_v10 = vld [vmem:[#allocation22 + $0x1584] ss:$16 sps:$4 sm:$0xff]  }
 0xb4d   :  { %7079 = vmatprep.subr.bf16.mxu0 %v10749_v13  ;;  %v10797_v61 = vld [vmem:[#allocation22 + $0xba4] ss:$16 sps:$4 sm:$0xff]   ;;  %v10798_v13 = vld [vmem:[#allocation22 + $0x1580] ss:$16 sps:$4 sm:$0xff]  }
 0xb4f   :  { %7287 = vmatpush1.bf16.msra.mxu1 %v10750_v17  ;;  %v10795_v17 = vld [vmem:[#allocation22 + $0xba0] ss:$16 sps:$4 sm:$0xff]  }
 0xb50   :  { %7080 = vmatpush1.bf16.msra.mxu0 %v10747_v19  ;;  %7288 = vmatprep.subr.bf16.mxu1 %v10758_v20  ;;  %v10806_v19 = vld [vmem:[#allocation22 + $0x1564] ss:$16 sps:$4 sm:$0xff]  }
 0xb51   :  { %7081 = vmatprep.subr.bf16.mxu0 %v10755_v21  ;;  %v10803_v20 = vld [vmem:[#allocation22 + $0xb84] ss:$16 sps:$4 sm:$0xff]   ;;  %v10804_v21 = vld [vmem:[#allocation22 + $0x1560] ss:$16 sps:$4 sm:$0xff]  }
 0xb53   :  { %7289 = vmatpush1.bf16.msra.mxu1 %v10756_v24  ;;  %v10812_v24 = vld [vmem:[#allocation22 + $0x1544] ss:$16 sps:$4 sm:$0xff]  }
 0xb54   :  { %7082 = vmatpush1.bf16.msra.mxu0 %v10753_v38  ;;  %7290 = vmatprep.subr.bf16.mxu1 %v10764_v27  ;;  %v10810_v38 = vld [vmem:[#allocation22 + $0x1540] ss:$16 sps:$4 sm:$0xff]  }
 0xb55   :  { %7083 = vmatprep.subr.bf16.mxu0 %v10761_v31  ;;  %v10807_v27 = vld [vmem:[#allocation22 + $0xb60] ss:$16 sps:$4 sm:$0xff]   ;;  %v10818_v31 = vld [vmem:[#allocation22 + $0x1524] ss:$16 sps:$4 sm:$0xff]  }
 0xb57   :  { %7291 = vmatpush1.bf16.msra.mxu1 %v10762_v34  ;;  %v10815_v34 = vld [vmem:[#allocation22 + $0xb44] ss:$16 sps:$4 sm:$0xff]  }
 0xb58   :  { %7084 = vmatpush1.bf16.msra.mxu0 %v10759_v37  ;;  %7292 = vmatprep.subr.bf16.mxu1 %v10770_v41  ;;  %v10816_v37 = vld [vmem:[#allocation22 + $0x1520] ss:$16 sps:$4 sm:$0xff]  }
 0xb59   :  { %7085 = vmatprep.subr.bf16.mxu0 %v10767_v44  ;;  %v10813_v41 = vld [vmem:[#allocation22 + $0xb40] ss:$16 sps:$4 sm:$0xff]   ;;  %v10824_v44 = vld [vmem:[#allocation22 + $0x1504] ss:$16 sps:$4 sm:$0xff]  }
 0xb5b   :  { %7293 = vmatpush1.bf16.msra.mxu1 %v10768_v18  ;;  %v10821_v18 = vld [vmem:[#allocation22 + $0xb24] ss:$16 sps:$4 sm:$0xff]  }
 0xb5c   :  { %7086 = vmatpush1.bf16.msra.mxu0 %v10765_v45  ;;  %7294 = vmatprep.subr.bf16.mxu1 %v10776_v46  ;;  %v2740_v45 = vcombine.high %v12702_v25, %v12702_v25  ;;  %v10822_v46 = vld [vmem:[#allocation22 + $0x1500] ss:$16 sps:$4 sm:$0xff]   ;;  %v10837_v25 = vld [vmem:[#allocation22 + $0x18c4] ss:$16 sps:$4 sm:$0xff]  }
 0xb5d   :  { %7087 = vmatprep.subr.bf16.mxu0 %v10773_v47  ;;  %v10819_v47 = vld [vmem:[#allocation22 + $0xb20] ss:$16 sps:$4 sm:$0xff]  }
 0xb5f   :  { %7295 = vmatpush1.bf16.msra.mxu1 %v10774_v49  ;;  %v10830_v49 = vld [vmem:[#allocation22 + $0x18e4] ss:$16 sps:$4 sm:$0xff]  }
 0xb60   :  { %7088 = vmatpush1.bf16.msra.mxu0 %v10771_v50  ;;  %7296 = vmatprep.subr.bf16.mxu1 %v10782_v48  ;;  %v10827_v50 = vld [vmem:[#allocation22 + $0xb04] ss:$16 sps:$4 sm:$0xff]   ;;  %v12802_v48 = vrot.slane %v2740_v45, %v12653_v16  ;;  %v10859_v45 = vld [vmem:[#allocation22 + $0x1840] ss:$16 sps:$4 sm:$0xff]  }
 0xb61   :  { %7089 = vmatprep.subr.bf16.mxu0 %v10779_v36  ;;  %v12806_v36 = vpack.c.bf16 %v12764_v35, %v12764_v35  ;;  %v10835_v35 = vld [vmem:[#allocation22 + $0x18c0] ss:$16 sps:$4 sm:$0xff]  }
 0xb63   :  { %7297 = vmatpush2.bf16.msra.mxu1 %v10780_v55  ;;  %v10828_v55 = vld [vmem:[#allocation22 + $0x18e0] ss:$16 sps:$4 sm:$0xff]  }
 0xb64   :  { %7090 = vmatpush1.bf16.msra.mxu0 %v10777_v58  ;;  %7298 = vmatprep.subr.bf16.mxu1 %v10788_v59  ;;  %v10825_v58 = vld [vmem:[#allocation22 + $0xb00] ss:$16 sps:$4 sm:$0xff]   ;;  %v10834_v59 = vld [vmem:[#allocation22 + $0xee4] ss:$16 sps:$4 sm:$0xff]  }
 0xb65   :  { %7091 = vmatprep.subr.bf16.mxu0 %v10785_v29  ;;  %v2756_v29 = vcombine.high %v12802_v48, %v12802_v48 }
 0xb67   :  { %7299 = vmatpush2.bf16.msra.mxu1 %v10786_v63  ;;  %v12813_v63 = vpack.c.bf16 %v12771_v51, %v12771_v51  ;;  %v10838_v51 = vld [vmem:[#allocation22 + $0xec0] ss:$16 sps:$4 sm:$0xff]  }
 0xb68   :  { %7092 = vmatpush2.bf16.msra.mxu0 %v10783_v2  ;;  %7300 = vmatprep.subr.bf16.mxu1 %v10794_v3  ;;  %v10832_v2 = vld [vmem:[#allocation22 + $0xee0] ss:$16 sps:$4 sm:$0xff]   ;;  %v10843_v3 = vld [vmem:[#allocation22 + $0x18a4] ss:$16 sps:$4 sm:$0xff]  }
 0xb69   :  { %7093 = vmatprep.subr.bf16.mxu0 %v10791_v4  ;;  %v10840_v4 = vld [vmem:[#allocation22 + $0xec4] ss:$16 sps:$4 sm:$0xff]  }
 0xb6b   :  { %7301 = vmatpush2.bf16.msra.mxu1 %v10792_v6  ;;  %v12816_v6 = vpack.c.bf16 %v2756_v29, %v2756_v29  ;;  %v8969_v29 = vld.sshfl [vmem:[#allocation8 + $0x30] sm:$0x3 pattern:$0x76325410] }
 0xb6c   :  { %7094 = vmatpush2.bf16.msra.mxu0 %v10789_v8  ;;  %7302 = vmatprep.subr.bf16.mxu1 %v10800_v10  ;;  %v10841_v10 = vld [vmem:[#allocation22 + $0x18a0] ss:$16 sps:$4 sm:$0xff]  }
 0xb6d   :  { %7095 = vmatprep.subr.bf16.mxu0 %v10797_v61  ;;  %v10849_v61 = vld [vmem:[#allocation22 + $0x1884] ss:$16 sps:$4 sm:$0xff]  }
 0xb6f   :  { %7303 = vmatpush2.bf16.msra.mxu1 %v10798_v13 }
 0xb70   :  { %7096 = vmatpush2.bf16.msra.mxu0 %v10795_v17  ;;  %7304 = vmatprep.subr.bf16.mxu1 %v10806_v19  ;;  %v10846_v17 = vld [vmem:[#allocation22 + $0xea4] ss:$16 sps:$4 sm:$0xff]  }
 0xb71   :  { %7097 = vmatprep.subr.bf16.mxu0 %v10803_v20 }
 0xb73   :  { %7305 = vmatpush2.bf16.msra.mxu1 %v10804_v21  ;;  %v10847_v21 = vld [vmem:[#allocation22 + $0x1880] ss:$16 sps:$4 sm:$0xff]  }
 0xb74   :  { %7098 = vmatpush2.bf16.msra.mxu0 %v10801_v22  ;;  %7306 = vmatprep.subr.bf16.mxu1 %v10812_v24  ;;  %v10844_v24 = vld [vmem:[#allocation22 + $0xea0] ss:$16 sps:$4 sm:$0xff]  }
 0xb75   :  { %7099 = vmatprep.subr.bf16.mxu0 %v10809_v26  ;;  %v10855_v26 = vld [vmem:[#allocation22 + $0x1864] ss:$16 sps:$4 sm:$0xff]  }
 0xb77   :  { %7307 = vmatpush2.bf16.msra.mxu1 %v10810_v38 }
 0xb78   :  { %7100 = vmatpush2.bf16.msra.mxu0 %v10807_v27  ;;  %7308 = vmatprep.subr.bf16.mxu1 %v10818_v31  ;;  %v10852_v27 = vld [vmem:[#allocation22 + $0xe84] ss:$16 sps:$4 sm:$0xff]  }
 0xb79   :  { %7101 = vmatprep.subr.bf16.mxu0 %v10815_v34  ;;  %v10853_v34 = vld [vmem:[#allocation22 + $0x1860] ss:$16 sps:$4 sm:$0xff]  }
 0xb7b   :  { %7309 = vmatpush2.bf16.msra.mxu1 %v10816_v37 }
 0xb7c   :  { %7102 = vmatpush2.bf16.msra.mxu0 %v10813_v41  ;;  %7310 = vmatprep.subr.bf16.mxu1 %v10824_v44  ;;  %v10850_v41 = vld [vmem:[#allocation22 + $0xe80] ss:$16 sps:$4 sm:$0xff]   ;;  %v10861_v44 = vld [vmem:[#allocation22 + $0x1844] ss:$16 sps:$4 sm:$0xff]  }
 0xb7d   :  { %7103 = vmatprep.subr.bf16.mxu0 %v10821_v18  ;;  %v10858_v18 = vld [vmem:[#allocation22 + $0xe64] ss:$16 sps:$4 sm:$0xff]  }
 0xb7f   :  { %7311 = vmatpush2.bf16.msra.mxu1 %v10822_v46  ;;  %v10856_v46 = vld [vmem:[#allocation22 + $0xe60] ss:$16 sps:$4 sm:$0xff]  }
 0xb80   :  { %7104 = vmatpush2.bf16.msra.mxu0 %v10819_v47  ;;  %7362 = vmatprep.subr.bf16.mxu1 %v10830_v49  ;;  %v10867_v47 = vld [vmem:[#allocation22 + $0x1824] ss:$16 sps:$4 sm:$0xff]  }
 0xb81   :  { %7105 = vmatprep.subr.bf16.mxu0 %v10827_v50  ;;  %v10864_v49 = vld [vmem:[#allocation22 + $0xe44] ss:$16 sps:$4 sm:$0xff]   ;;  %v10865_v50 = vld [vmem:[#allocation22 + $0x1820] ss:$16 sps:$4 sm:$0xff]  }
 0xb82   :  { %7313 = vmatmul.mubr.bf16.vlgmr.msra.gmra.mxu1 %v12806_v36  ;;  %v12822_v19 = vpop.f32.mrf.mxu1 }
 0xb83   :  { %7363 = vmatpush1.bf16.msra.mxu1 %v10828_v55  ;;  %7394 = vmatprep.mubr.bf16.mxu1 %v12282_v1  ;;  %v10862_v55 = vld [vmem:[#allocation22 + $0xe40] ss:$16 sps:$4 sm:$0xff]  }
 0xb84   :  { %7106 = vmatpush2.bf16.msra.mxu0 %v10825_v58  ;;  %7364 = vmatprep.subr.bf16.mxu1 %v10837_v25  ;;  %v12824_v22 = vpop.f32.mrf.mxu1  ;;  %v10873_v58 = vld [vmem:[#allocation22 + $0x1804] ss:$16 sps:$4 sm:$0xff]  }
 0xb85   :  { %7157 = vmatprep.subr.bf16.mxu0 %v10834_v59  ;;  %v10870_v25 = vld [vmem:[#allocation22 + $0xe24] ss:$16 sps:$4 sm:$0xff]   ;;  %v10871_v59 = vld [vmem:[#allocation22 + $0x1800] ss:$16 sps:$4 sm:$0xff]  }
 0xb86   :  { %v7072_v31 = vpop.f32.mrf.mxu1 }
 0xb87   :  { %7108 = vmatmul.mubr.bf16.vlgmr.msra.gmra.mxu0 %v12813_v63  ;;  %v12819_v8 = vpop.f32.mrf.mxu0  ;;  %7365 = vmatpush1.bf16.msra.mxu1 %v10835_v35  ;;  %v10868_v35 = vld [vmem:[#allocation22 + $0xe20] ss:$16 sps:$4 sm:$0xff]   ;;  %v10894_v31 = vld [vmem:[#allocation22 + $0xfa4] ss:$16 sps:$4 sm:$0xff]  }
 0xb88   :  { %7158 = vmatpush1.bf16.msra.mxu0 %v10832_v2  ;;  %7366 = vmatprep.subr.bf16.mxu1 %v10843_v3  ;;  %v7073_v37 = vpop.f32.mrf.mxu1  ;;  %v10879_v2 = vld [vmem:[#allocation22 + $0x2ec] ss:$16 sps:$4 sm:$0xff]   ;;  %v10876_v3 = vld [vmem:[#allocation22 + $0xe04] ss:$16 sps:$4 sm:$0xff]  }
 0xb89   :  { %v10166_v13 = vpop.f32.mrf.mxu0  ;;  %7159 = vmatprep.subr.bf16.mxu0 %v10840_v4  ;;  %7189 = vmatprep.mubr.bf16.mxu0 %v12816_v6  ;;  %v12826_v4 = vpack.c.bf16 %v8969_v29, %v8969_v29  ;;  %v10892_v37 = vld [vmem:[#allocation22 + $0xfa0] ss:$16 sps:$4 sm:$0xff]   ;;  %v10918_v29 = vld [vmem:[#allocation22 + $0xf24] ss:$16 sps:$4 sm:$0xff]  }
 0xb8a   :  { %v10882_v13 = vld [vmem:[#allocation22 + $0xfe4] ss:$16 sps:$4 sm:$0xff]  }
 0xb8b   :  { %v1871_v20 = vpop.f32.mrf.mxu0  ;;  %7367 = vmatpush1.bf16.msra.mxu1 %v10841_v10  ;;  %v10877_v10 = vld [vmem:[#allocation22 + $0x2e8] ss:$16 sps:$4 sm:$0xff]  }
 0xb8c   :  { %7160 = vmatpush1.bf16.msra.mxu0 %v10838_v51  ;;  %7368 = vmatprep.subr.bf16.mxu1 %v10849_v61  ;;  %v10874_v51 = vld [vmem:[#allocation22 + $0xe00] ss:$16 sps:$4 sm:$0xff]   ;;  %v10885_v61 = vld [vmem:[#allocation22 + $0x2cc] ss:$16 sps:$4 sm:$0xff]  }
 0xb8d   :  { %v10167_v38 = vpop.f32.mrf.mxu0  ;;  %7161 = vmatprep.subr.bf16.mxu0 %v10846_v17  ;;  %v10883_v17 = vld [vmem:[#allocation22 + $0x2c8] ss:$16 sps:$4 sm:$0xff]   ;;  %v10880_v20 = vld [vmem:[#allocation22 + $0xfe0] ss:$16 sps:$4 sm:$0xff]  }
 0xb8e   :  { %v10886_v38 = vld [vmem:[#allocation22 + $0xfc0] ss:$16 sps:$4 sm:$0xff]  }
 0xb8f   :  { %7369 = vmatpush1.bf16.msra.mxu1 %v10847_v21  ;;  %v10891_v21 = vld [vmem:[#allocation22 + $0x2ac] ss:$16 sps:$4 sm:$0xff]  }
 0xb90   :  { %7162 = vmatpush1.bf16.msra.mxu0 %v10844_v24  ;;  %7370 = vmatprep.subr.bf16.mxu1 %v10855_v26  ;;  %v10888_v24 = vld [vmem:[#allocation22 + $0xfc4] ss:$16 sps:$4 sm:$0xff]   ;;  %v10889_v26 = vld [vmem:[#allocation22 + $0x2a8] ss:$16 sps:$4 sm:$0xff]  }
 0xb91   :  { %7163 = vmatprep.subr.bf16.mxu0 %v10852_v27  ;;  %v10897_v27 = vld [vmem:[#allocation22 + $0x28c] ss:$16 sps:$4 sm:$0xff]  }
 0xb93   :  { %7371 = vmatpush1.bf16.msra.mxu1 %v10853_v34  ;;  %v10895_v34 = vld [vmem:[#allocation22 + $0x288] ss:$16 sps:$4 sm:$0xff]  }
 0xb94   :  { %7164 = vmatpush1.bf16.msra.mxu0 %v10850_v41  ;;  %7372 = vmatprep.subr.bf16.mxu1 %v10861_v44  ;;  %v10900_v41 = vld [vmem:[#allocation22 + $0xf84] ss:$16 sps:$4 sm:$0xff]   ;;  %v10901_v44 = vld [vmem:[#allocation22 + $0x268] ss:$16 sps:$4 sm:$0xff]  }
 0xb95   :  { %7165 = vmatprep.subr.bf16.mxu0 %v10858_v18  ;;  %v10898_v18 = vld [vmem:[#allocation22 + $0xf80] ss:$16 sps:$4 sm:$0xff]  }
 0xb97   :  { %7373 = vmatpush1.bf16.msra.mxu1 %v10859_v45  ;;  %v10909_v45 = vld [vmem:[#allocation22 + $0x24c] ss:$16 sps:$4 sm:$0xff]  }
 0xb98   :  { %7166 = vmatpush1.bf16.msra.mxu0 %v10856_v46  ;;  %7374 = vmatprep.subr.bf16.mxu1 %v10867_v47  ;;  %v10906_v46 = vld [vmem:[#allocation22 + $0xf64] ss:$16 sps:$4 sm:$0xff]   ;;  %v10907_v47 = vld [vmem:[#allocation22 + $0x248] ss:$16 sps:$4 sm:$0xff]  }
 0xb99   :  { %7167 = vmatprep.subr.bf16.mxu0 %v10864_v49  ;;  %v10904_v49 = vld [vmem:[#allocation22 + $0xf60] ss:$16 sps:$4 sm:$0xff]  }
 0xb9b   :  { %7375 = vmatpush1.bf16.msra.mxu1 %v10865_v50  ;;  %v10915_v50 = vld [vmem:[#allocation22 + $0x22c] ss:$16 sps:$4 sm:$0xff]  }
 0xb9c   :  { %7168 = vmatpush1.bf16.msra.mxu0 %v10862_v55  ;;  %7376 = vmatprep.subr.bf16.mxu1 %v10873_v58  ;;  %v10912_v55 = vld [vmem:[#allocation22 + $0xf44] ss:$16 sps:$4 sm:$0xff]   ;;  %v10913_v58 = vld [vmem:[#allocation22 + $0x228] ss:$16 sps:$4 sm:$0xff]  }
 0xb9d   :  { %7169 = vmatprep.subr.bf16.mxu0 %v10870_v25  ;;  %v10910_v25 = vld [vmem:[#allocation22 + $0xf40] ss:$16 sps:$4 sm:$0xff]  }
 0xb9f   :  { %7377 = vmatpush1.bf16.msra.mxu1 %v10871_v59  ;;  %v10921_v59 = vld [vmem:[#allocation22 + $0x20c] ss:$16 sps:$4 sm:$0xff]  }
 0xba0   :  { %7170 = vmatpush1.bf16.msra.mxu0 %v10868_v35  ;;  %7444 = vmatprep.subr.bf16.mxu1 %v10879_v2  ;;  %v2757_v35 = vcombine.high %v12729_v57, %v12729_v57  ;;  %v10919_v2 = vld [vmem:[#allocation22 + $0x208] ss:$16 sps:$4 sm:$0xff]   ;;  %v10922_v57 = vld [vmem:[#allocation22 + $0xf00] ss:$16 sps:$4 sm:$0xff]  }
 0xba1   :  { %7171 = vmatprep.subr.bf16.mxu0 %v10876_v3  ;;  %v10916_v3 = vld [vmem:[#allocation22 + $0xf20] ss:$16 sps:$4 sm:$0xff]  }
 0xba2   :  { %7395 = vmatmul.mubr.bf16.vlgmr.msra.gmra.mxu1 %v12826_v4 }
 0xba3   :  { %7445 = vmatpush1.bf16.msra.mxu1 %v10877_v10  ;;  %7476 = vmatprep.mubr.bf16.mxu1 %v12725_v42  ;;  %v10903_v42 = vld [vmem:[#allocation22 + $0x26c] ss:$16 sps:$4 sm:$0xff]  }
 0xba4   :  { %7172 = vmatpush1.bf16.msra.mxu0 %v10874_v51  ;;  %7446 = vmatprep.subr.bf16.mxu1 %v10885_v61  ;;  %v10927_v10 = vld [vmem:[#allocation22 + $0x3ec] ss:$16 sps:$4 sm:$0xff]   ;;  %v2852_v51 = vsub.s32 0, %v12563_v14  ;;  %v10924_v61 = vld [vmem:[#allocation22 + $0xf04] ss:$16 sps:$4 sm:$0xff]  }
 0xba5   :  { %7173 = vmatprep.subr.bf16.mxu0 %v10882_v13  ;;  %v2848_v13 = vld [vmem:[#allocation23] sm:$0xf] }
 0xba7   :  { %7447 = vmatpush1.bf16.msra.mxu1 %v10883_v17  ;;  %v12834_v17 = vrot.slane %v2757_v35, %v12653_v16 }
 0xba8   :  { %7174 = vmatpush2.bf16.msra.mxu0 %v10880_v20  ;;  %7448 = vmatprep.subr.bf16.mxu1 %v10891_v21  ;;  %v2856_v20 = vsub.s32 1, %v12563_v14  ;;  %v10925_v21 = vld [vmem:[#allocation22 + $0x3e8] ss:$16 sps:$4 sm:$0xff]  }
 0xba9   :  { %7175 = vmatprep.subr.bf16.mxu0 %v10888_v24  ;;  %v2853_v24 = vrot.slane %v2848_v13, %v2852_v51  ;;  %v10949_v51 = vld [vmem:[#allocation22 + $0x1284] ss:$16 sps:$4 sm:$0xff]  }
 0xbab   :  { %7449 = vmatpush1.bf16.msra.mxu1 %v10889_v26  ;;  %v10934_v26 = vld [vmem:[#allocation22 + $0x3cc] ss:$16 sps:$4 sm:$0xff]  }
 0xbac   :  { %7176 = vmatpush2.bf16.msra.mxu0 %v10886_v38  ;;  %7450 = vmatprep.subr.bf16.mxu1 %v10897_v27  ;;  %v10931_v38 = vld [vmem:[#allocation22 + $0x12e4] ss:$16 sps:$4 sm:$0xff]   ;;  %v2773_v27 = vcombine.high %v12834_v17, %v12834_v17 }
 0xbad   :  { %7177 = vmatprep.subr.bf16.mxu0 %v10894_v31  ;;  %v2857_v31 = vrot.slane %v2848_v13, %v2856_v20  ;;  %v10950_v13 = vld [vmem:[#allocation22 + $0x368] ss:$16 sps:$4 sm:$0xff]  }
 0xbaf   :  { %7451 = vmatpush1.bf16.msra.mxu1 %v10895_v34  ;;  %v12841_v34 = vpack.c.bf16 %v12802_v48, %v12802_v48 }
 0xbb0   :  { %7178 = vmatpush2.bf16.msra.mxu0 %v10892_v37  ;;  %7452 = vmatprep.subr.bf16.mxu1 %v10903_v42  ;;  %v10932_v37 = vld [vmem:[#allocation22 + $0x3c8] ss:$16 sps:$4 sm:$0xff]   ;;  %v6905_v42 = vadd.f32 %v12779_v56, %v2853_v24  ;;  %v10946_v56 = vld [vmem:[#allocation22 + $0x38c] ss:$16 sps:$4 sm:$0xff]   ;;  %v10955_v24 = vld [vmem:[#allocation22 + $0x1264] ss:$16 sps:$4 sm:$0xff]  }
 0xbb1   :  { %7179 = vmatprep.subr.bf16.mxu0 %v10900_v41  ;;  %v10929_v41 = vld [vmem:[#allocation22 + $0x12e0] ss:$16 sps:$4 sm:$0xff]  }
 0xbb3   :  { %7453 = vmatpush1.bf16.msra.mxu1 %v10901_v44  ;;  %v10940_v44 = vld [vmem:[#allocation22 + $0x3ac] ss:$16 sps:$4 sm:$0xff]  }
 0xbb4   :  { %7180 = vmatpush2.bf16.msra.mxu0 %v10898_v18  ;;  %7454 = vmatprep.subr.bf16.mxu1 %v10909_v45  ;;  %v10937_v18 = vld [vmem:[#allocation22 + $0x12c4] ss:$16 sps:$4 sm:$0xff]   ;;  %v12844_v45 = vpack.c.bf16 %v2773_v27, %v2773_v27  ;;  %v10964_v27 = vld [vmem:[#allocation22 + $0x32c] ss:$16 sps:$4 sm:$0xff]  }
 0xbb5   :  { %7181 = vmatprep.subr.bf16.mxu0 %v10906_v46  ;;  %v6907_v46 = vadd.f32 %v12784_v62, %v2857_v31  ;;  %v10961_v31 = vld [vmem:[#allocation22 + $0x1244] ss:$16 sps:$4 sm:$0xff]  }
 0xbb7   :  { %7455 = vmatpush1.bf16.msra.mxu1 %v10907_v47 }
 0xbb8   :  { %7182 = vmatpush2.bf16.msra.mxu0 %v10904_v49  ;;  %7456 = vmatprep.subr.bf16.mxu1 %v10915_v50  ;;  %v10938_v49 = vld [vmem:[#allocation22 + $0x3a8] ss:$16 sps:$4 sm:$0xff]   ;;  %v10935_v50 = vld [vmem:[#allocation22 + $0x12c0] ss:$16 sps:$4 sm:$0xff]  }
 0xbb9   :  { %7183 = vmatprep.subr.bf16.mxu0 %v10912_v55 }
 0xbbb   :  { %7457 = vmatpush1.bf16.msra.mxu1 %v10913_v58  ;;  %v10943_v58 = vld [vmem:[#allocation22 + $0x12a4] ss:$16 sps:$4 sm:$0xff]  }
 0xbbc   :  { %7184 = vmatpush2.bf16.msra.mxu0 %v10910_v25  ;;  %7458 = vmatprep.subr.bf16.mxu1 %v10921_v59 }
 0xbbd   :  { %7185 = vmatprep.subr.bf16.mxu0 %v10918_v29  ;;  %v10944_v29 = vld [vmem:[#allocation22 + $0x388] ss:$16 sps:$4 sm:$0xff]  }
 0xbbf   :  { %7459 = vmatpush1.bf16.msra.mxu1 %v10919_v2  ;;  %v10941_v2 = vld [vmem:[#allocation22 + $0x12a0] ss:$16 sps:$4 sm:$0xff]  }
 0xbc0   :  { %7186 = vmatpush2.bf16.msra.mxu0 %v10916_v3  ;;  %7460 = vmatprep.subr.bf16.mxu1 %v10927_v10  ;;  %v10952_v3 = vld [vmem:[#allocation22 + $0x36c] ss:$16 sps:$4 sm:$0xff]  }
 0xbc1   :  { %7187 = vmatprep.subr.bf16.mxu0 %v10924_v61 }
 0xbc2   :  { %v12851_v25 = vpop.f32.mrf.mxu1 }
 0xbc3   :  { %7461 = vmatpush2.bf16.msra.mxu1 %v10925_v21  ;;  %v10947_v21 = vld [vmem:[#allocation22 + $0x1280] ss:$16 sps:$4 sm:$0xff]  }
 0xbc4   :  { %7188 = vmatpush2.bf16.msra.mxu0 %v10922_v57  ;;  %7462 = vmatprep.subr.bf16.mxu1 %v10934_v26  ;;  %v12855_v35 = vpop.f32.mrf.mxu1  ;;  %v10958_v57 = vld [vmem:[#allocation22 + $0x34c] ss:$16 sps:$4 sm:$0xff]   ;;  %v10956_v26 = vld [vmem:[#allocation22 + $0x348] ss:$16 sps:$4 sm:$0xff]  }
 0xbc5   :  { %7239 = vmatprep.subr.bf16.mxu0 %v10931_v38  ;;  %v10953_v38 = vld [vmem:[#allocation22 + $0x1260] ss:$16 sps:$4 sm:$0xff]  }
 0xbc6   :  { %v7154_v61 = vpop.f32.mrf.mxu1 }
 0xbc7   :  { %v6945_v47 = vpop.f32.mrf.mxu0  ;;  %7190 = vmatmul.mubr.bf16.vlgmr.msra.gmra.mxu0 %v12841_v34  ;;  %7463 = vmatpush2.bf16.msra.mxu1 %v10932_v37  ;;  %v10962_v37 = vld [vmem:[#allocation22 + $0x328] ss:$16 sps:$4 sm:$0xff]   ;;  %v10994_v61 = vld [vmem:[#allocation22 + $0x68c] ss:$16 sps:$4 sm:$0xff]  }
 0xbc8   :  { %v12848_v48 = vadd.f32 %v6945_v47, %v6905_v42  ;;  %7240 = vmatpush1.bf16.msra.mxu0 %v10929_v41  ;;  %7464 = vmatprep.subr.bf16.mxu1 %v10940_v44  ;;  %v7155_v20 = vpop.f32.mrf.mxu1  ;;  %v10959_v42 = vld [vmem:[#allocation22 + $0x1240] ss:$16 sps:$4 sm:$0xff]   ;;  %v10970_v41 = vld [vmem:[#allocation22 + $0x30c] ss:$16 sps:$4 sm:$0xff]   ;;  %v10967_v44 = vld [vmem:[#allocation22 + $0x1224] ss:$16 sps:$4 sm:$0xff]  }
 0xbc9   :  { %v6947_v55 = vpop.f32.mrf.mxu0  ;;  %7241 = vmatprep.subr.bf16.mxu0 %v10937_v18  ;;  %7271 = vmatprep.mubr.bf16.mxu0 %v12844_v45  ;;  %v10968_v18 = vld [vmem:[#allocation22 + $0x308] ss:$16 sps:$4 sm:$0xff]   ;;  %v10976_v47 = vld [vmem:[#allocation22 + $0x6ec] ss:$16 sps:$4 sm:$0xff]   ;;  %v10989_v20 = vld [vmem:[#allocation22 + $0x13a0] ss:$16 sps:$4 sm:$0xff]  }
 0xbca   :  { %v12853_v59 = vadd.f32 %v6947_v55, %v6907_v46  ;;  %v10965_v46 = vld [vmem:[#allocation22 + $0x1220] ss:$16 sps:$4 sm:$0xff]   ;;  %v10982_v55 = vld [vmem:[#allocation22 + $0x6cc] ss:$16 sps:$4 sm:$0xff]  }
 0xbcb   :  { %v6949_v62 = vpop.f32.mrf.mxu0  ;;  %7465 = vmatpush2.bf16.msra.mxu1 %v10938_v49  ;;  %v10973_v49 = vld [vmem:[#allocation22 + $0x1204] ss:$16 sps:$4 sm:$0xff]  }
 0xbcc   :  { %7242 = vmatpush1.bf16.msra.mxu0 %v10935_v50  ;;  %7466 = vmatprep.subr.bf16.mxu1 %v10946_v56  ;;  %v10974_v50 = vld [vmem:[#allocation22 + $0x6e8] ss:$16 sps:$4 sm:$0xff]   ;;  %v10971_v56 = vld [vmem:[#allocation22 + $0x1200] ss:$16 sps:$4 sm:$0xff]  }
 0xbcd   :  { %v6950_v10 = vpop.f32.mrf.mxu0  ;;  %7243 = vmatprep.subr.bf16.mxu0 %v10943_v58  ;;  %v10979_v58 = vld [vmem:[#allocation22 + $0x13e4] ss:$16 sps:$4 sm:$0xff]   ;;  %v10980_v62 = vld [vmem:[#allocation22 + $0x6c8] ss:$16 sps:$4 sm:$0xff]  }
 0xbce   :  { %v10986_v10 = vld [vmem:[#allocation22 + $0x6a8] ss:$16 sps:$4 sm:$0xff]  }
 0xbcf   :  { %7467 = vmatpush2.bf16.msra.mxu1 %v10944_v29  ;;  %v10977_v29 = vld [vmem:[#allocation22 + $0x13e0] ss:$16 sps:$4 sm:$0xff]  }
 0xbd0   :  { %7244 = vmatpush1.bf16.msra.mxu0 %v10941_v2  ;;  %7468 = vmatprep.subr.bf16.mxu1 %v10952_v3  ;;  %v10988_v2 = vld [vmem:[#allocation22 + $0x6ac] ss:$16 sps:$4 sm:$0xff]   ;;  %v10985_v3 = vld [vmem:[#allocation22 + $0x13c4] ss:$16 sps:$4 sm:$0xff]  }
 0xbd1   :  { %7245 = vmatprep.subr.bf16.mxu0 %v10949_v51  ;;  %v10983_v51 = vld [vmem:[#allocation22 + $0x13c0] ss:$16 sps:$4 sm:$0xff]  }
 0xbd3   :  { %7469 = vmatpush2.bf16.msra.mxu1 %v10950_v13  ;;  %v10991_v13 = vld [vmem:[#allocation22 + $0x13a4] ss:$16 sps:$4 sm:$0xff]  }
 0xbd4   :  { %7246 = vmatpush1.bf16.msra.mxu0 %v10947_v21  ;;  %7470 = vmatprep.subr.bf16.mxu1 %v10958_v57  ;;  %v10997_v21 = vld [vmem:[#allocation22 + $0x1384] ss:$16 sps:$4 sm:$0xff]   ;;  %v10998_v57 = vld [vmem:[#allocation22 + $0x668] ss:$16 sps:$4 sm:$0xff]  }
 0xbd5   :  { %7247 = vmatprep.subr.bf16.mxu0 %v10955_v24  ;;  %v10995_v24 = vld [vmem:[#allocation22 + $0x1380] ss:$16 sps:$4 sm:$0xff]  }
 0xbd7   :  { %7471 = vmatpush2.bf16.msra.mxu1 %v10956_v26  ;;  %v11006_v26 = vld [vmem:[#allocation22 + $0x64c] ss:$16 sps:$4 sm:$0xff]  }
 0xbd8   :  { %7248 = vmatpush1.bf16.msra.mxu0 %v10953_v38  ;;  %7472 = vmatprep.subr.bf16.mxu1 %v10964_v27  ;;  %v11003_v38 = vld [vmem:[#allocation22 + $0x1364] ss:$16 sps:$4 sm:$0xff]   ;;  %v11004_v27 = vld [vmem:[#allocation22 + $0x648] ss:$16 sps:$4 sm:$0xff]  }
 0xbd9   :  { %7249 = vmatprep.subr.bf16.mxu0 %v10961_v31  ;;  %v11001_v31 = vld [vmem:[#allocation22 + $0x1360] ss:$16 sps:$4 sm:$0xff]  }
 0xbdb   :  { %7473 = vmatpush2.bf16.msra.mxu1 %v10962_v37  ;;  %v11012_v37 = vld [vmem:[#allocation22 + $0x62c] ss:$16 sps:$4 sm:$0xff]  }
 0xbdc   :  { %7250 = vmatpush1.bf16.msra.mxu0 %v10959_v42  ;;  %7474 = vmatprep.subr.bf16.mxu1 %v10970_v41  ;;  %v11009_v42 = vld [vmem:[#allocation22 + $0x1344] ss:$16 sps:$4 sm:$0xff]   ;;  %v11010_v41 = vld [vmem:[#allocation22 + $0x628] ss:$16 sps:$4 sm:$0xff]  }
 0xbdd   :  { %7251 = vmatprep.subr.bf16.mxu0 %v10967_v44  ;;  %v11007_v44 = vld [vmem:[#allocation22 + $0x1340] ss:$16 sps:$4 sm:$0xff]  }
 0xbdf   :  { %7475 = vmatpush2.bf16.msra.mxu1 %v10968_v18  ;;  %v11018_v18 = vld [vmem:[#allocation22 + $0x60c] ss:$16 sps:$4 sm:$0xff]  }
 0xbe0   :  { %7252 = vmatpush1.bf16.msra.mxu0 %v10965_v46  ;;  %7526 = vmatprep.subr.bf16.mxu1 %v10976_v47  ;;  %v11015_v46 = vld [vmem:[#allocation22 + $0x1324] ss:$16 sps:$4 sm:$0xff]   ;;  %v2774_v47 = vcombine.high %v12760_v30, %v12760_v30 }
 0xbe1   :  { %7253 = vmatprep.subr.bf16.mxu0 %v10973_v49  ;;  %v11016_v49 = vld [vmem:[#allocation22 + $0x608] ss:$16 sps:$4 sm:$0xff]  }
 0xbe2   :  { %7477 = vmatmul.mubr.bf16.vlgmr.msra.gmra.mxu1 %v12753_v28  ;;  %v10992_v28 = vld [vmem:[#allocation22 + $0x688] ss:$16 sps:$4 sm:$0xff]  }
 0xbe3   :  { %7527 = vmatpush1.bf16.msra.mxu1 %v10974_v50  ;;  %7558 = vmatprep.mubr.bf16.mxu1 %v12756_v23  ;;  %v11000_v23 = vld [vmem:[#allocation22 + $0x66c] ss:$16 sps:$4 sm:$0xff]   ;;  %v11013_v50 = vld [vmem:[#allocation22 + $0x1320] ss:$16 sps:$4 sm:$0xff]  }
 0xbe4   :  { %7254 = vmatpush1.bf16.msra.mxu0 %v10971_v56  ;;  %7528 = vmatprep.subr.bf16.mxu1 %v10982_v55  ;;  %v11024_v56 = vld [vmem:[#allocation22 + $0x7ec] ss:$16 sps:$4 sm:$0xff]   ;;  %v11021_v55 = vld [vmem:[#allocation22 + $0x1304] ss:$16 sps:$4 sm:$0xff]  }
 0xbe5   :  { %7255 = vmatprep.subr.bf16.mxu0 %v10979_v58  ;;  %v12862_v58 = vrot.slane %v2774_v47, %v12653_v16  ;;  %v11026_v16 = vld [vmem:[#allocation22 + $0x16e0] ss:$16 sps:$4 sm:$0xff]  }
 0xbe7   :  { %7529 = vmatpush1.bf16.msra.mxu1 %v10980_v62  ;;  %v11022_v62 = vld [vmem:[#allocation22 + $0x7e8] ss:$16 sps:$4 sm:$0xff]   ;;  %v2790_v30 = vcombine.high %v12862_v58, %v12862_v58 }
 0xbe8   :  { %7256 = vmatpush2.bf16.msra.mxu0 %v10977_v29  ;;  %7530 = vmatprep.subr.bf16.mxu1 %v10988_v2  ;;  %v11019_v29 = vld [vmem:[#allocation22 + $0x1300] ss:$16 sps:$4 sm:$0xff]   ;;  %v11031_v2 = vld [vmem:[#allocation22 + $0x7cc] ss:$16 sps:$4 sm:$0xff]  }
 0xbe9   :  { %7257 = vmatprep.subr.bf16.mxu0 %v10985_v3  ;;  %v11028_v3 = vld [vmem:[#allocation22 + $0x16e4] ss:$16 sps:$4 sm:$0xff]  }
 0xbeb   :  { %7531 = vmatpush1.bf16.msra.mxu1 %v10986_v10  ;;  %v12868_v10 = vpack.c.bf16 %v12834_v17, %v12834_v17  ;;  %v6989_v17 = vadd.f32 %v12797_v39, %v12853_v59  ;;  %v11038_v39 = vld [vmem:[#allocation22 + $0x16a0] ss:$16 sps:$4 sm:$0xff]   ;;  %v11049_v59 = vld [vmem:[#allocation22 + $0x76c] ss:$16 sps:$4 sm:$0xff]  }
 0xbec   :  { %7258 = vmatpush2.bf16.msra.mxu0 %v10983_v51  ;;  %7532 = vmatprep.subr.bf16.mxu1 %v10994_v61  ;;  %v11029_v51 = vld [vmem:[#allocation22 + $0x7c8] ss:$16 sps:$4 sm:$0xff]   ;;  %v11037_v61 = vld [vmem:[#allocation22 + $0x7ac] ss:$16 sps:$4 sm:$0xff]  }
 0xbed   :  { %7259 = vmatprep.subr.bf16.mxu0 %v10991_v13  ;;  %v11034_v13 = vld [vmem:[#allocation22 + $0x16c4] ss:$16 sps:$4 sm:$0xff]  }
 0xbef   :  { %7533 = vmatpush1.bf16.msra.mxu1 %v10992_v28  ;;  %v12870_v28 = vpack.c.bf16 %v2790_v30, %v2790_v30  ;;  %v11056_v30 = vld [vmem:[#allocation22 + $0x1640] ss:$16 sps:$4 sm:$0xff]  }
 0xbf0   :  { %7260 = vmatpush2.bf16.msra.mxu0 %v10989_v20  ;;  %7534 = vmatprep.subr.bf16.mxu1 %v11000_v23  ;;  %v6987_v20 = vadd.f32 %v12795_v15, %v12848_v48 }
 0xbf1   :  { %7261 = vmatprep.subr.bf16.mxu0 %v10997_v21  ;;  %v11035_v21 = vld [vmem:[#allocation22 + $0x7a8] ss:$16 sps:$4 sm:$0xff]  }
 0xbf3   :  { %7535 = vmatpush1.bf16.msra.mxu1 %v10998_v57 }
 0xbf4   :  { %7262 = vmatpush2.bf16.msra.mxu0 %v10995_v24  ;;  %7536 = vmatprep.subr.bf16.mxu1 %v11006_v26  ;;  %v11032_v24 = vld [vmem:[#allocation22 + $0x16c0] ss:$16 sps:$4 sm:$0xff]   ;;  %v11043_v26 = vld [vmem:[#allocation22 + $0x78c] ss:$16 sps:$4 sm:$0xff]  }
 0xbf5   :  { %7263 = vmatprep.subr.bf16.mxu0 %v11003_v38 }
 0xbf7   :  { %7537 = vmatpush1.bf16.msra.mxu1 %v11004_v27  ;;  %v11040_v27 = vld [vmem:[#allocation22 + $0x16a4] ss:$16 sps:$4 sm:$0xff]  }
 0xbf8   :  { %7264 = vmatpush2.bf16.msra.mxu0 %v11001_v31  ;;  %7538 = vmatprep.subr.bf16.mxu1 %v11012_v37  ;;  %v11041_v37 = vld [vmem:[#allocation22 + $0x788] ss:$16 sps:$4 sm:$0xff]  }
 0xbf9   :  { %7265 = vmatprep.subr.bf16.mxu0 %v11009_v42 }
 0xbfb   :  { %7539 = vmatpush1.bf16.msra.mxu1 %v11010_v41 }
 0xbfc   :  { %7266 = vmatpush2.bf16.msra.mxu0 %v11007_v44  ;;  %7540 = vmatprep.subr.bf16.mxu1 %v11018_v18  ;;  %v11046_v44 = vld [vmem:[#allocation22 + $0x1684] ss:$16 sps:$4 sm:$0xff]  }
 0xbfd   :  { %7267 = vmatprep.subr.bf16.mxu0 %v11015_v46  ;;  %v11047_v46 = vld [vmem:[#allocation22 + $0x768] ss:$16 sps:$4 sm:$0xff]  }
 0xbff   :  { %7541 = vmatpush1.bf16.msra.mxu1 %v11016_v49  ;;  %v11044_v49 = vld [vmem:[#allocation22 + $0x1680] ss:$16 sps:$4 sm:$0xff]  }
 0xc00   :  { %7268 = vmatpush2.bf16.msra.mxu0 %v11013_v50  ;;  %7542 = vmatprep.subr.bf16.mxu1 %v11024_v56  ;;  %v11055_v50 = vld [vmem:[#allocation22 + $0x74c] ss:$16 sps:$4 sm:$0xff]   ;;  %v11052_v56 = vld [vmem:[#allocation22 + $0x1664] ss:$16 sps:$4 sm:$0xff]  }
 0xc01   :  { %7269 = vmatprep.subr.bf16.mxu0 %v11021_v55  ;;  %v11053_v55 = vld [vmem:[#allocation22 + $0x748] ss:$16 sps:$4 sm:$0xff]  }
 0xc02   :  { %v12880_v15 = vpop.f32.mrf.mxu1 }
 0xc03   :  { %7543 = vmatpush2.bf16.msra.mxu1 %v11022_v62  ;;  %v11050_v62 = vld [vmem:[#allocation22 + $0x1660] ss:$16 sps:$4 sm:$0xff]  }
 0xc04   :  { %7270 = vmatpush2.bf16.msra.mxu0 %v11019_v29  ;;  %7544 = vmatprep.subr.bf16.mxu1 %v11031_v2  ;;  %v12884_v42 = vpop.f32.mrf.mxu1  ;;  %v11061_v29 = vld [vmem:[#allocation22 + $0x72c] ss:$16 sps:$4 sm:$0xff]   ;;  %v11058_v2 = vld [vmem:[#allocation22 + $0x1644] ss:$16 sps:$4 sm:$0xff]  }
 0xc05   :  { %7321 = vmatprep.subr.bf16.mxu0 %v11028_v3  ;;  %v11059_v3 = vld [vmem:[#allocation22 + $0x728] ss:$16 sps:$4 sm:$0xff]  }
 0xc06   :  { %v7236_v18 = vpop.f32.mrf.mxu1 }
 0xc07   :  { %v7027_v23 = vpop.f32.mrf.mxu0  ;;  %7272 = vmatmul.mubr.bf16.vlgmr.msra.gmra.mxu0 %v12868_v10  ;;  %7545 = vmatpush2.bf16.msra.mxu1 %v11029_v51  ;;  %v11067_v51 = vld [vmem:[#allocation22 + $0x70c] ss:$16 sps:$4 sm:$0xff]   ;;  %v11086_v18 = vld [vmem:[#allocation22 + $0x17a0] ss:$16 sps:$4 sm:$0xff]  }
 0xc08   :  { %v12877_v57 = vadd.f32 %v7027_v23, %v6987_v20  ;;  %7322 = vmatpush1.bf16.msra.mxu0 %v11026_v16  ;;  %7546 = vmatprep.subr.bf16.mxu1 %v11037_v61  ;;  %v7237_v47 = vpop.f32.mrf.mxu1  ;;  %v11064_v16 = vld [vmem:[#allocation22 + $0x1624] ss:$16 sps:$4 sm:$0xff]   ;;  %v11065_v61 = vld [vmem:[#allocation22 + $0x708] ss:$16 sps:$4 sm:$0xff]   ;;  %v11073_v20 = vld [vmem:[#allocation22 + $0xaec] ss:$16 sps:$4 sm:$0xff]  }
 0xc09   :  { %v7029_v38 = vpop.f32.mrf.mxu0  ;;  %7323 = vmatprep.subr.bf16.mxu0 %v11034_v13  ;;  %7353 = vmatprep.mubr.bf16.mxu0 %v12870_v28  ;;  %v11062_v13 = vld [vmem:[#allocation22 + $0x1620] ss:$16 sps:$4 sm:$0xff]   ;;  %v11070_v23 = vld [vmem:[#allocation22 + $0x1604] ss:$16 sps:$4 sm:$0xff]   ;;  %v11095_v47 = vld [vmem:[#allocation22 + $0xa68] ss:$16 sps:$4 sm:$0xff]  }
 0xc0a   :  { %v12882_v48 = vadd.f32 %v7029_v38, %v6989_v17  ;;  %v11068_v17 = vld [vmem:[#allocation22 + $0x1600] ss:$16 sps:$4 sm:$0xff]   ;;  %v11077_v38 = vld [vmem:[#allocation22 + $0xac8] ss:$16 sps:$4 sm:$0xff]  }
 0xc0b   :  { %v7031_v31 = vpop.f32.mrf.mxu0  ;;  %7547 = vmatpush2.bf16.msra.mxu1 %v11035_v21  ;;  %v11071_v21 = vld [vmem:[#allocation22 + $0xae8] ss:$16 sps:$4 sm:$0xff]  }
 0xc0c   :  { %7324 = vmatpush1.bf16.msra.mxu0 %v11032_v24  ;;  %7548 = vmatprep.subr.bf16.mxu1 %v11043_v26  ;;  %v11079_v24 = vld [vmem:[#allocation22 + $0xacc] ss:$16 sps:$4 sm:$0xff]   ;;  %v11076_v26 = vld [vmem:[#allocation22 + $0x17e4] ss:$16 sps:$4 sm:$0xff]  }
 0xc0d   :  { %v7032_v41 = vpop.f32.mrf.mxu0  ;;  %7325 = vmatprep.subr.bf16.mxu0 %v11040_v27  ;;  %v11074_v27 = vld [vmem:[#allocation22 + $0x17e0] ss:$16 sps:$4 sm:$0xff]   ;;  %v11085_v31 = vld [vmem:[#allocation22 + $0xaac] ss:$16 sps:$4 sm:$0xff]  }
 0xc0e   :  { %v11091_v41 = vld [vmem:[#allocation22 + $0xa8c] ss:$16 sps:$4 sm:$0xff]  }
 0xc0f   :  { %7549 = vmatpush2.bf16.msra.mxu1 %v11041_v37  ;;  %v11082_v37 = vld [vmem:[#allocation22 + $0x17c4] ss:$16 sps:$4 sm:$0xff]  }
 0xc10   :  { %7326 = vmatpush1.bf16.msra.mxu0 %v11038_v39  ;;  %7550 = vmatprep.subr.bf16.mxu1 %v11049_v59  ;;  %v11083_v39 = vld [vmem:[#allocation22 + $0xaa8] ss:$16 sps:$4 sm:$0xff]   ;;  %v11080_v59 = vld [vmem:[#allocation22 + $0x17c0] ss:$16 sps:$4 sm:$0xff]  }
 0xc11   :  { %7327 = vmatprep.subr.bf16.mxu0 %v11046_v44  ;;  %v11088_v44 = vld [vmem:[#allocation22 + $0x17a4] ss:$16 sps:$4 sm:$0xff]  }
 0xc13   :  { %7551 = vmatpush2.bf16.msra.mxu1 %v11047_v46  ;;  %v11094_v46 = vld [vmem:[#allocation22 + $0x1784] ss:$16 sps:$4 sm:$0xff]  }
 0xc14   :  { %7328 = vmatpush1.bf16.msra.mxu0 %v11044_v49  ;;  %7552 = vmatprep.subr.bf16.mxu1 %v11055_v50  ;;  %v11092_v49 = vld [vmem:[#allocation22 + $0x1780] ss:$16 sps:$4 sm:$0xff]   ;;  %v11103_v50 = vld [vmem:[#allocation22 + $0xa4c] ss:$16 sps:$4 sm:$0xff]  }
 0xc15   :  { %7329 = vmatprep.subr.bf16.mxu0 %v11052_v56  ;;  %v11100_v56 = vld [vmem:[#allocation22 + $0x1764] ss:$16 sps:$4 sm:$0xff]  }
 0xc17   :  { %7553 = vmatpush2.bf16.msra.mxu1 %v11053_v55  ;;  %v11101_v55 = vld [vmem:[#allocation22 + $0xa48] ss:$16 sps:$4 sm:$0xff]  }
 0xc18   :  { %7330 = vmatpush1.bf16.msra.mxu0 %v11050_v62  ;;  %7554 = vmatprep.subr.bf16.mxu1 %v11061_v29  ;;  %v11098_v62 = vld [vmem:[#allocation22 + $0x1760] ss:$16 sps:$4 sm:$0xff]   ;;  %v11109_v29 = vld [vmem:[#allocation22 + $0xa2c] ss:$16 sps:$4 sm:$0xff]  }
 0xc19   :  { %7331 = vmatprep.subr.bf16.mxu0 %v11058_v2  ;;  %v11106_v2 = vld [vmem:[#allocation22 + $0x1744] ss:$16 sps:$4 sm:$0xff]  }
 0xc1b   :  { %7555 = vmatpush2.bf16.msra.mxu1 %v11059_v3  ;;  %v11107_v3 = vld [vmem:[#allocation22 + $0xa28] ss:$16 sps:$4 sm:$0xff]  }
 0xc1c   :  { %7332 = vmatpush1.bf16.msra.mxu0 %v11056_v30  ;;  %7556 = vmatprep.subr.bf16.mxu1 %v11067_v51  ;;  %v11104_v30 = vld [vmem:[#allocation22 + $0x1740] ss:$16 sps:$4 sm:$0xff]   ;;  %v11115_v51 = vld [vmem:[#allocation22 + $0xa0c] ss:$16 sps:$4 sm:$0xff]  }
 0xc1d   :  { %7333 = vmatprep.subr.bf16.mxu0 %v11064_v16  ;;  %v11112_v16 = vld [vmem:[#allocation22 + $0x1724] ss:$16 sps:$4 sm:$0xff]  }
 0xc1f   :  { %7557 = vmatpush2.bf16.msra.mxu1 %v11065_v61  ;;  %v11113_v61 = vld [vmem:[#allocation22 + $0xa08] ss:$16 sps:$4 sm:$0xff]  }
 0xc20   :  { %7334 = vmatpush1.bf16.msra.mxu0 %v11062_v13  ;;  %7608 = vmatprep.subr.bf16.mxu1 %v11073_v20  ;;  %v11110_v13 = vld [vmem:[#allocation22 + $0x1720] ss:$16 sps:$4 sm:$0xff]   ;;  %v11121_v20 = vld [vmem:[#allocation22 + $0xbec] ss:$16 sps:$4 sm:$0xff]  }
 0xc21   :  { %7335 = vmatprep.subr.bf16.mxu0 %v11070_v23  ;;  %v11118_v23 = vld [vmem:[#allocation22 + $0x1704] ss:$16 sps:$4 sm:$0xff]  }
 0xc22   :  { %7559 = vmatmul.mubr.bf16.vlgmr.msra.gmra.mxu1 %v12788_v60  ;;  %v11089_v60 = vld [vmem:[#allocation22 + $0xa88] ss:$16 sps:$4 sm:$0xff]  }
 0xc23   :  { %7609 = vmatpush1.bf16.msra.mxu1 %v11071_v21  ;;  %7640 = vmatprep.mubr.bf16.mxu1 %v12791_v5  ;;  %v11097_v5 = vld [vmem:[#allocation22 + $0xa6c] ss:$16 sps:$4 sm:$0xff]   ;;  %v11119_v21 = vld [vmem:[#allocation22 + $0xbe8] ss:$16 sps:$4 sm:$0xff]  }
 0xc24   :  { %7336 = vmatpush1.bf16.msra.mxu0 %v11068_v17  ;;  %7610 = vmatprep.subr.bf16.mxu1 %v11079_v24  ;;  %v11116_v17 = vld [vmem:[#allocation22 + $0x1700] ss:$16 sps:$4 sm:$0xff]   ;;  %v11128_v24 = vld [vmem:[#allocation22 + $0xbcc] ss:$16 sps:$4 sm:$0xff]  }
 0xc25   :  { %7337 = vmatprep.subr.bf16.mxu0 %v11076_v26  ;;  %v11125_v26 = vld [vmem:[#allocation22 + $0xec] ss:$16 sps:$4 sm:$0xff]  }
 0xc27   :  { %7611 = vmatpush1.bf16.msra.mxu1 %v11077_v38  ;;  %v12890_v38 = vpack.c.bf16 %v12862_v58, %v12862_v58 }
 0xc28   :  { %7338 = vmatpush2.bf16.msra.mxu0 %v11074_v27  ;;  %7612 = vmatprep.subr.bf16.mxu1 %v11085_v31  ;;  %v11126_v27 = vld [vmem:[#allocation22 + $0xbc8] ss:$16 sps:$4 sm:$0xff]  }
 0xc29   :  { %7339 = vmatprep.subr.bf16.mxu0 %v11082_v37  ;;  %v11123_v31 = vld [vmem:[#allocation22 + $0xe8] ss:$16 sps:$4 sm:$0xff]   ;;  %v11134_v37 = vld [vmem:[#allocation22 + $0xbac] ss:$16 sps:$4 sm:$0xff]  }
 0xc2b   :  { %7613 = vmatpush1.bf16.msra.mxu1 %v11083_v39  ;;  %v11131_v39 = vld [vmem:[#allocation22 + $0xcc] ss:$16 sps:$4 sm:$0xff]  }
 0xc2c   :  { %7340 = vmatpush2.bf16.msra.mxu0 %v11080_v59  ;;  %7614 = vmatprep.subr.bf16.mxu1 %v11091_v41  ;;  %v7069_v59 = vadd.f32 %v12822_v19, %v12877_v57 }
 0xc2d   :  { %7341 = vmatprep.subr.bf16.mxu0 %v11088_v44  ;;  %v11132_v44 = vld [vmem:[#allocation22 + $0xba8] ss:$16 sps:$4 sm:$0xff]  }
 0xc2f   :  { %7615 = vmatpush1.bf16.msra.mxu1 %v11089_v60  ;;  %v7071_v60 = vadd.f32 %v12824_v22, %v12882_v48  ;;  %v11135_v22 = vld [vmem:[#allocation22 + $0xa8] ss:$16 sps:$4 sm:$0xff]   ;;  %v11146_v48 = vld [vmem:[#allocation22 + $0xb6c] ss:$16 sps:$4 sm:$0xff]  }
 0xc30   :  { %7342 = vmatpush2.bf16.msra.mxu0 %v11086_v18  ;;  %7616 = vmatprep.subr.bf16.mxu1 %v11097_v5  ;;  %v11129_v18 = vld [vmem:[#allocation22 + $0xc8] ss:$16 sps:$4 sm:$0xff]   ;;  %v11140_v5 = vld [vmem:[#allocation22 + $0xb8c] ss:$16 sps:$4 sm:$0xff]  }
 0xc31   :  { %7343 = vmatprep.subr.bf16.mxu0 %v11094_v46 }
 0xc33   :  { %7617 = vmatpush1.bf16.msra.mxu1 %v11095_v47  ;;  %v11137_v47 = vld [vmem:[#allocation22 + $0xac] ss:$16 sps:$4 sm:$0xff]  }
 0xc34   :  { %7344 = vmatpush2.bf16.msra.mxu0 %v11092_v49  ;;  %7618 = vmatprep.subr.bf16.mxu1 %v11103_v50  ;;  %v11138_v50 = vld [vmem:[#allocation22 + $0xb88] ss:$16 sps:$4 sm:$0xff]  }
 0xc35   :  { %7345 = vmatprep.subr.bf16.mxu0 %v11100_v56 }
 0xc37   :  { %7619 = vmatpush1.bf16.msra.mxu1 %v11101_v55 }
 0xc38   :  { %7346 = vmatpush2.bf16.msra.mxu0 %v11098_v62  ;;  %7620 = vmatprep.subr.bf16.mxu1 %v11109_v29  ;;  %v11143_v62 = vld [vmem:[#allocation22 + $0x8c] ss:$16 sps:$4 sm:$0xff]  }
 0xc39   :  { %7347 = vmatprep.subr.bf16.mxu0 %v11106_v2  ;;  %v11144_v2 = vld [vmem:[#allocation22 + $0xb68] ss:$16 sps:$4 sm:$0xff]  }
 0xc3b   :  { %7621 = vmatpush1.bf16.msra.mxu1 %v11107_v3  ;;  %v11141_v3 = vld [vmem:[#allocation22 + $0x88] ss:$16 sps:$4 sm:$0xff]  }
 0xc3c   :  { %7348 = vmatpush2.bf16.msra.mxu0 %v11104_v30  ;;  %7622 = vmatprep.subr.bf16.mxu1 %v11115_v51  ;;  %v11152_v30 = vld [vmem:[#allocation22 + $0xb4c] ss:$16 sps:$4 sm:$0xff]  }
 0xc3d   :  { %7349 = vmatprep.subr.bf16.mxu0 %v11112_v16  ;;  %v11149_v51 = vld [vmem:[#allocation22 + $0x6c] ss:$16 sps:$4 sm:$0xff]   ;;  %v11150_v16 = vld [vmem:[#allocation22 + $0xb48] ss:$16 sps:$4 sm:$0xff]  }
 0xc3f   :  { %7623 = vmatpush1.bf16.msra.mxu1 %v11113_v61  ;;  %v11147_v61 = vld [vmem:[#allocation22 + $0x68] ss:$16 sps:$4 sm:$0xff]  }
 0xc40   :  { %7350 = vmatpush2.bf16.msra.mxu0 %v11110_v13  ;;  %7624 = vmatprep.subr.bf16.mxu1 %v11121_v20  ;;  %v11158_v13 = vld [vmem:[#allocation22 + $0xb2c] ss:$16 sps:$4 sm:$0xff]  }
 0xc41   :  { %7351 = vmatprep.subr.bf16.mxu0 %v11118_v23  ;;  %v11155_v20 = vld [vmem:[#allocation22 + $0x4c] ss:$16 sps:$4 sm:$0xff]   ;;  %v11156_v23 = vld [vmem:[#allocation22 + $0xb28] ss:$16 sps:$4 sm:$0xff]  }
 0xc42   :  { %v12900_v19 = vpop.f32.mrf.mxu1 }
 0xc43   :  { %7625 = vmatpush2.bf16.msra.mxu1 %v11119_v21  ;;  %v11153_v21 = vld [vmem:[#allocation22 + $0x48] ss:$16 sps:$4 sm:$0xff]  }
 0xc44   :  { %7352 = vmatpush2.bf16.msra.mxu0 %v11116_v17  ;;  %7626 = vmatprep.subr.bf16.mxu1 %v11128_v24  ;;  %v12904_v56 = vpop.f32.mrf.mxu1  ;;  %v11164_v17 = vld [vmem:[#allocation22 + $0xb0c] ss:$16 sps:$4 sm:$0xff]  }
 0xc45   :  { %7403 = vmatprep.subr.bf16.mxu0 %v11125_v26  ;;  %v11161_v24 = vld [vmem:[#allocation22 + $0x2c] ss:$16 sps:$4 sm:$0xff]   ;;  %v11162_v26 = vld [vmem:[#allocation22 + $0xb08] ss:$16 sps:$4 sm:$0xff]  }
 0xc46   :  { %v7318_v29 = vpop.f32.mrf.mxu1 }
 0xc47   :  { %v7109_v41 = vpop.f32.mrf.mxu0  ;;  %7354 = vmatmul.mubr.bf16.vlgmr.msra.gmra.mxu0 %v12890_v38  ;;  %7627 = vmatpush2.bf16.msra.mxu1 %v11126_v27  ;;  %v11159_v27 = vld [vmem:[#allocation22 + $0x28] ss:$16 sps:$4 sm:$0xff]  }
 0xc48   :  { %v12897_v58 = vadd.f32 %v7109_v41, %v7069_v59  ;;  %7404 = vmatpush1.bf16.msra.mxu0 %v11123_v31  ;;  %7628 = vmatprep.subr.bf16.mxu1 %v11134_v37  ;;  %v11170_v31 = vld [vmem:[#allocation22 + $0xeec] ss:$16 sps:$4 sm:$0xff]   ;;  %v11165_v59 = vld [vmem:[#allocation22 + $0x8] ss:$16 sps:$4 sm:$0xff]  }
 0xc49   :  { %v7111_v46 = vpop.f32.mrf.mxu0  ;;  %7405 = vmatprep.subr.bf16.mxu0 %v11131_v39  ;;  %7435 = vmatprep.mubr.bf16.mxu0 %v12663_v32  ;;  %v7319_v32 = vpop.f32.mrf.mxu1  ;;  %v11167_v37 = vld [vmem:[#allocation22 + $0xc] ss:$16 sps:$4 sm:$0xff]   ;;  %v11168_v39 = vld [vmem:[#allocation22 + $0xee8] ss:$16 sps:$4 sm:$0xff]  }
 0xc4a   :  { %v12902_v57 = vadd.f32 %v7111_v46, %v7071_v60  ;;  %v11176_v41 = vld [vmem:[#allocation22 + $0xecc] ss:$16 sps:$4 sm:$0xff]   ;;  %v11174_v60 = vld [vmem:[#allocation22 + $0xec8] ss:$16 sps:$4 sm:$0xff]  }
 0xc4b   :  { %v7113_v49 = vpop.f32.mrf.mxu0  ;;  %7629 = vmatpush2.bf16.msra.mxu1 %v11132_v44  ;;  %v11173_v44 = vld [vmem:[#allocation22 + $0x1ec] ss:$16 sps:$4 sm:$0xff]   ;;  %v11189_v29 = vld [vmem:[#allocation22 + $0x188] ss:$16 sps:$4 sm:$0xff]  }
 0xc4c   :  { %7406 = vmatpush1.bf16.msra.mxu0 %v11129_v18  ;;  %7630 = vmatprep.subr.bf16.mxu1 %v11140_v5  ;;  %v11171_v18 = vld [vmem:[#allocation22 + $0x1e8] ss:$16 sps:$4 sm:$0xff]   ;;  %v11182_v5 = vld [vmem:[#allocation22 + $0xeac] ss:$16 sps:$4 sm:$0xff]  }
 0xc4d   :  { %v7114_v55 = vpop.f32.mrf.mxu0  ;;  %7407 = vmatprep.subr.bf16.mxu0 %v11137_v47  ;;  %v11179_v46 = vld [vmem:[#allocation22 + $0x1cc] ss:$16 sps:$4 sm:$0xff]   ;;  %v11180_v47 = vld [vmem:[#allocation22 + $0xea8] ss:$16 sps:$4 sm:$0xff]  }
 0xc4e   :  { %v11177_v49 = vld [vmem:[#allocation22 + $0x1c8] ss:$16 sps:$4 sm:$0xff]   ;;  %v11191_v55 = vld [vmem:[#allocation22 + $0x18c] ss:$16 sps:$4 sm:$0xff]  }
 0xc4f   :  { %7631 = vmatpush2.bf16.msra.mxu1 %v11138_v50  ;;  %v11188_v50 = vld [vmem:[#allocation22 + $0xe8c] ss:$16 sps:$4 sm:$0xff]  }
 0xc50   :  { %7408 = vmatpush1.bf16.msra.mxu0 %v11135_v22  ;;  %7632 = vmatprep.subr.bf16.mxu1 %v11146_v48  ;;  %v11185_v22 = vld [vmem:[#allocation22 + $0x1ac] ss:$16 sps:$4 sm:$0xff]   ;;  %v11183_v48 = vld [vmem:[#allocation22 + $0x1a8] ss:$16 sps:$4 sm:$0xff]  }
 0xc51   :  { %7409 = vmatprep.subr.bf16.mxu0 %v11143_v62  ;;  %v11192_v62 = vld [vmem:[#allocation22 + $0xe68] ss:$16 sps:$4 sm:$0xff]   ;;  %v11197_v32 = vld [vmem:[#allocation22 + $0x16c] ss:$16 sps:$4 sm:$0xff]  }
 0xc53   :  { %7633 = vmatpush2.bf16.msra.mxu1 %v11144_v2  ;;  %v11200_v2 = vld [vmem:[#allocation22 + $0xe4c] ss:$16 sps:$4 sm:$0xff]  }
 0xc54   :  { %7410 = vmatpush1.bf16.msra.mxu0 %v11141_v3  ;;  %7634 = vmatprep.subr.bf16.mxu1 %v11152_v30  ;;  %v11198_v3 = vld [vmem:[#allocation22 + $0xe48] ss:$16 sps:$4 sm:$0xff]  }
 0xc55   :  { %7411 = vmatprep.subr.bf16.mxu0 %v11149_v51  ;;  %v11195_v30 = vld [vmem:[#allocation22 + $0x168] ss:$16 sps:$4 sm:$0xff]   ;;  %v11206_v51 = vld [vmem:[#allocation22 + $0xe2c] ss:$16 sps:$4 sm:$0xff]  }
 0xc57   :  { %7635 = vmatpush2.bf16.msra.mxu1 %v11150_v16  ;;  %v11203_v16 = vld [vmem:[#allocation22 + $0x14c] ss:$16 sps:$4 sm:$0xff]  }
 0xc58   :  { %7412 = vmatpush1.bf16.msra.mxu0 %v11147_v61  ;;  %7636 = vmatprep.subr.bf16.mxu1 %v11158_v13  ;;  %v11204_v61 = vld [vmem:[#allocation22 + $0xe28] ss:$16 sps:$4 sm:$0xff]  }
 0xc59   :  { %7413 = vmatprep.subr.bf16.mxu0 %v11155_v20  ;;  %v11201_v13 = vld [vmem:[#allocation22 + $0x148] ss:$16 sps:$4 sm:$0xff]   ;;  %v11212_v20 = vld [vmem:[#allocation22 + $0xe0c] ss:$16 sps:$4 sm:$0xff]  }
 0xc5b   :  { %7637 = vmatpush2.bf16.msra.mxu1 %v11156_v23  ;;  %v11209_v23 = vld [vmem:[#allocation22 + $0x12c] ss:$16 sps:$4 sm:$0xff]  }
 0xc5c   :  { %7414 = vmatpush1.bf16.msra.mxu0 %v11153_v21  ;;  %7638 = vmatprep.subr.bf16.mxu1 %v11164_v17  ;;  %v11210_v21 = vld [vmem:[#allocation22 + $0xe08] ss:$16 sps:$4 sm:$0xff]  }
 0xc5d   :  { %7415 = vmatprep.subr.bf16.mxu0 %v11161_v24  ;;  %v11207_v17 = vld [vmem:[#allocation22 + $0x128] ss:$16 sps:$4 sm:$0xff]   ;;  %v11218_v24 = vld [vmem:[#allocation22 + $0xfec] ss:$16 sps:$4 sm:$0xff]  }
 0xc5f   :  { %7639 = vmatpush2.bf16.msra.mxu1 %v11162_v26  ;;  %v11215_v26 = vld [vmem:[#allocation22 + $0x10c] ss:$16 sps:$4 sm:$0xff]  }
 0xc60   :  { %7416 = vmatpush1.bf16.msra.mxu0 %v11159_v27  ;;  %7690 = vmatprep.subr.bf16.mxu1 %v11170_v31  ;;  %v11216_v27 = vld [vmem:[#allocation22 + $0xfe8] ss:$16 sps:$4 sm:$0xff]  }
 0xc61   :  { %7417 = vmatprep.subr.bf16.mxu0 %v11167_v37  ;;  %v11213_v31 = vld [vmem:[#allocation22 + $0x108] ss:$16 sps:$4 sm:$0xff]   ;;  %v11224_v37 = vld [vmem:[#allocation22 + $0xfcc] ss:$16 sps:$4 sm:$0xff]  }
 0xc62   :  { %7641 = vmatmul.mubr.bf16.vlgmr.msra.gmra.mxu1 %v12813_v63  ;;  %v11186_v63 = vld [vmem:[#allocation22 + $0xe88] ss:$16 sps:$4 sm:$0xff]  }
 0xc63   :  { %7691 = vmatpush1.bf16.msra.mxu1 %v11168_v39  ;;  %7722 = vmatprep.mubr.bf16.mxu1 %v12816_v6  ;;  %v11194_v6 = vld [vmem:[#allocation22 + $0xe6c] ss:$16 sps:$4 sm:$0xff]  }
 0xc64   :  { %7418 = vmatpush1.bf16.msra.mxu0 %v11165_v59  ;;  %7692 = vmatprep.subr.bf16.mxu1 %v11176_v41  ;;  %v11221_v39 = vld [vmem:[#allocation22 + $0x4ec] ss:$16 sps:$4 sm:$0xff]   ;;  %v11222_v59 = vld [vmem:[#allocation22 + $0xfc8] ss:$16 sps:$4 sm:$0xff]  }
 0xc65   :  { %7419 = vmatprep.subr.bf16.mxu0 %v11173_v44  ;;  %v11219_v41 = vld [vmem:[#allocation22 + $0x4e8] ss:$16 sps:$4 sm:$0xff]   ;;  %v11230_v44 = vld [vmem:[#allocation22 + $0xfac] ss:$16 sps:$4 sm:$0xff]  }
 0xc67   :  { %7693 = vmatpush1.bf16.msra.mxu1 %v11174_v60  ;;  %v11227_v60 = vld [vmem:[#allocation22 + $0x4cc] ss:$16 sps:$4 sm:$0xff]  }
 0xc68   :  { %7420 = vmatpush2.bf16.msra.mxu0 %v11171_v18  ;;  %7694 = vmatprep.subr.bf16.mxu1 %v11182_v5  ;;  %v7151_v18 = vadd.f32 %v12851_v25, %v12897_v58  ;;  %v12916_v25 = vpop.f32.mrf.mxu1 }
 0xc69   :  { %7421 = vmatprep.subr.bf16.mxu0 %v11179_v46  ;;  %v11228_v46 = vld [vmem:[#allocation22 + $0xfa8] ss:$16 sps:$4 sm:$0xff]  }
 0xc6b   :  { %7695 = vmatpush1.bf16.msra.mxu1 %v11180_v47  ;;  %v7153_v47 = vadd.f32 %v12855_v35, %v12902_v57  ;;  %v11231_v35 = vld [vmem:[#allocation22 + $0x4a8] ss:$16 sps:$4 sm:$0xff]   ;;  %v11242_v57 = vld [vmem:[#allocation22 + $0xf6c] ss:$16 sps:$4 sm:$0xff]  }
 0xc6c   :  { %7422 = vmatpush2.bf16.msra.mxu0 %v11177_v49  ;;  %7696 = vmatprep.subr.bf16.mxu1 %v11188_v50  ;;  %v11225_v50 = vld [vmem:[#allocation22 + $0x4c8] ss:$16 sps:$4 sm:$0xff]  }
 0xc6d   :  { %7423 = vmatprep.subr.bf16.mxu0 %v11185_v22  ;;  %v11236_v22 = vld [vmem:[#allocation22 + $0xf8c] ss:$16 sps:$4 sm:$0xff]  }
 0xc6f   :  { %7697 = vmatpush1.bf16.msra.mxu1 %v11186_v63 }
 0xc70   :  { %7424 = vmatpush2.bf16.msra.mxu0 %v11183_v48  ;;  %7698 = vmatprep.subr.bf16.mxu1 %v11194_v6  ;;  %v11233_v48 = vld [vmem:[#allocation22 + $0x4ac] ss:$16 sps:$4 sm:$0xff]   ;;  %v11234_v6 = vld [vmem:[#allocation22 + $0xf88] ss:$16 sps:$4 sm:$0xff]  }
 0xc71   :  { %7425 = vmatprep.subr.bf16.mxu0 %v11191_v55  ;;  %v12920_v55 = vpop.f32.mrf.mxu1 }
 0xc73   :  { %7699 = vmatpush1.bf16.msra.mxu1 %v11192_v62 }
 0xc74   :  { %7426 = vmatpush2.bf16.msra.mxu0 %v11189_v29  ;;  %7700 = vmatprep.subr.bf16.mxu1 %v11200_v2  ;;  %v11239_v29 = vld [vmem:[#allocation22 + $0x48c] ss:$16 sps:$4 sm:$0xff]   ;;  %v7400_v2 = vpop.f32.mrf.mxu1 }
 0xc75   :  { %7427 = vmatprep.subr.bf16.mxu0 %v11197_v32  ;;  %v11240_v32 = vld [vmem:[#allocation22 + $0xf68] ss:$16 sps:$4 sm:$0xff]  }
 0xc76   :  { %v11291_v2 = vld [vmem:[#allocation22 + $0x568] ss:$16 sps:$4 sm:$0xff]  }
 0xc77   :  { %7701 = vmatpush1.bf16.msra.mxu1 %v11198_v3  ;;  %v11237_v3 = vld [vmem:[#allocation22 + $0x488] ss:$16 sps:$4 sm:$0xff]  }
 0xc78   :  { %7428 = vmatpush2.bf16.msra.mxu0 %v11195_v30  ;;  %7702 = vmatprep.subr.bf16.mxu1 %v11206_v51  ;;  %v11248_v30 = vld [vmem:[#allocation22 + $0xf4c] ss:$16 sps:$4 sm:$0xff]  }
 0xc79   :  { %7429 = vmatprep.subr.bf16.mxu0 %v11203_v16  ;;  %v11245_v51 = vld [vmem:[#allocation22 + $0x46c] ss:$16 sps:$4 sm:$0xff]   ;;  %v11246_v16 = vld [vmem:[#allocation22 + $0xf48] ss:$16 sps:$4 sm:$0xff]  }
 0xc7b   :  { %7703 = vmatpush1.bf16.msra.mxu1 %v11204_v61  ;;  %v11243_v61 = vld [vmem:[#allocation22 + $0x468] ss:$16 sps:$4 sm:$0xff]  }
 0xc7c   :  { %7430 = vmatpush2.bf16.msra.mxu0 %v11201_v13  ;;  %7704 = vmatprep.subr.bf16.mxu1 %v11212_v20  ;;  %v11254_v13 = vld [vmem:[#allocation22 + $0xf2c] ss:$16 sps:$4 sm:$0xff]  }
 0xc7d   :  { %7431 = vmatprep.subr.bf16.mxu0 %v11209_v23  ;;  %v11251_v20 = vld [vmem:[#allocation22 + $0x44c] ss:$16 sps:$4 sm:$0xff]   ;;  %v11252_v23 = vld [vmem:[#allocation22 + $0xf28] ss:$16 sps:$4 sm:$0xff]  }
 0xc7f   :  { %7705 = vmatpush1.bf16.msra.mxu1 %v11210_v21  ;;  %v11249_v21 = vld [vmem:[#allocation22 + $0x448] ss:$16 sps:$4 sm:$0xff]  }
 0xc80   :  { %7432 = vmatpush2.bf16.msra.mxu0 %v11207_v17  ;;  %7706 = vmatprep.subr.bf16.mxu1 %v11218_v24  ;;  %v11260_v17 = vld [vmem:[#allocation22 + $0xf0c] ss:$16 sps:$4 sm:$0xff]  }
 0xc81   :  { %7433 = vmatprep.subr.bf16.mxu0 %v11215_v26  ;;  %v11257_v24 = vld [vmem:[#allocation22 + $0x42c] ss:$16 sps:$4 sm:$0xff]   ;;  %v11258_v26 = vld [vmem:[#allocation22 + $0xf08] ss:$16 sps:$4 sm:$0xff]  }
 0xc83   :  { %7707 = vmatpush2.bf16.msra.mxu1 %v11216_v27  ;;  %v11255_v27 = vld [vmem:[#allocation22 + $0x428] ss:$16 sps:$4 sm:$0xff]  }
 0xc84   :  { %7434 = vmatpush2.bf16.msra.mxu0 %v11213_v31  ;;  %7708 = vmatprep.subr.bf16.mxu1 %v11224_v37  ;;  %v11266_v31 = vld [vmem:[#allocation22 + $0x12ec] ss:$16 sps:$4 sm:$0xff]  }
 0xc85   :  { %7485 = vmatprep.subr.bf16.mxu0 %v11221_v39  ;;  %v11263_v37 = vld [vmem:[#allocation22 + $0x40c] ss:$16 sps:$4 sm:$0xff]   ;;  %v11264_v39 = vld [vmem:[#allocation22 + $0x12e8] ss:$16 sps:$4 sm:$0xff]  }
 0xc87   :  { %v7191_v5 = vpop.f32.mrf.mxu0  ;;  %7436 = vmatmul.mubr.bf16.vlgmr.msra.gmra.mxu0 %v12679_v9  ;;  %7709 = vmatpush2.bf16.msra.mxu1 %v11222_v59  ;;  %v11261_v59 = vld [vmem:[#allocation22 + $0x408] ss:$16 sps:$4 sm:$0xff]  }
 0xc88   :  { %v12913_v49 = vadd.f32 %v7191_v5, %v7151_v18  ;;  %7486 = vmatpush1.bf16.msra.mxu0 %v11219_v41  ;;  %7710 = vmatprep.subr.bf16.mxu1 %v11230_v44  ;;  %v11272_v41 = vld [vmem:[#allocation22 + $0x12cc] ss:$16 sps:$4 sm:$0xff]   ;;  %v11267_v18 = vld [vmem:[#allocation22 + $0x5e8] ss:$16 sps:$4 sm:$0xff]  }
 0xc89   :  { %v7193_v63 = vpop.f32.mrf.mxu0  ;;  %7487 = vmatprep.subr.bf16.mxu0 %v11227_v60  ;;  %7517 = vmatprep.mubr.bf16.mxu0 %v12681_v11  ;;  %v7401_v11 = vpop.f32.mrf.mxu1  ;;  %v11269_v44 = vld [vmem:[#allocation22 + $0x5ec] ss:$16 sps:$4 sm:$0xff]   ;;  %v11270_v60 = vld [vmem:[#allocation22 + $0x12c8] ss:$16 sps:$4 sm:$0xff]  }
 0xc8a   :  { %v12918_v58 = vadd.f32 %v7193_v63, %v7153_v47  ;;  %v11278_v5 = vld [vmem:[#allocation22 + $0x12ac] ss:$16 sps:$4 sm:$0xff]   ;;  %v11276_v47 = vld [vmem:[#allocation22 + $0x12a8] ss:$16 sps:$4 sm:$0xff]  }
 0xc8b   :  { %v7195_v9 = vpop.f32.mrf.mxu0  ;;  %7711 = vmatpush2.bf16.msra.mxu1 %v11228_v46  ;;  %v11275_v46 = vld [vmem:[#allocation22 + $0x5cc] ss:$16 sps:$4 sm:$0xff]  }
 0xc8c   :  { %7488 = vmatpush1.bf16.msra.mxu0 %v11225_v50  ;;  %7712 = vmatprep.subr.bf16.mxu1 %v11236_v22  ;;  %v11273_v50 = vld [vmem:[#allocation22 + $0x5c8] ss:$16 sps:$4 sm:$0xff]   ;;  %v11284_v22 = vld [vmem:[#allocation22 + $0x128c] ss:$16 sps:$4 sm:$0xff]  }
 0xc8d   :  { %v7196_v62 = vpop.f32.mrf.mxu0  ;;  %7489 = vmatprep.subr.bf16.mxu0 %v11233_v48  ;;  %v11281_v63 = vld [vmem:[#allocation22 + $0x5ac] ss:$16 sps:$4 sm:$0xff]   ;;  %v11279_v48 = vld [vmem:[#allocation22 + $0x5a8] ss:$16 sps:$4 sm:$0xff]  }
 0xc8e   :  { %v11287_v9 = vld [vmem:[#allocation22 + $0x58c] ss:$16 sps:$4 sm:$0xff]  }
 0xc8f   :  { %7713 = vmatpush2.bf16.msra.mxu1 %v11234_v6  ;;  %v11288_v6 = vld [vmem:[#allocation22 + $0x1268] ss:$16 sps:$4 sm:$0xff]   ;;  %v11293_v62 = vld [vmem:[#allocation22 + $0x56c] ss:$16 sps:$4 sm:$0xff]  }
 0xc90   :  { %7490 = vmatpush1.bf16.msra.mxu0 %v11231_v35  ;;  %7714 = vmatprep.subr.bf16.mxu1 %v11242_v57  ;;  %v11285_v35 = vld [vmem:[#allocation22 + $0x588] ss:$16 sps:$4 sm:$0xff]   ;;  %v11296_v57 = vld [vmem:[#allocation22 + $0x124c] ss:$16 sps:$4 sm:$0xff]  }
 0xc91   :  { %7491 = vmatprep.subr.bf16.mxu0 %v11239_v29  ;;  %v11294_v29 = vld [vmem:[#allocation22 + $0x1248] ss:$16 sps:$4 sm:$0xff]   ;;  %v11299_v11 = vld [vmem:[#allocation22 + $0x54c] ss:$16 sps:$4 sm:$0xff]  }
 0xc93   :  { %7715 = vmatpush2.bf16.msra.mxu1 %v11240_v32  ;;  %v11302_v32 = vld [vmem:[#allocation22 + $0x122c] ss:$16 sps:$4 sm:$0xff]  }
 0xc94   :  { %7492 = vmatpush1.bf16.msra.mxu0 %v11237_v3  ;;  %7716 = vmatprep.subr.bf16.mxu1 %v11248_v30  ;;  %v11300_v3 = vld [vmem:[#allocation22 + $0x1228] ss:$16 sps:$4 sm:$0xff]  }
 0xc95   :  { %7493 = vmatprep.subr.bf16.mxu0 %v11245_v51  ;;  %v11297_v30 = vld [vmem:[#allocation22 + $0x548] ss:$16 sps:$4 sm:$0xff]   ;;  %v11308_v51 = vld [vmem:[#allocation22 + $0x120c] ss:$16 sps:$4 sm:$0xff]  }
 0xc97   :  { %7717 = vmatpush2.bf16.msra.mxu1 %v11246_v16  ;;  %v11305_v16 = vld [vmem:[#allocation22 + $0x52c] ss:$16 sps:$4 sm:$0xff]  }
 0xc98   :  { %7494 = vmatpush1.bf16.msra.mxu0 %v11243_v61  ;;  %7718 = vmatprep.subr.bf16.mxu1 %v11254_v13  ;;  %v11306_v61 = vld [vmem:[#allocation22 + $0x1208] ss:$16 sps:$4 sm:$0xff]  }
 0xc99   :  { %7495 = vmatprep.subr.bf16.mxu0 %v11251_v20  ;;  %v11303_v13 = vld [vmem:[#allocation22 + $0x528] ss:$16 sps:$4 sm:$0xff]   ;;  %v11314_v20 = vld [vmem:[#allocation22 + $0x13ec] ss:$16 sps:$4 sm:$0xff]  }
 0xc9b   :  { %7719 = vmatpush2.bf16.msra.mxu1 %v11252_v23  ;;  %v11311_v23 = vld [vmem:[#allocation22 + $0x50c] ss:$16 sps:$4 sm:$0xff]  }
 0xc9c   :  { %7496 = vmatpush1.bf16.msra.mxu0 %v11249_v21  ;;  %7720 = vmatprep.subr.bf16.mxu1 %v11260_v17  ;;  %v11312_v21 = vld [vmem:[#allocation22 + $0x13e8] ss:$16 sps:$4 sm:$0xff]  }
 0xc9d   :  { %7497 = vmatprep.subr.bf16.mxu0 %v11257_v24  ;;  %v11309_v17 = vld [vmem:[#allocation22 + $0x508] ss:$16 sps:$4 sm:$0xff]   ;;  %v11320_v24 = vld [vmem:[#allocation22 + $0x13cc] ss:$16 sps:$4 sm:$0xff]  }
 0xc9f   :  { %7721 = vmatpush2.bf16.msra.mxu1 %v11258_v26  ;;  %v11317_v26 = vld [vmem:[#allocation22 + $0x8ec] ss:$16 sps:$4 sm:$0xff]  }
 0xca0   :  { %7498 = vmatpush1.bf16.msra.mxu0 %v11255_v27  ;;  %7772 = vmatprep.subr.bf16.mxu1 %v11266_v31  ;;  %v11318_v27 = vld [vmem:[#allocation22 + $0x13c8] ss:$16 sps:$4 sm:$0xff]  }
 0xca1   :  { %7499 = vmatprep.subr.bf16.mxu0 %v11263_v37  ;;  %v11315_v31 = vld [vmem:[#allocation22 + $0x8e8] ss:$16 sps:$4 sm:$0xff]   ;;  %v11326_v37 = vld [vmem:[#allocation22 + $0x13ac] ss:$16 sps:$4 sm:$0xff]  }
 0xca2   :  { %7723 = vmatmul.mubr.bf16.vlgmr.msra.gmra.mxu1 %v12841_v34  ;;  %v11282_v34 = vld [vmem:[#allocation22 + $0x1288] ss:$16 sps:$4 sm:$0xff]  }
 0xca3   :  { %7773 = vmatpush1.bf16.msra.mxu1 %v11264_v39  ;;  %7804 = vmatprep.mubr.bf16.mxu1 %v12844_v45  ;;  %v11290_v45 = vld [vmem:[#allocation22 + $0x126c] ss:$16 sps:$4 sm:$0xff]  }
 0xca4   :  { %7500 = vmatpush1.bf16.msra.mxu0 %v11261_v59  ;;  %7774 = vmatprep.subr.bf16.mxu1 %v11272_v41  ;;  %v11323_v39 = vld [vmem:[#allocation22 + $0x8cc] ss:$16 sps:$4 sm:$0xff]   ;;  %v7233_v59 = vadd.f32 %v12880_v15, %v12913_v49  ;;  %v12932_v15 = vpop.f32.mrf.mxu1 }
 0xca5   :  { %7501 = vmatprep.subr.bf16.mxu0 %v11269_v44  ;;  %v11324_v44 = vld [vmem:[#allocation22 + $0x13a8] ss:$16 sps:$4 sm:$0xff]  }
 0xca7   :  { %7775 = vmatpush1.bf16.msra.mxu1 %v11270_v60  ;;  %v7235_v60 = vadd.f32 %v12884_v42, %v12918_v58  ;;  %v11327_v42 = vld [vmem:[#allocation22 + $0x8a8] ss:$16 sps:$4 sm:$0xff]   ;;  %v11338_v58 = vld [vmem:[#allocation22 + $0x136c] ss:$16 sps:$4 sm:$0xff]  }
 0xca8   :  { %7502 = vmatpush2.bf16.msra.mxu0 %v11267_v18  ;;  %7776 = vmatprep.subr.bf16.mxu1 %v11278_v5  ;;  %v11321_v5 = vld [vmem:[#allocation22 + $0x8c8] ss:$16 sps:$4 sm:$0xff]  }
 0xca9   :  { %7503 = vmatprep.subr.bf16.mxu0 %v11275_v46  ;;  %v11332_v46 = vld [vmem:[#allocation22 + $0x138c] ss:$16 sps:$4 sm:$0xff]  }
 0xcab   :  { %7777 = vmatpush1.bf16.msra.mxu1 %v11276_v47 }
 0xcac   :  { %7504 = vmatpush2.bf16.msra.mxu0 %v11273_v50  ;;  %7778 = vmatprep.subr.bf16.mxu1 %v11284_v22  ;;  %v11329_v50 = vld [vmem:[#allocation22 + $0x8ac] ss:$16 sps:$4 sm:$0xff]   ;;  %v11330_v22 = vld [vmem:[#allocation22 + $0x1388] ss:$16 sps:$4 sm:$0xff]  }
 0xcad   :  { %7505 = vmatprep.subr.bf16.mxu0 %v11281_v63  ;;  %v12936_v63 = vpop.f32.mrf.mxu1 }
 0xcaf   :  { %7779 = vmatpush1.bf16.msra.mxu1 %v11282_v34 }
 0xcb0   :  { %7506 = vmatpush2.bf16.msra.mxu0 %v11279_v48  ;;  %7780 = vmatprep.subr.bf16.mxu1 %v11290_v45  ;;  %v11335_v48 = vld [vmem:[#allocation22 + $0x88c] ss:$16 sps:$4 sm:$0xff]   ;;  %v7482_v45 = vpop.f32.mrf.mxu1 }
 0xcb1   :  { %7507 = vmatprep.subr.bf16.mxu0 %v11287_v9  ;;  %v11336_v9 = vld [vmem:[#allocation22 + $0x1368] ss:$16 sps:$4 sm:$0xff]  }
 0xcb2   :  { %v11393_v45 = vld [vmem:[#allocation22 + $0x948] ss:$16 sps:$4 sm:$0xff]  }
 0xcb3   :  { %7781 = vmatpush1.bf16.msra.mxu1 %v11288_v6  ;;  %v11333_v6 = vld [vmem:[#allocation22 + $0x888] ss:$16 sps:$4 sm:$0xff]  }
 0xcb4   :  { %7508 = vmatpush2.bf16.msra.mxu0 %v11285_v35  ;;  %7782 = vmatprep.subr.bf16.mxu1 %v11296_v57  ;;  %v11344_v35 = vld [vmem:[#allocation22 + $0x134c] ss:$16 sps:$4 sm:$0xff]  }
 0xcb5   :  { %7509 = vmatprep.subr.bf16.mxu0 %v11293_v62  ;;  %v11341_v57 = vld [vmem:[#allocation22 + $0x86c] ss:$16 sps:$4 sm:$0xff]   ;;  %v11342_v62 = vld [vmem:[#allocation22 + $0x1348] ss:$16 sps:$4 sm:$0xff]  }
 0xcb7   :  { %7783 = vmatpush1.bf16.msra.mxu1 %v11294_v29  ;;  %v11339_v29 = vld [vmem:[#allocation22 + $0x868] ss:$16 sps:$4 sm:$0xff]  }
 0xcb8   :  { %7510 = vmatpush2.bf16.msra.mxu0 %v11291_v2  ;;  %7784 = vmatprep.subr.bf16.mxu1 %v11302_v32  ;;  %v11350_v2 = vld [vmem:[#allocation22 + $0x132c] ss:$16 sps:$4 sm:$0xff]  }
 0xcb9   :  { %7511 = vmatprep.subr.bf16.mxu0 %v11299_v11  ;;  %v11347_v32 = vld [vmem:[#allocation22 + $0x84c] ss:$16 sps:$4 sm:$0xff]   ;;  %v11348_v11 = vld [vmem:[#allocation22 + $0x1328] ss:$16 sps:$4 sm:$0xff]  }
 0xcbb   :  { %7785 = vmatpush1.bf16.msra.mxu1 %v11300_v3  ;;  %v11345_v3 = vld [vmem:[#allocation22 + $0x848] ss:$16 sps:$4 sm:$0xff]  }
 0xcbc   :  { %7512 = vmatpush2.bf16.msra.mxu0 %v11297_v30  ;;  %7786 = vmatprep.subr.bf16.mxu1 %v11308_v51  ;;  %v11356_v30 = vld [vmem:[#allocation22 + $0x130c] ss:$16 sps:$4 sm:$0xff]  }
 0xcbd   :  { %7513 = vmatprep.subr.bf16.mxu0 %v11305_v16  ;;  %v11353_v51 = vld [vmem:[#allocation22 + $0x82c] ss:$16 sps:$4 sm:$0xff]   ;;  %v11354_v16 = vld [vmem:[#allocation22 + $0x1308] ss:$16 sps:$4 sm:$0xff]  }
 0xcbf   :  { %7787 = vmatpush1.bf16.msra.mxu1 %v11306_v61  ;;  %v11351_v61 = vld [vmem:[#allocation22 + $0x828] ss:$16 sps:$4 sm:$0xff]  }
 0xcc0   :  { %7514 = vmatpush2.bf16.msra.mxu0 %v11303_v13  ;;  %7788 = vmatprep.subr.bf16.mxu1 %v11314_v20  ;;  %v11362_v13 = vld [vmem:[#allocation22 + $0x16ec] ss:$16 sps:$4 sm:$0xff]  }
 0xcc1   :  { %7515 = vmatprep.subr.bf16.mxu0 %v11311_v23  ;;  %v11359_v20 = vld [vmem:[#allocation22 + $0x80c] ss:$16 sps:$4 sm:$0xff]   ;;  %v11360_v23 = vld [vmem:[#allocation22 + $0x16e8] ss:$16 sps:$4 sm:$0xff]  }
 0xcc3   :  { %7789 = vmatpush2.bf16.msra.mxu1 %v11312_v21  ;;  %v11357_v21 = vld [vmem:[#allocation22 + $0x808] ss:$16 sps:$4 sm:$0xff]  }
 0xcc4   :  { %7516 = vmatpush2.bf16.msra.mxu0 %v11309_v17  ;;  %7790 = vmatprep.subr.bf16.mxu1 %v11320_v24  ;;  %v11368_v17 = vld [vmem:[#allocation22 + $0x16cc] ss:$16 sps:$4 sm:$0xff]  }
 0xcc5   :  { %7567 = vmatprep.subr.bf16.mxu0 %v11317_v26  ;;  %v11365_v24 = vld [vmem:[#allocation22 + $0x9ec] ss:$16 sps:$4 sm:$0xff]   ;;  %v11366_v26 = vld [vmem:[#allocation22 + $0x16c8] ss:$16 sps:$4 sm:$0xff]  }
 0xcc7   :  { %v7273_v41 = vpop.f32.mrf.mxu0  ;;  %7518 = vmatmul.mubr.bf16.vlgmr.msra.gmra.mxu0 %v12696_v53  ;;  %7791 = vmatpush2.bf16.msra.mxu1 %v11318_v27  ;;  %v11363_v27 = vld [vmem:[#allocation22 + $0x9e8] ss:$16 sps:$4 sm:$0xff]  }
 0xcc8   :  { %v12929_v18 = vadd.f32 %v7273_v41, %v7233_v59  ;;  %7568 = vmatpush1.bf16.msra.mxu0 %v11315_v31  ;;  %7792 = vmatprep.subr.bf16.mxu1 %v11326_v37  ;;  %v11374_v31 = vld [vmem:[#allocation22 + $0x16ac] ss:$16 sps:$4 sm:$0xff]   ;;  %v11369_v59 = vld [vmem:[#allocation22 + $0x9c8] ss:$16 sps:$4 sm:$0xff]  }
 0xcc9   :  { %v7275_v47 = vpop.f32.mrf.mxu0  ;;  %7569 = vmatprep.subr.bf16.mxu0 %v11323_v39  ;;  %7599 = vmatprep.mubr.bf16.mxu0 %v12698_v54  ;;  %v7483_v54 = vpop.f32.mrf.mxu1  ;;  %v11371_v37 = vld [vmem:[#allocation22 + $0x9cc] ss:$16 sps:$4 sm:$0xff]   ;;  %v11372_v39 = vld [vmem:[#allocation22 + $0x16a8] ss:$16 sps:$4 sm:$0xff]  }
 0xcca   :  { %v12934_v49 = vadd.f32 %v7275_v47, %v7235_v60  ;;  %v11380_v41 = vld [vmem:[#allocation22 + $0x168c] ss:$16 sps:$4 sm:$0xff]   ;;  %v11375_v60 = vld [vmem:[#allocation22 + $0x9a8] ss:$16 sps:$4 sm:$0xff]  }
 0xccb   :  { %v7277_v53 = vpop.f32.mrf.mxu0  ;;  %7793 = vmatpush2.bf16.msra.mxu1 %v11324_v44  ;;  %v11377_v44 = vld [vmem:[#allocation22 + $0x9ac] ss:$16 sps:$4 sm:$0xff]   ;;  %v11381_v47 = vld [vmem:[#allocation22 + $0x988] ss:$16 sps:$4 sm:$0xff]  }
 0xccc   :  { %7570 = vmatpush1.bf16.msra.mxu0 %v11321_v5  ;;  %7794 = vmatprep.subr.bf16.mxu1 %v11332_v46  ;;  %v11383_v5 = vld [vmem:[#allocation22 + $0x98c] ss:$16 sps:$4 sm:$0xff]   ;;  %v11384_v46 = vld [vmem:[#allocation22 + $0x1668] ss:$16 sps:$4 sm:$0xff]  }
 0xccd   :  { %v7278_v34 = vpop.f32.mrf.mxu0  ;;  %7571 = vmatprep.subr.bf16.mxu0 %v11329_v50  ;;  %v11392_v50 = vld [vmem:[#allocation22 + $0x164c] ss:$16 sps:$4 sm:$0xff]  }
 0xcce   :  { %v11389_v53 = vld [vmem:[#allocation22 + $0x96c] ss:$16 sps:$4 sm:$0xff]  }
 0xccf   :  { %7795 = vmatpush2.bf16.msra.mxu1 %v11330_v22  ;;  %v11390_v22 = vld [vmem:[#allocation22 + $0x1648] ss:$16 sps:$4 sm:$0xff]   ;;  %v11395_v34 = vld [vmem:[#allocation22 + $0x94c] ss:$16 sps:$4 sm:$0xff]  }
 0xcd0   :  { %7572 = vmatpush1.bf16.msra.mxu0 %v11327_v42  ;;  %7796 = vmatprep.subr.bf16.mxu1 %v11338_v58  ;;  %v11387_v42 = vld [vmem:[#allocation22 + $0x968] ss:$16 sps:$4 sm:$0xff]   ;;  %v11398_v58 = vld [vmem:[#allocation22 + $0x162c] ss:$16 sps:$4 sm:$0xff]  }
 0xcd1   :  { %7573 = vmatprep.subr.bf16.mxu0 %v11335_v48  ;;  %v11396_v48 = vld [vmem:[#allocation22 + $0x1628] ss:$16 sps:$4 sm:$0xff]   ;;  %v11401_v54 = vld [vmem:[#allocation22 + $0x92c] ss:$16 sps:$4 sm:$0xff]  }
 0xcd3   :  { %7797 = vmatpush2.bf16.msra.mxu1 %v11336_v9  ;;  %v11404_v9 = vld [vmem:[#allocation22 + $0x160c] ss:$16 sps:$4 sm:$0xff]  }
 0xcd4   :  { %7574 = vmatpush1.bf16.msra.mxu0 %v11333_v6  ;;  %7798 = vmatprep.subr.bf16.mxu1 %v11344_v35  ;;  %v11402_v6 = vld [vmem:[#allocation22 + $0x1608] ss:$16 sps:$4 sm:$0xff]  }
 0xcd5   :  { %7575 = vmatprep.subr.bf16.mxu0 %v11341_v57  ;;  %v11399_v35 = vld [vmem:[#allocation22 + $0x928] ss:$16 sps:$4 sm:$0xff]   ;;  %v11410_v57 = vld [vmem:[#allocation22 + $0x17ec] ss:$16 sps:$4 sm:$0xff]  }
 0xcd7   :  { %7799 = vmatpush2.bf16.msra.mxu1 %v11342_v62  ;;  %v11407_v62 = vld [vmem:[#allocation22 + $0x90c] ss:$16 sps:$4 sm:$0xff]  }
 0xcd8   :  { %7576 = vmatpush1.bf16.msra.mxu0 %v11339_v29  ;;  %7800 = vmatprep.subr.bf16.mxu1 %v11350_v2  ;;  %v11408_v29 = vld [vmem:[#allocation22 + $0x17e8] ss:$16 sps:$4 sm:$0xff]  }
 0xcd9   :  { %7577 = vmatprep.subr.bf16.mxu0 %v11347_v32  ;;  %v11405_v2 = vld [vmem:[#allocation22 + $0x908] ss:$16 sps:$4 sm:$0xff]   ;;  %v11416_v32 = vld [vmem:[#allocation22 + $0x17cc] ss:$16 sps:$4 sm:$0xff]  }
 0xcdb   :  { %7801 = vmatpush2.bf16.msra.mxu1 %v11348_v11  ;;  %v11413_v11 = vld [vmem:[#allocation22 + $0xcec] ss:$16 sps:$4 sm:$0xff]  }
 0xcdc   :  { %7578 = vmatpush1.bf16.msra.mxu0 %v11345_v3  ;;  %7802 = vmatprep.subr.bf16.mxu1 %v11356_v30  ;;  %v11414_v3 = vld [vmem:[#allocation22 + $0x17c8] ss:$16 sps:$4 sm:$0xff]  }
 0xcdd   :  { %7579 = vmatprep.subr.bf16.mxu0 %v11353_v51  ;;  %v11411_v30 = vld [vmem:[#allocation22 + $0xce8] ss:$16 sps:$4 sm:$0xff]   ;;  %v11422_v51 = vld [vmem:[#allocation22 + $0x17ac] ss:$16 sps:$4 sm:$0xff]  }
 0xcdf   :  { %7803 = vmatpush2.bf16.msra.mxu1 %v11354_v16  ;;  %v11419_v16 = vld [vmem:[#allocation22 + $0xccc] ss:$16 sps:$4 sm:$0xff]  }
 0xce0   :  { %7580 = vmatpush1.bf16.msra.mxu0 %v11351_v61  ;;  %7854 = vmatprep.subr.bf16.mxu1 %v11362_v13  ;;  %v11420_v13 = vld [vmem:[#allocation22 + $0x17a8] ss:$16 sps:$4 sm:$0xff]  }
 0xce1   :  { %7581 = vmatprep.subr.bf16.mxu0 %v11359_v20  ;;  %v11417_v20 = vld [vmem:[#allocation22 + $0xcc8] ss:$16 sps:$4 sm:$0xff]  }
 0xce2   :  { %7805 = vmatmul.mubr.bf16.vlgmr.msra.gmra.mxu1 %v12868_v10  ;;  %v11378_v10 = vld [vmem:[#allocation22 + $0x1688] ss:$16 sps:$4 sm:$0xff]  }
 0xce3   :  { %7855 = vmatpush1.bf16.msra.mxu1 %v11360_v23  ;;  %7886 = vmatprep.mubr.bf16.mxu1 %v12870_v28  ;;  %v11386_v28 = vld [vmem:[#allocation22 + $0x166c] ss:$16 sps:$4 sm:$0xff]  }
 0xce4   :  { %7582 = vmatpush1.bf16.msra.mxu0 %v11357_v21  ;;  %7856 = vmatprep.subr.bf16.mxu1 %v11368_v17  ;;  %v11428_v23 = vld [vmem:[#allocation22 + $0x178c] ss:$16 sps:$4 sm:$0xff]  }
 0xce5   :  { %7583 = vmatprep.subr.bf16.mxu0 %v11365_v24  ;;  %v11425_v17 = vld [vmem:[#allocation22 + $0xcac] ss:$16 sps:$4 sm:$0xff]   ;;  %v12944_v24 = vpop.f32.mrf.mxu1 }
 0xce7   :  { %7857 = vmatpush1.bf16.msra.mxu1 %v11366_v26 }
 0xce8   :  { %7584 = vmatpush2.bf16.msra.mxu0 %v11363_v27  ;;  %7858 = vmatprep.subr.bf16.mxu1 %v11374_v31  ;;  %v11426_v27 = vld [vmem:[#allocation22 + $0x1788] ss:$16 sps:$4 sm:$0xff]   ;;  %v12946_v31 = vpop.f32.mrf.mxu1 }
 0xce9   :  { %7585 = vmatprep.subr.bf16.mxu0 %v11371_v37  ;;  %v11434_v37 = vld [vmem:[#allocation22 + $0x176c] ss:$16 sps:$4 sm:$0xff]  }
 0xceb   :  { %7859 = vmatpush1.bf16.msra.mxu1 %v11372_v39 }
 0xcec   :  { %7586 = vmatpush2.bf16.msra.mxu0 %v11369_v59  ;;  %7860 = vmatprep.subr.bf16.mxu1 %v11380_v41  ;;  %v11431_v59 = vld [vmem:[#allocation22 + $0xc8c] ss:$16 sps:$4 sm:$0xff]   ;;  %v7564_v41 = vpop.f32.mrf.mxu1 }
 0xced   :  { %7587 = vmatprep.subr.bf16.mxu0 %v11377_v44  ;;  %v11432_v44 = vld [vmem:[#allocation22 + $0x1768] ss:$16 sps:$4 sm:$0xff]  }
 0xcee   :  { %v11478_v41 = vld [vmem:[#allocation22 + $0xd68] ss:$16 sps:$4 sm:$0xff]  }
 0xcef   :  { %7861 = vmatpush1.bf16.msra.mxu1 %v11378_v10  ;;  %v7565_v10 = vpop.f32.mrf.mxu1 }
 0xcf0   :  { %7588 = vmatpush2.bf16.msra.mxu0 %v11375_v60  ;;  %7862 = vmatprep.subr.bf16.mxu1 %v11386_v28  ;;  %v11440_v60 = vld [vmem:[#allocation22 + $0x174c] ss:$16 sps:$4 sm:$0xff]  }
 0xcf1   :  { %7589 = vmatprep.subr.bf16.mxu0 %v11383_v5  ;;  %v11437_v28 = vld [vmem:[#allocation22 + $0xc6c] ss:$16 sps:$4 sm:$0xff]   ;;  %v7317_v5 = vadd.f32 %v12904_v56, %v12934_v49  ;;  %v11450_v56 = vld [vmem:[#allocation22 + $0x1708] ss:$16 sps:$4 sm:$0xff]  }
 0xcf2   :  { %v11447_v49 = vld [vmem:[#allocation22 + $0xc28] ss:$16 sps:$4 sm:$0xff]   ;;  %v11485_v10 = vld [vmem:[#allocation22 + $0xd4c] ss:$16 sps:$4 sm:$0xff]  }
 0xcf3   :  { %7863 = vmatpush1.bf16.msra.mxu1 %v11384_v46  ;;  %v11438_v46 = vld [vmem:[#allocation22 + $0x1748] ss:$16 sps:$4 sm:$0xff]  }
 0xcf4   :  { %7590 = vmatpush2.bf16.msra.mxu0 %v11381_v47  ;;  %7864 = vmatprep.subr.bf16.mxu1 %v11392_v50  ;;  %v11435_v47 = vld [vmem:[#allocation22 + $0xc68] ss:$16 sps:$4 sm:$0xff]   ;;  %v11446_v50 = vld [vmem:[#allocation22 + $0x172c] ss:$16 sps:$4 sm:$0xff]  }
 0xcf5   :  { %7591 = vmatprep.subr.bf16.mxu0 %v11389_v53 }
 0xcf7   :  { %7865 = vmatpush1.bf16.msra.mxu1 %v11390_v22  ;;  %v11443_v22 = vld [vmem:[#allocation22 + $0xc4c] ss:$16 sps:$4 sm:$0xff]  }
 0xcf8   :  { %7592 = vmatpush2.bf16.msra.mxu0 %v11387_v42  ;;  %7866 = vmatprep.subr.bf16.mxu1 %v11398_v58  ;;  %v11444_v42 = vld [vmem:[#allocation22 + $0x1728] ss:$16 sps:$4 sm:$0xff]  }
 0xcf9   :  { %7593 = vmatprep.subr.bf16.mxu0 %v11395_v34  ;;  %v11441_v58 = vld [vmem:[#allocation22 + $0xc48] ss:$16 sps:$4 sm:$0xff]   ;;  %v11452_v34 = vld [vmem:[#allocation22 + $0x170c] ss:$16 sps:$4 sm:$0xff]  }
 0xcfb   :  { %7867 = vmatpush1.bf16.msra.mxu1 %v11396_v48 }
 0xcfc   :  { %7594 = vmatpush2.bf16.msra.mxu0 %v11393_v45  ;;  %7868 = vmatprep.subr.bf16.mxu1 %v11404_v9  ;;  %v11449_v45 = vld [vmem:[#allocation22 + $0xc2c] ss:$16 sps:$4 sm:$0xff]  }
 0xcfd   :  { %7595 = vmatprep.subr.bf16.mxu0 %v11401_v54  ;;  %v11456_v9 = vld [vmem:[#allocation25 + $0x78] sm:$0xff]  }
 0xcff   :  { %7869 = vmatpush1.bf16.msra.mxu1 %v11402_v6  ;;  %v11455_v6 = vld [vmem:[#allocation22 + $0xc0c] ss:$16 sps:$4 sm:$0xff]  }
 0xd00   :  { %7596 = vmatpush2.bf16.msra.mxu0 %v11399_v35  ;;  %7870 = vmatprep.subr.bf16.mxu1 %v11410_v57  ;;  %v11457_v35 = vld [vmem:[#allocation25 + $0x38] sm:$0xff]   ;;  %v11453_v57 = vld [vmem:[#allocation22 + $0xc08] ss:$16 sps:$4 sm:$0xff]  }
 0xd01   :  { %7597 = vmatprep.subr.bf16.mxu0 %v11407_v62  ;;  %v11461_v62 = vld [vmem:[#allocation25 + $0x70] sm:$0xff]  }
 0xd03   :  { %7871 = vmatpush2.bf16.msra.mxu1 %v11408_v29 }
 0xd04   :  { %7598 = vmatpush2.bf16.msra.mxu0 %v11405_v2  ;;  %7872 = vmatprep.subr.bf16.mxu1 %v11416_v32  ;;  %v11462_v2 = vld [vmem:[#allocation25 + $0x30] sm:$0xff]  }
 0xd05   :  { %7649 = vmatprep.subr.bf16.mxu0 %v11413_v11  ;;  %v11458_v32 = vld [vmem:[#allocation22 + $0xde8] ss:$16 sps:$4 sm:$0xff]   ;;  %v11466_v11 = vld [vmem:[#allocation25 + $0x68] sm:$0xff]  }
 0xd07   :  { %v12940_v61 = vpop.f32.mrf.mxu0  ;;  %7600 = vmatmul.mubr.bf16.vlgmr.msra.gmra.mxu0 %v12717_v40  ;;  %7873 = vmatpush2.bf16.msra.mxu1 %v11414_v3  ;;  %v11423_v40 = vld [vmem:[#allocation22 + $0xca8] ss:$16 sps:$4 sm:$0xff]   ;;  %v11465_v3 = vld [vmem:[#allocation22 + $0xdcc] ss:$16 sps:$4 sm:$0xff]  }
 0xd08   :  { %7650 = vmatpush1.bf16.msra.mxu0 %v11411_v30  ;;  %7874 = vmatprep.subr.bf16.mxu1 %v11422_v51  ;;  %v11467_v30 = vld [vmem:[#allocation25 + $0x28] sm:$0xff]   ;;  %v11463_v51 = vld [vmem:[#allocation22 + $0xdc8] ss:$16 sps:$4 sm:$0xff]  }
 0xd09   :  { %v7357_v21 = vpop.f32.mrf.mxu0  ;;  %7651 = vmatprep.subr.bf16.mxu0 %v11419_v16  ;;  %7681 = vmatprep.mubr.bf16.mxu0 %v12719_v43  ;;  %v11429_v43 = vld [vmem:[#allocation22 + $0xc88] ss:$16 sps:$4 sm:$0xff]  }
 0xd0a   :  { %v7358_v53 = vadd.f32 %v7357_v21, %v7317_v5  ;;  %v11471_v16 = vld [vmem:[#allocation25 + $0x60] sm:$0xff]   ;;  %v11475_v21 = vld [vmem:[#allocation22 + $0xd8c] ss:$16 sps:$4 sm:$0xff]  }
 0xd0b   :  { %v7359_v26 = vpop.f32.mrf.mxu0  ;;  %7875 = vmatpush2.bf16.msra.mxu1 %v11420_v13  ;;  %v11470_v13 = vld [vmem:[#allocation22 + $0xdac] ss:$16 sps:$4 sm:$0xff]   ;;  %v11491_v5 = vld [vmem:[#allocation25 + $0x40] sm:$0xff]  }
 0xd0c   :  { %7652 = vmatpush1.bf16.msra.mxu0 %v11417_v20  ;;  %7876 = vmatprep.subr.bf16.mxu1 %v11428_v23  ;;  %v7399_v48 = vadd.f32 %v12920_v55, %v7358_v53  ;;  %v11460_v55 = vld [vmem:[#allocation22 + $0xdec] ss:$16 sps:$4 sm:$0xff]   ;;  %v11472_v20 = vld [vmem:[#allocation25 + $0x20] sm:$0xff]  }
 0xd0d   :  { %v7360_v39 = vpop.f32.mrf.mxu0  ;;  %7653 = vmatprep.subr.bf16.mxu0 %v11425_v17  ;;  %v11476_v23 = vld [vmem:[#allocation25 + $0x58] sm:$0xff]   ;;  %v11473_v26 = vld [vmem:[#allocation22 + $0xd88] ss:$16 sps:$4 sm:$0xff]  }
 0xd0e   :  { %v7937_v54 = vmax.f32 %v7399_v48, 0.0  ;;  %v11477_v17 = vld [vmem:[#allocation25 + $0x18] sm:$0xff]   ;;  %v11482_v39 = vld [vmem:[#allocation25 + $0x10] sm:$0xff]  }
 0xd0f   :  { %7877 = vmatpush2.bf16.msra.mxu1 %v11426_v27  ;;  %v11481_v27 = vld [vmem:[#allocation25 + $0x50] sm:$0xff]  }
 0xd10   :  { %7654 = vmatpush1.bf16.msra.mxu0 %v11423_v40  ;;  %7878 = vmatprep.subr.bf16.mxu1 %v11434_v37  ;;  %v8005_v29 = vpack.c.bf16 %v7937_v54, %v7937_v54  ;;  %v11480_v40 = vld [vmem:[#allocation22 + $0xd6c] ss:$16 sps:$4 sm:$0xff]   ;;  %v7315_v37 = vadd.f32 %v12900_v19, %v12929_v18  ;;  %v11492_v18 = vld [vmem:[#allocation25] sm:$0xff]  }
 0xd11   :  { %7655 = vmatprep.subr.bf16.mxu0 %v11431_v59  ;;  %v11490_v19 = vld [vmem:[#allocation22 + $0xd2c] ss:$16 sps:$4 sm:$0xff]   ;;  %v11493_v53 = vld [vmem:[#allocation22 + $0xd08] ss:$16 sps:$4 sm:$0xff]  }
 0xd12   :  { %v7356_v59 = vadd.f32 %v12940_v61, %v7315_v37  ;;  %v11488_v61 = vld [vmem:[#allocation22 + $0xd28] ss:$16 sps:$4 sm:$0xff]  }
 0xd13   :  { %7879 = vmatpush2.bf16.msra.mxu1 %v11432_v44  ;;  %v11486_v44 = vld [vmem:[#allocation25 + $0x48] sm:$0xff]   ;;  %v11502_v54 = vld [vmem:[#allocation22 + $0x10a8] ss:$16 sps:$4 sm:$0xff]  }
 0xd14   :  { %7656 = vmatpush1.bf16.msra.mxu0 %v11429_v43  ;;  %7880 = vmatprep.subr.bf16.mxu1 %v11440_v60  ;;  %v11487_v43 = vld [vmem:[#allocation25 + $0x8] sm:$0xff]   ;;  %v7397_v60 = vadd.f32 %v12916_v25, %v7356_v59  ;;  %v11529_v37 = vld [vmem:[#allocation22 + $0x1188] ss:$16 sps:$4 sm:$0xff]  }
 0xd15   :  { %7657 = vmatprep.subr.bf16.mxu0 %v11437_v28  ;;  %v11483_v28 = vld [vmem:[#allocation22 + $0xd48] ss:$16 sps:$4 sm:$0xff]   ;;  %v11498_v25 = vld [vmem:[#allocation22 + $0x10ec] ss:$16 sps:$4 sm:$0xff]  }
 0xd16   :  { %v11532_v59 = vld [vmem:[#allocation22 + $0x1168] ss:$16 sps:$4 sm:$0xff]  }
 0xd17   :  { %7881 = vmatpush2.bf16.msra.mxu1 %v11438_v46  ;;  %v7936_v46 = vmax.f32 %v7397_v60, 0.0  ;;  %v2864_v60 = vsub.s32 3, %v12563_v14 }
 0xd18   :  { %7658 = vmatpush1.bf16.msra.mxu0 %v11435_v47  ;;  %7882 = vmatprep.subr.bf16.mxu1 %v11446_v50  ;;  %v11495_v47 = vld [vmem:[#allocation22 + $0xd0c] ss:$16 sps:$4 sm:$0xff]  }
 0xd19   :  { %7659 = vmatprep.subr.bf16.mxu0 %v11443_v22  ;;  %v8004_v50 = vpack.c.bf16 %v7936_v46, %v7936_v46  ;;  %v11496_v22 = vld [vmem:[#allocation22 + $0x10e8] ss:$16 sps:$4 sm:$0xff]  }
 0xd1b   :  { %7883 = vmatpush2.bf16.msra.mxu1 %v11444_v42  ;;  %v11501_v42 = vld [vmem:[#allocation22 + $0x10cc] ss:$16 sps:$4 sm:$0xff]  }
 0xd1c   :  { %7660 = vmatpush1.bf16.msra.mxu0 %v11441_v58  ;;  %7884 = vmatprep.subr.bf16.mxu1 %v11452_v34  ;;  %v11499_v34 = vld [vmem:[#allocation22 + $0x10c8] ss:$16 sps:$4 sm:$0xff]  }
 0xd1d   :  { %7661 = vmatprep.subr.bf16.mxu0 %v11449_v45  ;;  %v11504_v45 = vld [vmem:[#allocation22 + $0x10ac] ss:$16 sps:$4 sm:$0xff]  }
 0xd1f   :  { %7885 = vmatpush2.bf16.msra.mxu1 %v11450_v56 }
 0xd20   :  { %7662 = vmatpush1.bf16.msra.mxu0 %v11447_v49  ;;  %9917 = vmatprep.subr.bf16.mxu1 %v11456_v9 }
 0xd21   :  { %7663 = vmatprep.subr.bf16.mxu0 %v11455_v6 }
 0xd22   :  { %7887 = vmatmul.mubr.bf16.vlgmr.msra.gmra.mxu1 %v12890_v38  ;;  %v11468_v38 = vld [vmem:[#allocation22 + $0xda8] ss:$16 sps:$4 sm:$0xff]   ;;  %v12965_v56 = vpop.f32.mrf.mxu1 }
 0xd23   :  { %9918 = vmatpush3.bf16.msra.mxu1 %v11457_v35  ;;  %8239 = vmatprep.mubr.bf16.mxu1 %v8005_v29  ;;  %v11507_v35 = vld [vmem:[#allocation22 + $0x108c] ss:$16 sps:$4 sm:$0xff]   ;;  %v11508_v29 = vld [vmem:[#allocation22 + $0x1068] ss:$16 sps:$4 sm:$0xff]  }
 0xd24   :  { %7664 = vmatpush1.bf16.msra.mxu0 %v11453_v57  ;;  %9919 = vmatprep.subr.bf16.mxu1 %v11461_v62  ;;  %v12967_v9 = vpop.f32.mrf.mxu1  ;;  %v11505_v62 = vld [vmem:[#allocation22 + $0x1088] ss:$16 sps:$4 sm:$0xff]  }
 0xd25   :  { %7665 = vmatprep.subr.bf16.mxu0 %v11460_v55  ;;  %v11513_v55 = vld [vmem:[#allocation22 + $0x104c] ss:$16 sps:$4 sm:$0xff]  }
 0xd26   :  { %v7646_v57 = vpop.f32.mrf.mxu1 }
 0xd27   :  { %9920 = vmatpush3.bf16.msra.mxu1 %v11462_v2  ;;  %v11511_v2 = vld [vmem:[#allocation22 + $0x1048] ss:$16 sps:$4 sm:$0xff]   ;;  %v11555_v57 = vld [vmem:[#allocation22 + $0x148c] ss:$16 sps:$4 sm:$0xff]  }
 0xd28   :  { %7666 = vmatpush2.bf16.msra.mxu0 %v11458_v32  ;;  %9921 = vmatprep.subr.bf16.mxu1 %v11466_v11  ;;  %v11516_v32 = vld [vmem:[#allocation22 + $0x102c] ss:$16 sps:$4 sm:$0xff]   ;;  %v11514_v11 = vld [vmem:[#allocation22 + $0x1028] ss:$16 sps:$4 sm:$0xff]  }
 0xd29   :  { %7667 = vmatprep.subr.bf16.mxu0 %v11465_v3  ;;  %v11519_v3 = vld [vmem:[#allocation22 + $0x100c] ss:$16 sps:$4 sm:$0xff]  }
 0xd2b   :  { %9922 = vmatpush3.bf16.msra.mxu1 %v11467_v30  ;;  %v11517_v30 = vld [vmem:[#allocation22 + $0x1008] ss:$16 sps:$4 sm:$0xff]  }
 0xd2c   :  { %7668 = vmatpush2.bf16.msra.mxu0 %v11463_v51  ;;  %9923 = vmatprep.subr.bf16.mxu1 %v11471_v16  ;;  %v11522_v51 = vld [vmem:[#allocation22 + $0x11ec] ss:$16 sps:$4 sm:$0xff]   ;;  %v11520_v16 = vld [vmem:[#allocation22 + $0x11e8] ss:$16 sps:$4 sm:$0xff]  }
 0xd2d   :  { %7669 = vmatprep.subr.bf16.mxu0 %v11470_v13  ;;  %v11525_v13 = vld [vmem:[#allocation22 + $0x11cc] ss:$16 sps:$4 sm:$0xff]  }
 0xd2f   :  { %9924 = vmatpush3.bf16.msra.mxu1 %v11472_v20 }
 0xd30   :  { %7670 = vmatpush2.bf16.msra.mxu0 %v11468_v38  ;;  %9925 = vmatprep.subr.bf16.mxu1 %v11476_v23  ;;  %v11523_v38 = vld [vmem:[#allocation22 + $0x11c8] ss:$16 sps:$4 sm:$0xff]   ;;  %v11528_v23 = vld [vmem:[#allocation22 + $0x11ac] ss:$16 sps:$4 sm:$0xff]  }
 0xd31   :  { %7671 = vmatprep.subr.bf16.mxu0 %v11475_v21 }
 0xd33   :  { %9926 = vmatpush3.bf16.msra.mxu1 %v11477_v17 }
 0xd34   :  { %7672 = vmatpush2.bf16.msra.mxu0 %v11473_v26  ;;  %9927 = vmatprep.subr.bf16.mxu1 %v11481_v27  ;;  %v11526_v26 = vld [vmem:[#allocation22 + $0x11a8] ss:$16 sps:$4 sm:$0xff]   ;;  %v11531_v27 = vld [vmem:[#allocation22 + $0x118c] ss:$16 sps:$4 sm:$0xff]  }
 0xd35   :  { %7673 = vmatprep.subr.bf16.mxu0 %v11480_v40 }
 0xd37   :  { %9928 = vmatpush3.bf16.msra.mxu1 %v11482_v39  ;;  %v11534_v39 = vld [vmem:[#allocation22 + $0x116c] ss:$16 sps:$4 sm:$0xff]  }
 0xd38   :  { %7674 = vmatpush2.bf16.msra.mxu0 %v11478_v41  ;;  %9929 = vmatprep.subr.bf16.mxu1 %v11486_v44  ;;  %v11537_v41 = vld [vmem:[#allocation22 + $0x114c] ss:$16 sps:$4 sm:$0xff]   ;;  %v11535_v44 = vld [vmem:[#allocation22 + $0x1148] ss:$16 sps:$4 sm:$0xff]  }
 0xd39   :  { %7675 = vmatprep.subr.bf16.mxu0 %v11485_v10  ;;  %v11540_v10 = vld [vmem:[#allocation22 + $0x112c] ss:$16 sps:$4 sm:$0xff]  }
 0xd3b   :  { %9930 = vmatpush3.bf16.msra.mxu1 %v11487_v43  ;;  %v2860_v43 = vsub.s32 2, %v12563_v14 }
 0xd3c   :  { %7676 = vmatpush2.bf16.msra.mxu0 %v11483_v28  ;;  %9931 = vmatprep.subr.bf16.mxu1 %v11491_v5  ;;  %v11538_v28 = vld [vmem:[#allocation22 + $0x1128] ss:$16 sps:$4 sm:$0xff]   ;;  %v11543_v5 = vld [vmem:[#allocation22 + $0x110c] ss:$16 sps:$4 sm:$0xff]  }
 0xd3d   :  { %7677 = vmatprep.subr.bf16.mxu0 %v11490_v19  ;;  %v11714_v19 = vld [vmem:[#allocation23] sm:$0xf] }
 0xd3e   :  { %v2865_v46 = vrot.slane %v11714_v19, %v2864_v60  ;;  %v11594_v60 = vld [vmem:[#allocation22 + $0x18ec] ss:$16 sps:$4 sm:$0xff]  }
 0xd3f   :  { %9932 = vmatpush3.bf16.msra.mxu1 %v11492_v18  ;;  %v2861_v18 = vrot.slane %v11714_v19, %v2860_v43  ;;  %v11589_v43 = vld [vmem:[#allocation22 + $0x1508] ss:$16 sps:$4 sm:$0xff]  }
 0xd40   :  { %7678 = vmatpush2.bf16.msra.mxu0 %v11488_v61  ;;  %10168 = vmatprep.subr.bf16.mxu1 %v12280_v0  ;;  %v11541_v61 = vld [vmem:[#allocation22 + $0x1108] ss:$16 sps:$4 sm:$0xff]  }
 0xd41   :  { %7679 = vmatprep.subr.bf16.mxu0 %v11495_v47  ;;  %v11546_v47 = vld [vmem:[#allocation22 + $0x14ec] ss:$16 sps:$4 sm:$0xff]  }
 0xd42   :  { %8240 = vmatmul.mubr.bf16.vlgmr.msra.gmra.mxu1 %v8004_v50 }
 0xd43   :  { %10184 = vmatprep.mubr.msk.bf16.mxu1 %vm12281_vm1, %v12280_v0 }
 0xd44   :  { %7680 = vmatpush2.bf16.msra.mxu0 %v11493_v53 }
 0xd45   :  { %7731 = vmatprep.subr.bf16.mxu0 %v11498_v25  ;;  %v11544_v25 = vld [vmem:[#allocation22 + $0x14e8] ss:$16 sps:$4 sm:$0xff]  }
 0xd47   :  { %v12959_v58 = vpop.f32.mrf.mxu0  ;;  %7682 = vmatmul.mubr.bf16.vlgmr.msra.gmra.mxu0 %v12744_v7  ;;  %v7647_v7 = vpop.f32.mrf.mxu1 }
 0xd48   :  { %7732 = vmatpush1.bf16.msra.mxu0 %v11496_v22  ;;  %7763 = vmatprep.mubr.bf16.mxu0 %v12746_v12  ;;  %v11510_v12 = vld [vmem:[#allocation22 + $0x106c] ss:$16 sps:$4 sm:$0xff]   ;;  %v7438_v50 = vadd.f32 %v12959_v58, %v2861_v18  ;;  %v11556_v7 = vld [vmem:[#allocation22 + $0x1468] ss:$16 sps:$4 sm:$0xff]  }
 0xd49   :  { %v12963_v48 = vpop.f32.mrf.mxu0  ;;  %7733 = vmatprep.subr.bf16.mxu0 %v11501_v42  ;;  %v11549_v22 = vld [vmem:[#allocation22 + $0x14cc] ss:$16 sps:$4 sm:$0xff]  }
 0xd4a   :  { %v7440_v53 = vadd.f32 %v12963_v48, %v2865_v46  ;;  %v7479_v14 = vadd.f32 %v12932_v15, %v7438_v50  ;;  %v11552_v48 = vld [vmem:[#allocation22 + $0x14ac] ss:$16 sps:$4 sm:$0xff]  }
 0xd4b   :  { %v7441_v49 = vpop.f32.mrf.mxu0 }
 0xd4c   :  { %7734 = vmatpush1.bf16.msra.mxu0 %v11499_v34  ;;  %v7481_v34 = vadd.f32 %v12936_v63, %v7440_v53  ;;  %v11547_v49 = vld [vmem:[#allocation22 + $0x14c8] ss:$16 sps:$4 sm:$0xff]   ;;  %v11558_v63 = vld [vmem:[#allocation22 + $0x146c] ss:$16 sps:$4 sm:$0xff]  }
 0xd4d   :  { %v7442_v6 = vpop.f32.mrf.mxu0  ;;  %7735 = vmatprep.subr.bf16.mxu0 %v11504_v45  ;;  %v11600_v53 = vld [vmem:[#allocation22 + $0x18ac] ss:$16 sps:$4 sm:$0xff]  }
 0xd50   :  { %7736 = vmatpush1.bf16.msra.mxu0 %v11502_v54 }
 0xd51   :  { %7737 = vmatprep.subr.bf16.mxu0 %v11507_v35  ;;  %v11550_v35 = vld [vmem:[#allocation22 + $0x14a8] ss:$16 sps:$4 sm:$0xff]  }
 0xd54   :  { %7738 = vmatpush1.bf16.msra.mxu0 %v11505_v62  ;;  %v11561_v62 = vld [vmem:[#allocation22 + $0x144c] ss:$16 sps:$4 sm:$0xff]  }
 0xd55   :  { %7739 = vmatprep.subr.bf16.mxu0 %v11510_v12  ;;  %v11564_v12 = vld [vmem:[#allocation22 + $0x142c] ss:$16 sps:$4 sm:$0xff]  }
 0xd58   :  { %7740 = vmatpush1.bf16.msra.mxu0 %v11508_v29  ;;  %v11562_v29 = vld [vmem:[#allocation22 + $0x1428] ss:$16 sps:$4 sm:$0xff]  }
 0xd59   :  { %7741 = vmatprep.subr.bf16.mxu0 %v11513_v55  ;;  %v11567_v55 = vld [vmem:[#allocation22 + $0x140c] ss:$16 sps:$4 sm:$0xff]  }
 0xd5c   :  { %7742 = vmatpush1.bf16.msra.mxu0 %v11511_v2  ;;  %v11565_v2 = vld [vmem:[#allocation22 + $0x1408] ss:$16 sps:$4 sm:$0xff]  }
 0xd5d   :  { %7743 = vmatprep.subr.bf16.mxu0 %v11516_v32  ;;  %v11570_v32 = vld [vmem:[#allocation22 + $0x15ec] ss:$16 sps:$4 sm:$0xff]  }
 0xd60   :  { %7744 = vmatpush1.bf16.msra.mxu0 %v11514_v11 }
 0xd61   :  { %7745 = vmatprep.subr.bf16.mxu0 %v11519_v3  ;;  %v11568_v3 = vld [vmem:[#allocation22 + $0x15e8] ss:$16 sps:$4 sm:$0xff]  }
 0xd62   :  { %v12969_v20 = vpop.f32.mrf.mxu1 }
 0xd64   :  { %7746 = vmatpush1.bf16.msra.mxu0 %v11517_v30  ;;  %v12971_v21 = vpop.f32.mrf.mxu1 }
 0xd65   :  { %7747 = vmatprep.subr.bf16.mxu0 %v11522_v51  ;;  %v11573_v51 = vld [vmem:[#allocation22 + $0x15cc] ss:$16 sps:$4 sm:$0xff]  }
 0xd66   :  { %v7728_v17 = vpop.f32.mrf.mxu1 }
 0xd67   :  { %v11574_v17 = vld [vmem:[#allocation22 + $0x15a8] ss:$16 sps:$4 sm:$0xff]  }
 0xd68   :  { %7748 = vmatpush2.bf16.msra.mxu0 %v11520_v16  ;;  %v7729_v40 = vpop.f32.mrf.mxu1 }
 0xd69   :  { %7749 = vmatprep.subr.bf16.mxu0 %v11525_v13  ;;  %v11571_v13 = vld [vmem:[#allocation22 + $0x15c8] ss:$16 sps:$4 sm:$0xff]   ;;  %v11582_v40 = vld [vmem:[#allocation22 + $0x156c] ss:$16 sps:$4 sm:$0xff]  }
 0xd6c   :  { %7750 = vmatpush2.bf16.msra.mxu0 %v11523_v38 }
 0xd6d   :  { %7751 = vmatprep.subr.bf16.mxu0 %v11528_v23  ;;  %v11576_v23 = vld [vmem:[#allocation22 + $0x15ac] ss:$16 sps:$4 sm:$0xff]  }
 0xd70   :  { %7752 = vmatpush2.bf16.msra.mxu0 %v11526_v26  ;;  %v11579_v26 = vld [vmem:[#allocation22 + $0x158c] ss:$16 sps:$4 sm:$0xff]  }
 0xd71   :  { %7753 = vmatprep.subr.bf16.mxu0 %v11531_v27  ;;  %v11577_v27 = vld [vmem:[#allocation22 + $0x1588] ss:$16 sps:$4 sm:$0xff]  }
 0xd74   :  { %7754 = vmatpush2.bf16.msra.mxu0 %v11529_v37  ;;  %v11580_v37 = vld [vmem:[#allocation22 + $0x1568] ss:$16 sps:$4 sm:$0xff]  }
 0xd75   :  { %7755 = vmatprep.subr.bf16.mxu0 %v11534_v39  ;;  %v11585_v39 = vld [vmem:[#allocation22 + $0x154c] ss:$16 sps:$4 sm:$0xff]  }
 0xd78   :  { %7756 = vmatpush2.bf16.msra.mxu0 %v11532_v59  ;;  %v11583_v59 = vld [vmem:[#allocation22 + $0x1548] ss:$16 sps:$4 sm:$0xff]  }
 0xd79   :  { %7757 = vmatprep.subr.bf16.mxu0 %v11537_v41  ;;  %v11588_v41 = vld [vmem:[#allocation22 + $0x152c] ss:$16 sps:$4 sm:$0xff]  }
 0xd7c   :  { %7758 = vmatpush2.bf16.msra.mxu0 %v11535_v44  ;;  %v11586_v44 = vld [vmem:[#allocation22 + $0x1528] ss:$16 sps:$4 sm:$0xff]  }
 0xd7d   :  { %7759 = vmatprep.subr.bf16.mxu0 %v11540_v10  ;;  %v11591_v10 = vld [vmem:[#allocation22 + $0x150c] ss:$16 sps:$4 sm:$0xff]  }
 0xd80   :  { %7760 = vmatpush2.bf16.msra.mxu0 %v11538_v28  ;;  %v11592_v28 = vld [vmem:[#allocation22 + $0x18e8] ss:$16 sps:$4 sm:$0xff]  }
 0xd81   :  { %7761 = vmatprep.subr.bf16.mxu0 %v11543_v5  ;;  %v11597_v5 = vld [vmem:[#allocation22 + $0x18cc] ss:$16 sps:$4 sm:$0xff]  }
 0xd84   :  { %7762 = vmatpush2.bf16.msra.mxu0 %v11541_v61 }
 0xd85   :  { %7813 = vmatprep.subr.bf16.mxu0 %v11546_v47  ;;  %v11595_v47 = vld [vmem:[#allocation22 + $0x18c8] ss:$16 sps:$4 sm:$0xff]  }
 0xd87   :  { %v7519_v42 = vpop.f32.mrf.mxu0  ;;  %7764 = vmatmul.mubr.bf16.vlgmr.msra.gmra.mxu0 %v12775_v52  ;;  %v11553_v52 = vld [vmem:[#allocation22 + $0x1488] ss:$16 sps:$4 sm:$0xff]  }
 0xd88   :  { %v12980_v45 = vadd.f32 %v7519_v42, %v7479_v14  ;;  %7814 = vmatpush1.bf16.msra.mxu0 %v11544_v25  ;;  %7845 = vmatprep.mubr.bf16.mxu0 %v12777_v33  ;;  %v11559_v33 = vld [vmem:[#allocation22 + $0x1448] ss:$16 sps:$4 sm:$0xff]  }
 0xd89   :  { %v7521_v58 = vpop.f32.mrf.mxu0  ;;  %7815 = vmatprep.subr.bf16.mxu0 %v11549_v22  ;;  %v11598_v14 = vld [vmem:[#allocation22 + $0x18a8] ss:$16 sps:$4 sm:$0xff]  }
 0xd8a   :  { %v12983_v54 = vadd.f32 %v7521_v58, %v7481_v34  ;;  %v7561_v19 = vadd.f32 %v12944_v24, %v12980_v45  ;;  %v11603_v24 = vld [vmem:[#allocation22 + $0x188c] ss:$16 sps:$4 sm:$0xff]   ;;  %v11610_v58 = vld [vmem:[#allocation22 + $0x1828] ss:$16 sps:$4 sm:$0xff]  }
 0xd8b   :  { %v7523_v6 = vpop.f32.mrf.mxu0  ;;  %v11606_v34 = vld [vmem:[#allocation22 + $0x186c] ss:$16 sps:$4 sm:$0xff]  }
 0xd8c   :  { %7816 = vmatpush1.bf16.msra.mxu0 %v11547_v49  ;;  %v7563_v46 = vadd.f32 %v12946_v31, %v12983_v54  ;;  %v11604_v31 = vld [vmem:[#allocation22 + $0x1868] ss:$16 sps:$4 sm:$0xff]   ;;  %v11609_v45 = vld [vmem:[#allocation22 + $0x184c] ss:$16 sps:$4 sm:$0xff]  }
 0xd8d   :  { %v7524_v15 = vpop.f32.mrf.mxu0  ;;  %7817 = vmatprep.subr.bf16.mxu0 %v11552_v48  ;;  %v11612_v49 = vld [vmem:[#allocation22 + $0x182c] ss:$16 sps:$4 sm:$0xff]   ;;  %v11613_v54 = vld [vmem:[#allocation22 + $0x1808] ss:$16 sps:$4 sm:$0xff]  }
 0xd8e   :  { %v11615_v48 = vld [vmem:[#allocation22 + $0x180c] ss:$16 sps:$4 sm:$0xff]  }
 0xd90   :  { %7818 = vmatpush1.bf16.msra.mxu0 %v11550_v35 }
 0xd91   :  { %7819 = vmatprep.subr.bf16.mxu0 %v11555_v57 }
 0xd94   :  { %7820 = vmatpush1.bf16.msra.mxu0 %v11553_v52 }
 0xd95   :  { %7821 = vmatprep.subr.bf16.mxu0 %v11558_v63 }
 0xd98   :  { %7822 = vmatpush1.bf16.msra.mxu0 %v11556_v7 }
 0xd99   :  { %7823 = vmatprep.subr.bf16.mxu0 %v11561_v62 }
 0xd9c   :  { %7824 = vmatpush1.bf16.msra.mxu0 %v11559_v33 }
 0xd9d   :  { %7825 = vmatprep.subr.bf16.mxu0 %v11564_v12 }
 0xda0   :  { %7826 = vmatpush1.bf16.msra.mxu0 %v11562_v29 }
 0xda1   :  { %7827 = vmatprep.subr.bf16.mxu0 %v11567_v55 }
 0xda2   :  { %v12985_v11 = vpop.f32.mrf.mxu1 }
 0xda4   :  { %7828 = vmatpush1.bf16.msra.mxu0 %v11565_v2  ;;  %v12987_v30 = vpop.f32.mrf.mxu1 }
 0xda5   :  { %7829 = vmatprep.subr.bf16.mxu0 %v11570_v32 }
 0xda6   :  { %v7810_v16 = vpop.f32.mrf.mxu1 }
 0xda8   :  { %7830 = vmatpush2.bf16.msra.mxu0 %v11568_v3  ;;  %v7811_v38 = vpop.f32.mrf.mxu1 }
 0xda9   :  { %7831 = vmatprep.subr.bf16.mxu0 %v11573_v51  ;;  %v11617_v38 = vld [vmem:[#allocation25 + $0xb8] sm:$0xff]  }
 0xdac   :  { %7832 = vmatpush2.bf16.msra.mxu0 %v11571_v13  ;;  %v11616_v13 = vld [vmem:[#allocation25 + $0xf8] sm:$0xff]  }
 0xdad   :  { %7833 = vmatprep.subr.bf16.mxu0 %v11576_v23  ;;  %v11619_v23 = vld [vmem:[#allocation25 + $0xb0] sm:$0xff]  }
 0xdb0   :  { %7834 = vmatpush2.bf16.msra.mxu0 %v11574_v17  ;;  %v11620_v17 = vld [vmem:[#allocation25 + $0xe8] sm:$0xff]  }
 0xdb1   :  { %7835 = vmatprep.subr.bf16.mxu0 %v11579_v26  ;;  %v11622_v26 = vld [vmem:[#allocation25 + $0xe0] sm:$0xff]  }
 0xdb4   :  { %7836 = vmatpush2.bf16.msra.mxu0 %v11577_v27  ;;  %v11624_v27 = vld [vmem:[#allocation25 + $0xd8] sm:$0xff]  }
 0xdb5   :  { %7837 = vmatprep.subr.bf16.mxu0 %v11582_v40  ;;  %v11625_v40 = vld [vmem:[#allocation25 + $0x98] sm:$0xff]  }
 0xdb8   :  { %7838 = vmatpush2.bf16.msra.mxu0 %v11580_v37  ;;  %v11626_v37 = vld [vmem:[#allocation25 + $0xd0] sm:$0xff]  }
 0xdb9   :  { %7839 = vmatprep.subr.bf16.mxu0 %v11585_v39  ;;  %v11627_v39 = vld [vmem:[#allocation25 + $0x90] sm:$0xff]  }
 0xdbc   :  { %7840 = vmatpush2.bf16.msra.mxu0 %v11583_v59  ;;  %v11628_v59 = vld [vmem:[#allocation25 + $0xc8] sm:$0xff]  }
 0xdbd   :  { %7841 = vmatprep.subr.bf16.mxu0 %v11588_v41  ;;  %v11629_v41 = vld [vmem:[#allocation25 + $0x88] sm:$0xff]  }
 0xdc0   :  { %7842 = vmatpush2.bf16.msra.mxu0 %v11586_v44  ;;  %v11630_v44 = vld [vmem:[#allocation25 + $0xc0] sm:$0xff]  }
 0xdc1   :  { %7843 = vmatprep.subr.bf16.mxu0 %v11591_v10  ;;  %v11631_v10 = vld [vmem:[#allocation25 + $0x80] sm:$0xff]  }
 0xdc4   :  { %7844 = vmatpush2.bf16.msra.mxu0 %v11589_v43  ;;  %v11632_v43 = vld [vmem:[%s13099_s13 + $0x38] sm:$0xff]  }
 0xdc5   :  { %7895 = vmatprep.subr.bf16.mxu0 %v11594_v60  ;;  %10169 = vmatpush3.bf16.msra.mxu1 %v11632_v43  ;;  %v11633_v60 = vld [vmem:[%s13099_s13 + $0x30] sm:$0xff]  }
 0xdc6   :  { %10170 = vmatprep.subr.bf16.mxu1 %v12280_v0  ;;  %v11649_v43 = vld [vmem:[#allocation29 + $0x10] sm:$0xff]  }
 0xdc7   :  { %v7601_v18 = vpop.f32.mrf.mxu0  ;;  %7846 = vmatmul.mubr.bf16.vlgmr.msra.gmra.mxu0 %v12806_v36  ;;  %v11601_v36 = vld [vmem:[#allocation22 + $0x1888] ss:$16 sps:$4 sm:$0xff]  }
 0xdc8   :  { %v7602_v61 = vadd.f32 %v7601_v18, %v7561_v19  ;;  %7896 = vmatpush1.bf16.msra.mxu0 %v11592_v28  ;;  %7927 = vmatprep.mubr.bf16.mxu0 %v12282_v1  ;;  %v11607_v1 = vld [vmem:[#allocation22 + $0x1848] ss:$16 sps:$4 sm:$0xff]   ;;  %v11634_v28 = vld [vmem:[%s13099_s13 + $0x28] sm:$0xff]   ;;  %v11636_v19 = vld [vmem:[%s13099_s13 + $0x18] sm:$0xff]  }
 0xdc9   :  { %v7603_v50 = vpop.f32.mrf.mxu0  ;;  %7897 = vmatprep.subr.bf16.mxu0 %v11597_v5  ;;  %10171 = vmatpush3.bf16.msra.mxu1 %v11633_v60  ;;  %v11635_v5 = vld [vmem:[%s13099_s13 + $0x20] sm:$0xff]   ;;  %v8963_v60 = vld [vmem:[#allocation20] ss:$0 sm:$0xff] }
 0xdca   :  { %v7604_v25 = vadd.f32 %v7603_v50, %v7563_v46  ;;  %v7643_v62 = vadd.f32 %v12965_v56, %v7602_v61  ;;  %v11621_v56 = vld [vmem:[#allocation25 + $0xa8] sm:$0xff]   ;;  %10172 = vmatprep.subr.bf16.mxu1 %v12280_v0 }
 0xdcb   :  { %v7605_v22 = vpop.f32.mrf.mxu0 }
 0xdcc   :  { %7898 = vmatpush1.bf16.msra.mxu0 %v11595_v47  ;;  %v7645_v29 = vadd.f32 %v12967_v9, %v7604_v25  ;;  %v11623_v9 = vld [vmem:[#allocation25 + $0xa0] sm:$0xff]  }
 0xdcd   :  { %v7606_v42 = vpop.f32.mrf.mxu0  ;;  %7899 = vmatprep.subr.bf16.mxu0 %v11600_v53  ;;  %10173 = vmatpush3.bf16.msra.mxu1 %v11634_v28  ;;  %v11650_v28 = vld [vmem:[#allocation29 + $0x8] sm:$0xff]  }
 0xdce   :  { %10174 = vmatprep.subr.bf16.mxu1 %v12280_v0 }
 0xdd0   :  { %7900 = vmatpush1.bf16.msra.mxu0 %v11598_v14 }
 0xdd1   :  { %7901 = vmatprep.subr.bf16.mxu0 %v11603_v24  ;;  %10175 = vmatpush3.bf16.msra.mxu1 %v11635_v5  ;;  %v1869_v5 = vadd.f32 %v8963_v60, %v12819_v8  ;;  %v11652_v8 = vld [vmem:[%s13100_s2 + $0x38] sm:$0xff]  }
 0xdd2   :  { %10176 = vmatprep.subr.bf16.mxu1 %v12280_v0 }
 0xdd4   :  { %7902 = vmatpush1.bf16.msra.mxu0 %v11601_v36 }
 0xdd5   :  { %7903 = vmatprep.subr.bf16.mxu0 %v11606_v34  ;;  %10177 = vmatpush3.bf16.msra.mxu1 %v11636_v19  ;;  %v11651_v19 = vld [vmem:[#allocation29] sm:$0xff]  }
 0xdd6   :  { %10178 = vmatprep.subr.bf16.mxu1 %v12280_v0 }
 0xdd8   :  { %7904 = vmatpush1.bf16.msra.mxu0 %v11604_v31 }
 0xdd9   :  { %7905 = vmatprep.subr.bf16.mxu0 %v11609_v45 }
 0xddc   :  { %7906 = vmatpush1.bf16.msra.mxu0 %v11607_v1 }
 0xddd   :  { %7907 = vmatprep.subr.bf16.mxu0 %v11612_v49 }
 0xde0   :  { %7908 = vmatpush1.bf16.msra.mxu0 %v11610_v58 }
 0xde1   :  { %7909 = vmatprep.subr.bf16.mxu0 %v11615_v48 }
 0xde2   :  { %v12995_v6 = vpop.f32.mrf.mxu1 }
 0xde4   :  { %7910 = vmatpush1.bf16.msra.mxu0 %v11613_v54  ;;  %v12997_v35 = vpop.f32.mrf.mxu1 }
 0xde5   :  { %9939 = vmatprep.subr.bf16.mxu0 %v11616_v13 }
 0xde6   :  { %v7892_v15 = vpop.f32.mrf.mxu1 }
 0xde7   :  { %7928 = vmatmul.mubr.bf16.vlgmr.msra.gmra.mxu0 %v12826_v4  ;;  %v11618_v4 = vld [vmem:[#allocation25 + $0xf0] sm:$0xff]  }
 0xde8   :  { %v7893_v57 = vpop.f32.mrf.mxu1  ;;  %9940 = vmatpush3.bf16.msra.mxu0 %v11617_v38 }
 0xde9   :  { %9941 = vmatprep.subr.bf16.mxu0 %v11618_v4 }
 0xdec   :  { %9942 = vmatpush3.bf16.msra.mxu0 %v11619_v23 }
 0xded   :  { %9943 = vmatprep.subr.bf16.mxu0 %v11620_v17  ;;  %v11643_v17 = vld [vmem:[#allocation31] sm:$0xff]  }
 0xdf0   :  { %9944 = vmatpush3.bf16.msra.mxu0 %v11621_v56  ;;  %v9803_v56 = vld [vmem:[#allocation28] ss:$0 sm:$0xff] }
 0xdf1   :  { %9945 = vmatprep.subr.bf16.mxu0 %v11622_v26 }
 0xdf4   :  { %9946 = vmatpush3.bf16.msra.mxu0 %v11623_v9 }
 0xdf5   :  { %9947 = vmatprep.subr.bf16.mxu0 %v11624_v27 }
 0xdf8   :  { %9948 = vmatpush3.bf16.msra.mxu0 %v11625_v40  ;;  %v11644_v40 = vld [vmem:[#allocation29 + $0x38] sm:$0xff]  }
 0xdf9   :  { %9949 = vmatprep.subr.bf16.mxu0 %v11626_v37 }
 0xdfc   :  { %9950 = vmatpush3.bf16.msra.mxu0 %v11627_v39 }
 0xdfd   :  { %9951 = vmatprep.subr.bf16.mxu0 %v11628_v59  ;;  %v11645_v59 = vld [vmem:[#allocation29 + $0x30] sm:$0xff]  }
 0xe00   :  { %9952 = vmatpush3.bf16.msra.mxu0 %v11629_v41  ;;  %v11646_v41 = vld [vmem:[#allocation29 + $0x28] sm:$0xff]  }
 0xe01   :  { %9953 = vmatprep.subr.bf16.mxu0 %v11630_v44  ;;  %v11647_v44 = vld [vmem:[#allocation29 + $0x20] sm:$0xff]  }
 0xe02   :  { %v9933_v52 = vpop.f32.mrf.mxu1 }
 0xe04   :  { %v9934_v63 = vpop.f32.mrf.mxu1  ;;  %9954 = vmatpush3.bf16.msra.mxu0 %v11631_v10  ;;  %v11648_v10 = vld [vmem:[#allocation29 + $0x18] sm:$0xff]  }
 0xe05   :  { %v13000_v7 = vadd.f32 %v9934_v63, %v9933_v52  ;;  %10188 = vmatprep.subr.bf16.mxu0 %v12280_v0 }
 0xe06   :  { %v9936_v33 = vpop.f32.mrf.mxu1 }
 0xe07   :  { %v7683_v12 = vpop.f32.mrf.mxu0  ;;  %v11640_v33 = vld [vmem:[#allocation31 + $0x18] sm:$0xff]  }
 0xe08   :  { %v7684_v55 = vadd.f32 %v7683_v12, %v7643_v62  ;;  %v9937_v2 = vpop.f32.mrf.mxu1  ;;  %v11641_v12 = vld [vmem:[#allocation31 + $0x10] sm:$0xff]  }
 0xe09   :  { %v7685_v32 = vpop.f32.mrf.mxu0 }
 0xe0a   :  { %v7686_v3 = vadd.f32 %v7685_v32, %v7645_v29  ;;  %v7725_v18 = vadd.f32 %v12969_v20, %v7684_v55  ;;  %v11642_v29 = vld [vmem:[#allocation31 + $0x8] sm:$0xff]   ;;  %v9770_v55 = vld [vmem:[#allocation26] ss:$0 sm:$0xff] }
 0xe0b   :  { %v7687_v51 = vpop.f32.mrf.mxu0 }
 0xe0c   :  { %v7727_v47 = vadd.f32 %v12971_v21, %v7686_v3  ;;  %v8242_v3 = vadd.f32 %v13000_v7, %v9770_v55  ;;  %v9835_v55 = vld [vmem:[#allocation37] ss:$0 sm:$0xff] }
 0xe0d   :  { %v7688_v16 = vpop.f32.mrf.mxu0 }
 0xe47   :  { %v7765_v46 = vpop.f32.mrf.mxu0 }
 0xe48   :  { %v7766_v61 = vadd.f32 %v7765_v46, %v7725_v18  ;;  %v1874_v18 = vmax.f32 %v1869_v5, 0.0 }
 0xe49   :  { %v7767_v50 = vpop.f32.mrf.mxu0 }
 0xe4a   :  { %v7768_v53 = vadd.f32 %v7767_v50, %v7727_v47  ;;  %v7807_v34 = vadd.f32 %v12985_v11, %v7766_v61  ;;  %v8416_v46 = vpack.c.bf16 %v1874_v18, %v1874_v18  ;;  %v11653_v61 = vld [vmem:[%s13100_s2 + $0x30] sm:$0xff]   ;;  %v11654_v47 = vld [vmem:[%s13100_s2 + $0x28] sm:$0xff]   ;;  %v11655_v50 = vld [vmem:[%s13100_s2 + $0x20] sm:$0xff]  }
 0xe4b   :  { %v7769_v25 = vpop.f32.mrf.mxu0 }
 0xe4c   :  { %v7809_v45 = vadd.f32 %v12987_v30, %v7768_v53  ;;  %v11637_v30 = vld [vmem:[%s13099_s13 + $0x10] sm:$0xff]   ;;  %v11656_v53 = vld [vmem:[%s13100_s2 + $0x18] sm:$0xff]  }
 0xe4d   :  { %v7770_v22 = vpop.f32.mrf.mxu0  ;;  %10179 = vmatpush3.bf16.msra.mxu1 %v11637_v30  ;;  %v11657_v25 = vld [vmem:[%s13100_s2 + $0x10] sm:$0xff]  }
 0xe4e   :  { %10180 = vmatprep.subr.bf16.mxu1 %v12280_v0  ;;  %v11658_v22 = vld [vmem:[%s13100_s2 + $0x8] sm:$0xff]  }
 0xe87   :  { %v7847_v14 = vpop.f32.mrf.mxu0 }
 0xe88   :  { %v7848_v31 = vadd.f32 %v7847_v14, %v7807_v34  ;;  %v11659_v14 = vld [vmem:[%s13100_s2] sm:$0xff]  }
 0xe89   :  { %v7849_v42 = vpop.f32.mrf.mxu0 }
 0xe8a   :  { %v7850_v1 = vadd.f32 %v7849_v42, %v7809_v45  ;;  %v7889_v20 = vadd.f32 %v12995_v6, %v7848_v31  ;;  %v11638_v6 = vld [vmem:[%s13099_s13 + $0x8] sm:$0xff]   ;;  %v11660_v42 = vld [vmem:[#allocation35 + $0x18] sm:$0xff]  }
 0xe8b   :  { %v7851_v24 = vpop.f32.mrf.mxu0  ;;  %10181 = vmatpush3.bf16.msra.mxu1 %v11638_v6 }
 0xe8c   :  { %v7891_v21 = vadd.f32 %v12997_v35, %v7850_v1  ;;  %10182 = vmatprep.subr.bf16.mxu1 %v12280_v0  ;;  %v11639_v35 = vld [vmem:[%s13099_s13] sm:$0xff]   ;;  %v11661_v24 = vld [vmem:[#allocation35 + $0x10] sm:$0xff]  }
 0xe8d   :  { %v7852_v36 = vpop.f32.mrf.mxu0 }
 0xe8f   :  { %10183 = vmatpush3.bf16.msra.mxu1 %v11639_v35 }
 0xe90   :  { %10220 = vmatprep.subr.bf16.mxu1 %v12280_v0 }
 0xea7   :  { %v7929_v49 = vpop.f32.mrf.mxu0 }
 0xea8   :  { %v7930_v58 = vadd.f32 %v7929_v49, %v7889_v20  ;;  %v9825_v20 = vld [vmem:[#allocation32] ss:$0 sm:$0xff] }
 0xea9   :  { %v7931_v48 = vpop.f32.mrf.mxu0 }
 0xeaa   :  { %v7932_v54 = vadd.f32 %v7931_v48, %v7891_v21  ;;  %v7938_v15 = vmax.f32 %v7930_v58, 0.0 }
 0xeab   :  { %v7933_v57 = vpop.f32.mrf.mxu0 }
 0xeac   :  { %v7939_v52 = vmax.f32 %v7932_v54, 0.0  ;;  %v8006_v62 = vpack.c.bf16 %v7938_v15, %v7938_v15 }
 0xead   :  { %v7934_v63 = vpop.f32.mrf.mxu0 }
 0xeae   :  { %v8007_v11 = vpack.c.bf16 %v7939_v52, %v7939_v52  ;;  %v11662_v52 = vld [vmem:[#allocation35 + $0x8] sm:$0xff]   ;;  %v11663_v63 = vld [vmem:[#allocation35] sm:$0xff]  }
 0xeb0   :  { %8279 = vmatprep.mubr.bf16.mxu0 %v8007_v11  ;;  %v9826_v11 = vld [vmem:[#allocation34] ss:$0 sm:$0xff] }
 0xeb1   :  { %8280 = vmatmul.mubr.bf16.vlgmr.msra.gmra.mxu0 %v8006_v62 }
 0xeb2   :  { %10196 = vmatprep.mubr.msk.bf16.mxu0 %vm12281_vm1, %v12280_v0  ;;  %10189 = vmatpush3.bf16.msra.mxu0 %v11640_v33 }
 0xeb3   :  { %10190 = vmatprep.subr.bf16.mxu0 %v12280_v0 }
 0xeb6   :  { %10191 = vmatpush3.bf16.msra.mxu0 %v11641_v12 }
 0xeb7   :  { %10192 = vmatprep.subr.bf16.mxu0 %v12280_v0 }
 0xeba   :  { %10193 = vmatpush3.bf16.msra.mxu0 %v11642_v29 }
 0xebb   :  { %10194 = vmatprep.subr.bf16.mxu0 %v12280_v0 }
 0xebe   :  { %10195 = vmatpush3.bf16.msra.mxu0 %v11643_v17 }
 0xebf   :  { %10200 = vmatprep.subr.bf16.mxu0 %v12280_v0 }
 0xf71   :  { %v9955_v2 = vpop.f32.mrf.mxu0 }
 0xf73   :  { %v9956_v32 = vpop.f32.mrf.mxu0 }
 0xf74   :  { %v9957_v51 = vadd.f32 %v9956_v32, %v9955_v2 }
 0xf75   :  { %v9958_v16 = vpop.f32.mrf.mxu0 }
 0xf76   :  { %v8282_v13 = vadd.f32 %v9957_v51, %v8242_v3 }
 0xf77   :  { %v9959_v38 = vpop.f32.mrf.mxu0 }
 0xf78   :  { %v8287_v4 = vmax.f32 %v8282_v13, 0.0 }
 0xf7a   :  { %v8304_v23 = vpack.c.bf16 %v8287_v4, %v8287_v4 }
 0xf7c   :  { %10185 = vmatmul.mubr.bf16.vlgmr.msra.gmra.mxu1 %v8304_v23 }
 0xf7d   :  { %10236 = vmatprep.mubr.msk.bf16.mxu1 %vm12281_vm1, %v12280_v0  ;;  %10221 = vmatpush3.bf16.msra.mxu1 %v11652_v8 }
 0xf7e   :  { %10222 = vmatprep.subr.bf16.mxu1 %v12280_v0 }
 0xf81   :  { %10223 = vmatpush3.bf16.msra.mxu1 %v11653_v61 }
 0xf82   :  { %10224 = vmatprep.subr.bf16.mxu1 %v12280_v0 }
 0xf85   :  { %10225 = vmatpush3.bf16.msra.mxu1 %v11654_v47 }
 0xf86   :  { %10226 = vmatprep.subr.bf16.mxu1 %v12280_v0 }
 0xf89   :  { %10227 = vmatpush3.bf16.msra.mxu1 %v11655_v50 }
 0xf8a   :  { %10228 = vmatprep.subr.bf16.mxu1 %v12280_v0 }
 0xf8d   :  { %10229 = vmatpush3.bf16.msra.mxu1 %v11656_v53 }
 0xf8e   :  { %10230 = vmatprep.subr.bf16.mxu1 %v12280_v0 }
 0xf91   :  { %10231 = vmatpush3.bf16.msra.mxu1 %v11657_v25 }
 0xf92   :  { %10232 = vmatprep.subr.bf16.mxu1 %v12280_v0 }
 0xf95   :  { %10233 = vmatpush3.bf16.msra.mxu1 %v11658_v22 }
 0xf96   :  { %10234 = vmatprep.subr.bf16.mxu1 %v12280_v0 }
 0xf99   :  { %10235 = vmatpush3.bf16.msra.mxu1 %v11659_v14 }
0x103c   :  { %v8394_v26 = vpop.f32.mrf.mxu1 }
0x103d   :  { %v8395_v9 = vadd.f32 %v9803_v56, %v8394_v26 }
0x103e   :  { %v10186_v27 = vpop.f32.mrf.mxu1 }
0x103f   :  { %v8425_v7 = vpack.c.bf16 %v8395_v9, %v8395_v9 }
0x1040   :  { %v8397_v37 = vpop.f32.mrf.mxu1 }
0x1041   :  { %10197 = vmatmul.mubr.msk.bf16.vlgmr.msra.gmra.mxu0 %vm688_vm9, %v8425_v7 }
0x1042   :  { %10201 = vmatpush3.bf16.msra.mxu0 %v11644_v40  ;;  %v10187_v39 = vpop.f32.mrf.mxu1  ;;  %10216 = vmatprep.mubr.msk.bf16.mxu0 %vm12281_vm1, %v12280_v0 }
0x1043   :  { %10202 = vmatprep.subr.bf16.mxu0 %v12280_v0 }
0x1046   :  { %10203 = vmatpush3.bf16.msra.mxu0 %v11645_v59 }
0x1047   :  { %10204 = vmatprep.subr.bf16.mxu0 %v12280_v0 }
0x104a   :  { %10205 = vmatpush3.bf16.msra.mxu0 %v11646_v41 }
0x104b   :  { %10206 = vmatprep.subr.bf16.mxu0 %v12280_v0 }
0x104e   :  { %10207 = vmatpush3.bf16.msra.mxu0 %v11647_v44 }
0x104f   :  { %10208 = vmatprep.subr.bf16.mxu0 %v12280_v0 }
0x1052   :  { %10209 = vmatpush3.bf16.msra.mxu0 %v11648_v10 }
0x1053   :  { %10210 = vmatprep.subr.bf16.mxu0 %v12280_v0 }
0x1056   :  { %10211 = vmatpush3.bf16.msra.mxu0 %v11649_v43 }
0x1057   :  { %10212 = vmatprep.subr.bf16.mxu0 %v12280_v0 }
0x105a   :  { %10213 = vmatpush3.bf16.msra.mxu0 %v11650_v28 }
0x105b   :  { %10214 = vmatprep.subr.bf16.mxu0 %v12280_v0 }
0x105e   :  { %10215 = vmatpush3.bf16.msra.mxu0 %v11651_v19 }
0x105f   :  { %10240 = vmatprep.subr.bf16.mxu0 %v12280_v0 }
0x1061   :  { %10217 = vmatmul.mubr.bf16.vlgmr.msra.gmra.mxu0 %v8416_v46 }
0x1062   :  { %10248 = vmatprep.mubr.msk.bf16.mxu0 %vm12281_vm1, %v12280_v0  ;;  %10241 = vmatpush3.bf16.msra.mxu0 %v11660_v42 }
0x1063   :  { %10242 = vmatprep.subr.bf16.mxu0 %v12280_v0 }
0x1066   :  { %10243 = vmatpush3.bf16.msra.mxu0 %v11661_v24 }
0x1067   :  { %10244 = vmatprep.subr.bf16.mxu0 %v12280_v0 }
0x106a   :  { %10245 = vmatpush3.bf16.msra.mxu0 %v11662_v52 }
0x106b   :  { %10246 = vmatprep.subr.bf16.mxu0 %v12280_v0 }
0x106e   :  { %10247 = vmatpush3.bf16.msra.mxu0 %v11663_v63 }
0x1101   :  { %v8487_v36 = vpop.f32.mrf.mxu0 }
0x1103   :  { %v10198_v34 = vpop.f32.mrf.mxu0 }
0x1105   :  { %v8490_v31 = vpop.f32.mrf.mxu0 }
0x1107   :  { %v10199_v45 = vpop.f32.mrf.mxu0 }
0x1121   :  { %v8575_v1 = vpop.f32.mrf.mxu0 }
0x1122   :  { %v8576_v49 = vadd.f32 %v8575_v1, %v8487_v36 }
0x1123   :  { %v10218_v58 = vpop.f32.mrf.mxu0 }
0x1124   :  { %v8588_v21 = vadd.f32 %v9825_v20, %v8576_v49 }
0x1125   :  { %v8578_v48 = vpop.f32.mrf.mxu0 }
0x1126   :  { %v8589_v54 = vmax.f32 %v8588_v21, 0.0 }
0x1127   :  { %v10219_v15 = vpop.f32.mrf.mxu0 }
0x1128   :  { %v8606_v57 = vpack.c.bf16 %v8589_v54, %v8589_v54 }
0x112a   :  { %10237 = vmatmul.mubr.bf16.vlgmr.msra.gmra.mxu1 %v8606_v57 }
0x11ea   :  { %v8696_v62 = vpop.f32.mrf.mxu1 }
0x11eb   :  { %v8697_v30 = vadd.f32 %v9826_v11, %v8696_v62 }
0x11ec   :  { %v10238_v6 = vpop.f32.mrf.mxu1 }
0x11ed   :  { %v8702_v35 = vmax.f32 %v8697_v30, 0.0 }
0x11ee   :  { %v8699_v33 = vpop.f32.mrf.mxu1 }
0x11ef   :  { %v8711_v12 = vpack.c.bf16 %v8702_v35, %v8702_v35 }
0x11f0   :  { %v10239_v29 = vpop.f32.mrf.mxu1 }
0x11f1   :  { %10249 = vmatmul.mubr.msk.bf16.vlgmr.msra.gmra.mxu0 %vm688_vm9, %v8711_v12 }
0x12b1   :  { %v8780_v2 = vpop.f32.mrf.mxu0 }
0x12b2   :  { %v8781_v32 = vadd.f32 %v9835_v55, %v8780_v2 }
0x12b3   :  { %v10250_v3 = vpop.f32.mrf.mxu0 }
0x12b4   :  { %8786 = vst [vmem:[#allocation38] sm:$0x3] %v8781_v32 }
0x12b5   :  { %v8783_v0 = vpop.f32.mrf.mxu0 }
0x12b6   :  { %12186 = shalt.err (!%p12183_p7)
}
0x12b7   :  { %8796 = dma.vmem_to_hbm [thread:$0]  %s8794_s0, 32, %s12439_s29, [#allocation4]   ;;  %v10251_v51 = vpop.f32.mrf.mxu0 }
0x12b8   :  { %12219 = dma.done.wait [#allocation4], 32  }
0x12b9   :  { %12220 = vsyncadd [#allocation4], 4294967264 }
0x12ba   :  { %8800 = vsyncpa [#allocation3], 1 }
0x12bb   :  { %8801 = vsyncpa [#allocation6], 1 }
0x12bc   :  { %8802 = vsyncpa [#allocation9], 1 }
0x12bd   :  { %8803 = vsyncpa [#allocation12], 1 }
0x12be   :  { %8804 = vsyncpa [#allocation15], 1 }
0x12bf   :  { %8805 = vsyncpa [#allocation18], 1 }
0x12c0   :  { %8806 = vsyncpa [#allocation21], 1 }
0x12c1   :  { %8807 = vsyncpa [#allocation24], 1 }
0x12c2   :  { %8808 = vsyncpa [#allocation27], 1 }
0x12c3   :  { %8809 = vsyncpa [#allocation30], 1 }
0x12c4   :  { %8810 = vsyncpa [#allocation33], 1 }
0x12c5   :  { %8811 = vsyncpa [#allocation36], 1 }
0x12c6   :  { %8812 = vsyncpa [#allocation4], 1 }

</bundles_post_ra>
